<compile_context>
chip_gen: v6e
topology: v6e:2x2x1
jax: 0.10.0
libtpu: 0.0.40
codegen_flags: <defaults>
</compile_context>

<pallas_src>
import jax
import jax.numpy as jnp
from jax import lax
from jax.experimental import pallas as pl
from jax.experimental.pallas import tpu as pltpu


def _round_up(x, m):
    return (x + m - 1) // m * m


def _make_up_kernel(H, W, h1, w1, C2, C1, C_mid, C_out, py0, px0, Wp):
    """Fused upsample+pad+concat+double-conv kernel for ONE image (batch grid)."""
    C_in = C2 + C1
    L = H * Wp                 # flat "extended output" extent (H rows, stride Wp)
    S = (H + 2) * Wp           # padded slab: H interior rows + top/bottom zero rows
    w2x = 2 * w1               # upsampled row width

    def conv3x3(slab, w_ref, n_out):
        # 3x3 conv as 9 tap GEMMs over the flat padded slab.  Row stride Wp is a
        # multiple of 128, so the 3 dy tap bases are lane-aligned slices; the
        # dx = +/-1 column taps are served by two whole-slab rolls (XLU),
        # reused across all dy values.
        sm = pltpu.roll(slab, S - 1, 1)    # sm[p] = slab[p + 1]   (dx = +1)
        sp = pltpu.roll(slab, 1, 1)        # sp[p] = slab[p - 1]   (dx = -1)
        planes = (sp, slab, sm)            # kx = 0, 1, 2
        acc = jnp.zeros((n_out, L), jnp.float32)
        for ky in range(3):
            base = ky * Wp
            for kx in range(3):
                acc = acc + jnp.dot(w_ref[ky * 3 + kx],
                                    planes[kx][:, base:base + L],
                                    preferred_element_type=jnp.float32)
        return acc

    def kernel(x2_ref, x1_ref, rep_ref, mask_ref,
               w1_ref, b1_ref, w2_ref, b2_ref, o_ref, xpf, ypf):
        # x2_ref : (C2, H, W)         skip feature (one image)
        # x1_ref : (C1, h1*w1)        low-res feature, flat spatial
        # rep_ref: (h1*w1, 2*h1*w1)   0/1 width-replication matrix
        # mask_ref: (1, L)            1 on the W valid lanes of each output row
        # w1_ref : (9, C_mid, C_in)   conv1 taps, (out,in), BN scale folded in
        # w2_ref : (9, C_out, C_mid)  conv2 taps, (out,in), BN scale folded in
        # b*_ref : (C, 1)             folded BN shift (incl. conv bias)
        # o_ref  : (C_out, H, W)
        # xpf    : (C_in, S)  scratch: aligned padded conv1 input (concat image)
        # ypf    : (C_mid, S) scratch: aligned padded conv2 input

        # ---- stage conv1 input.  Every lane of xpf is rewritten every step
        # (pads with zeros, interiors with data) -> no cross-step scratch state,
        # so the batch grid axis can safely be "parallel" (megacore).
        zrow_all = jnp.zeros((C_in, Wp), jnp.float32)
        ztail_all = jnp.zeros((C_in, Wp - W), jnp.float32)
        xpf[:, 0:Wp] = zrow_all                       # top zero-pad row
        xpf[:, (H + 1) * Wp:S] = zrow_all             # bottom zero-pad row

        x1_lo = 1 + py0                               # first padded row w/ x1 data
        x1_hi = x1_lo + 2 * h1                        # exclusive
        if px0 > 0:
            zleft_x1 = jnp.zeros((C1, px0), jnp.float32)
        if px0 + w2x < W:
            zright_x1 = jnp.zeros((C1, W - px0 - w2x), jnp.float32)
        if x1_lo > 1 or x1_hi < H + 1:
            zrow_x1 = jnp.zeros((C1, W), jnp.float32)

        for r in range(1, H + 1):                     # interior padded rows
            base = r * Wp
            xpf[:, base + W:base + Wp] = ztail_all    # shared right/left halo
            xpf[0:C2, base:base + W] = x2_ref[:, r - 1, :]
            if r < x1_lo or r >= x1_hi:               # rows without upsampled data
                xpf[C2:C_in, base:base + W] = zrow_x1
            else:                                     # zero the F.pad columns only
                if px0 > 0:
                    xpf[C2:C_in, base:base + px0] = zleft_x1
                if px0 + w2x < W:
                    xpf[C2:C_in, base + px0 + w2x:base + W] = zright_x1

        # Nearest-2x upsample of x1: width via one 0/1 replication matmul for the
        # whole image (MXU, exact); height by storing each widened row twice.
        upw = jnp.dot(x1_ref[...], rep_ref[...],
                      preferred_element_type=jnp.float32)     # (C1, 2*h1*w1)
        for r in range(h1):
            row = upw[:, r * w2x:(r + 1) * w2x]
            base = (x1_lo + 2 * r) * Wp + px0
            xpf[C2:C_in, base:base + w2x] = row
            xpf[C2:C_in, base + Wp:base + Wp + w2x] = row

        # ---- conv1 + (folded-BN) bias + ReLU --------------------------------
        y1 = jnp.maximum(conv3x3(xpf[...], w1_ref, C_mid) + b1_ref[...], 0.0)

        # ---- bulk re-stage into the padded conv2 input: one masked full-width
        # store (junk lanes zeroed by the mask); only the pad rows need memset.
        ypf[:, 0:Wp] = jnp.zeros((C_mid, Wp), jnp.float32)
        ypf[:, Wp:Wp + L] = y1 * mask_ref[...]
        ypf[:, (H + 1) * Wp:S] = jnp.zeros((C_mid, Wp), jnp.float32)

        # ---- conv2 + bias + ReLU --------------------------------------------
        y2 = jnp.maximum(conv3x3(ypf[...], w2_ref, C_out) + b2_ref[...], 0.0)

        # ---- write back the W valid lanes of each output row (aligned source)
        for i in range(H):
            o_ref[:, i, :] = y2[:, i * Wp:i * Wp + W]

    return kernel, L, S


def up_forward(x1_nchw, x2_nchw, params):
    """Forward pass of `up`; inputs/outputs are NCHW like PyTorch."""
    N, C1, h1, w1 = x1_nchw.shape
    N2, C2, H, W = x2_nchw.shape
    assert N == N2
    diffY = H - 2 * h1
    diffX = W - 2 * w1
    assert diffY >= 0 and diffX >= 0, "x2 must be at least as large as 2*x1"
    py0, px0 = diffY // 2, diffX // 2

    cw1, cw2 = params["w1"], params["w2"]          # HWIO conv weights
    C_in = C2 + C1
    C_mid = cw1.shape[-1]
    C_out = cw2.shape[-1]

    # Fold BN scale into the conv weights (one-time); keep bias+ReLU in kernel.
    w1f = cw1 * params["s1"].reshape(1, 1, 1, C_mid)
    w2f = cw2 * params["s2"].reshape(1, 1, 1, C_out)
    w1t = jnp.transpose(w1f, (0, 1, 3, 2)).reshape(9, C_mid, C_in)
    w2t = jnp.transpose(w2f, (0, 1, 3, 2)).reshape(9, C_out, C_mid)
    b1c = params["b1"].reshape(C_mid, 1)
    b2c = params["b2"].reshape(C_out, 1)

    # Lane-aligned padded row layout.
    Wp = _round_up(W + 2, 128)
    kernel, L, S = _make_up_kernel(H, W, h1, w1, C2, C1, C_mid, C_out,
                                   py0, px0, Wp)

    # (1, L) validity mask: 1 on the W valid lanes of each output row.
    mask = ((jnp.arange(L, dtype=jnp.int32) % Wp) < W
            ).astype(jnp.float32).reshape(1, L)

    # Block-diagonal 0/1 width-replication matrix: (h1*w1, 2*h1*w1).
    m = h1 * w1
    src = jnp.arange(m, dtype=jnp.int32)
    dst = jnp.arange(2 * m, dtype=jnp.int32)
    rep = ((dst[None, :] // (2 * w1) == src[:, None] // w1) &
           ((dst[None, :] % (2 * w1)) // 2 == src[:, None] % w1)
           ).astype(jnp.float32)

    # Free row-major metadata reshape (no transposes / pads / concats here).
    x1f = x1_nchw.reshape(N, C1, m)

    # VMEM budget estimate (scratch + rolled-slab temporaries + blocks + accs).
    est = 4 * (S * (C_in + C_mid) * 4
               + 2 * (C2 * H * W + C1 * m + C_out * H * W)
               + 9 * (C_mid * C_in + C_out * C_mid) + L + 2 * m * m
               + 3 * (C_mid + C_out) * L)
    vmem_limit = int(min(max(est, 8 << 20), 48 << 20))

    flops = int(N * (2 * 9 * H * W * (C_in * C_mid + C_mid * C_out)
                     + 2 * C1 * m * 2 * m))
    bytes_accessed = int(4 * (N * (C2 * H * W + C1 * m + C_out * H * W)
                              + 9 * (C_mid * C_in + C_out * C_mid)
                              + C_mid + C_out + L + 2 * m * m))

    out = pl.pallas_call(
        kernel,
        out_shape=jax.ShapeDtypeStruct((N, C_out, H, W), jnp.float32),
        grid_spec=pltpu.PrefetchScalarGridSpec(
            num_scalar_prefetch=0,
            grid=(N,),
            in_specs=[
                pl.BlockSpec((None, C2, H, W), lambda n: (n, 0, 0, 0)),
                pl.BlockSpec((None, C1, m), lambda n: (n, 0, 0)),
                pl.BlockSpec((m, 2 * m), lambda n: (0, 0)),
                pl.BlockSpec((1, L), lambda n: (0, 0)),
                pl.BlockSpec((9, C_mid, C_in), lambda n: (0, 0, 0)),
                pl.BlockSpec((C_mid, 1), lambda n: (0, 0)),
                pl.BlockSpec((9, C_out, C_mid), lambda n: (0, 0, 0)),
                pl.BlockSpec((C_out, 1), lambda n: (0, 0)),
            ],
            out_specs=pl.BlockSpec((None, C_out, H, W), lambda n: (n, 0, 0, 0)),
            scratch_shapes=[
                pltpu.VMEM((C_in, S), jnp.float32),
                pltpu.VMEM((C_mid, S), jnp.float32),
            ],
        ),
        compiler_params=pltpu.CompilerParams(
            dimension_semantics=("parallel",),
            vmem_limit_bytes=vmem_limit),
        cost_estimate=pl.CostEstimate(
            flops=flops, transcendentals=0, bytes_accessed=bytes_accessed),
    )(x2_nchw, x1f, rep, mask, w1t, b1c, w2t, b2c)

    return out


def make_params(in_ch, out_ch, key):
    """Deterministic parameters matching the module's shapes.

    conv1: Conv2d(in_ch, out_ch, 3, padding=1) + BatchNorm2d(out_ch)
    conv2: Conv2d(out_ch, out_ch, 3, padding=1) + BatchNorm2d(out_ch)
    BN (inference mode) is folded with the conv bias into scale/shift.
    """
    ks = jax.random.split(key, 10)
    eps = 1e-5

    def fold_bn(conv_bias, gamma, beta, mean, var):
        scale = gamma / jnp.sqrt(var + eps)
        shift = beta + (conv_bias - mean) * scale
        return scale, shift

    w1 = 0.1 * jax.random.normal(ks[0], (3, 3, in_ch, out_ch), jnp.float32)
    cb1 = 0.05 * jax.random.normal(ks[1], (out_ch,), jnp.float32)
    g1 = 1.0 + 0.1 * jax.random.normal(ks[2], (out_ch,), jnp.float32)
    be1 = 0.1 * jax.random.normal(ks[3], (out_ch,), jnp.float32)
    m1 = 0.1 * jax.random.normal(ks[4], (out_ch,), jnp.float32)
    v1 = jax.random.uniform(ks[5], (out_ch,), jnp.float32, 0.5, 1.5)
    s1, b1 = fold_bn(cb1, g1, be1, m1, v1)

    w2 = 0.1 * jax.random.normal(ks[6], (3, 3, out_ch, out_ch), jnp.float32)
    cb2 = 0.05 * jax.random.normal(ks[7], (out_ch,), jnp.float32)
    g2 = 1.0 + 0.1 * jax.random.normal(ks[8], (out_ch,), jnp.float32)
    be2 = 0.1 * jax.random.normal(ks[9], (out_ch,), jnp.float32)
    m2 = jnp.zeros((out_ch,), jnp.float32)
    v2 = jnp.ones((out_ch,), jnp.float32)
    s2, b2 = fold_bn(cb2, g2, be2, m2, v2)

    return {"w1": w1, "s1": s1, "b1": b1, "w2": w2, "s2": s2, "b2": b2}


def ref_forward(x1_nchw, x2_nchw, params):
    """Pure-JAX reference (same math) for the correctness check."""
    x1 = jnp.repeat(jnp.repeat(x1_nchw, 2, axis=2), 2, axis=3)
    diffY = x2_nchw.shape[2] - x1.shape[2]
    diffX = x2_nchw.shape[3] - x1.shape[3]
    x1 = jnp.pad(x1, ((0, 0), (0, 0),
                      (diffY // 2, diffY - diffY // 2),
                      (diffX // 2, diffX - diffX // 2)))
    x = jnp.concatenate([x2_nchw, x1], axis=1)
    x = jnp.transpose(x, (0, 2, 3, 1))

    def conv_bn_relu(x, w, s, b):
        y = lax.conv_general_dilated(
            x, w, (1, 1), "SAME",
            dimension_numbers=("NHWC", "HWIO", "NHWC"))
        return jnp.maximum(y * s.reshape(1, 1, 1, -1) + b.reshape(1, 1, 1, -1),
                           0.0)

    y = conv_bn_relu(x, params["w1"], params["s1"], params["b1"])
    y = conv_bn_relu(y, params["w2"], params["s2"], params["b2"])
    return jnp.transpose(y, (0, 3, 1, 2))


if __name__ == "__main__":
    key = jax.random.PRNGKey(0)
    k1, k2, kp = jax.random.split(key, 3)

    # x1: low-res decoder feature (N, C1, H/2, W/2); x2: skip feature (N, C2, H, W)
    x1 = jax.random.normal(k1, (2, 4, 8, 8), jnp.float32)
    x2 = jax.random.normal(k2, (2, 2, 16, 16), jnp.float32)

    in_ch = x1.shape[1] + x2.shape[1]   # 6 channels after concat
    out_ch = 4
    params = make_params(in_ch, out_ch, kp)

    out = jax.block_until_ready(up_forward(x1, x2, params))
    ref = jax.block_until_ready(ref_forward(x1, x2, params))

    assert out.shape == (2, out_ch, 16, 16), out.shape
    err = float(jnp.max(jnp.abs(out - ref)))
    assert err < 2e-4, err

    print("KERNEL_OK")
</pallas_src>

<mosaic_0001>
module attributes {stable_mosaic.version = 11 : i64} {
  func.func @kernel(%arg0: i32, %arg1: memref<1x2x16x16xf32, #tpu.memory_space<vmem>>, %arg2: memref<1x4x64xf32, #tpu.memory_space<vmem>>, %arg3: memref<64x128xf32, #tpu.memory_space<vmem>>, %arg4: memref<1x2048xf32, #tpu.memory_space<vmem>>, %arg5: memref<9x4x6xf32, #tpu.memory_space<vmem>>, %arg6: memref<4x1xf32, #tpu.memory_space<vmem>>, %arg7: memref<9x4x4xf32, #tpu.memory_space<vmem>>, %arg8: memref<4x1xf32, #tpu.memory_space<vmem>>, %arg9: memref<1x4x16x16xf32, #tpu.memory_space<vmem>>, %arg10: memref<6x2304xf32, #tpu.memory_space<vmem>>, %arg11: memref<4x2304xf32, #tpu.memory_space<vmem>>) attributes {dimension_semantics = [#tpu.dimension_semantics<parallel>], iteration_bounds = array<i64: 2>, scalar_prefetch = 0 : i64, scratch_operands = 2 : i64, tpu.core_type = #tpu.core_type<tc>, window_params = [{transform_indices = @transform_0, window_bounds = array<i64: 1, 2, 16, 16>}, {transform_indices = @transform_1, window_bounds = array<i64: 1, 4, 64>}, {pipeline_mode = #tpu.pipeline_mode<synchronous>, transform_indices = @transform_2, window_bounds = array<i64: 64, 128>}, {pipeline_mode = #tpu.pipeline_mode<synchronous>, transform_indices = @transform_3, window_bounds = array<i64: 1, 2048>}, {pipeline_mode = #tpu.pipeline_mode<synchronous>, transform_indices = @transform_4, window_bounds = array<i64: 9, 4, 6>}, {pipeline_mode = #tpu.pipeline_mode<synchronous>, transform_indices = @transform_5, window_bounds = array<i64: 4, 1>}, {pipeline_mode = #tpu.pipeline_mode<synchronous>, transform_indices = @transform_6, window_bounds = array<i64: 9, 4, 4>}, {pipeline_mode = #tpu.pipeline_mode<synchronous>, transform_indices = @transform_7, window_bounds = array<i64: 4, 1>}, {transform_indices = @transform_8, window_bounds = array<i64: 1, 4, 16, 16>}]} {
    %cst = arith.constant 0.000000e+00 : f32
    %0 = vector.broadcast %cst : f32 to vector<6x128xf32>
    %cst_0 = arith.constant 0.000000e+00 : f32
    %1 = vector.broadcast %cst_0 : f32 to vector<6x112xf32>
    %c0 = arith.constant 0 : index
    %c0_1 = arith.constant 0 : index
    %2 = vector.load %arg10[%c0, %c0_1] : memref<6x2304xf32, #tpu.memory_space<vmem>>, vector<6x128xf32>
    tpu.vector_store %arg10[%c0, %c0_1], %0 {strides = array<i32>} : memref<6x2304xf32, #tpu.memory_space<vmem>>, vector<6x128xf32>,
    %c0_2 = arith.constant 0 : index
    %c2176 = arith.constant 2176 : index
    %3 = vector.load %arg10[%c0_2, %c2176] : memref<6x2304xf32, #tpu.memory_space<vmem>>, vector<6x128xf32>
    tpu.vector_store %arg10[%c0_2, %c2176], %0 {strides = array<i32>} : memref<6x2304xf32, #tpu.memory_space<vmem>>, vector<6x128xf32>,
    %c0_3 = arith.constant 0 : index
    %c144 = arith.constant 144 : index
    %4 = vector.load %arg10[%c0_3, %c144] : memref<6x2304xf32, #tpu.memory_space<vmem>>, vector<6x112xf32>
    tpu.vector_store %arg10[%c0_3, %c144], %1 {strides = array<i32>} : memref<6x2304xf32, #tpu.memory_space<vmem>>, vector<6x112xf32>,
    %c0_4 = arith.constant 0 : index
    %c0_5 = arith.constant 0 : index
    %c0_6 = arith.constant 0 : index
    %c0_7 = arith.constant 0 : index
    %5 = vector.load %arg1[%c0_4, %c0_5, %c0_6, %c0_7] : memref<1x2x16x16xf32, #tpu.memory_space<vmem>>, vector<1x2x1x16xf32>
    %6 = vector.shape_cast %5 : vector<1x2x1x16xf32> to vector<2x16xf32>
    %c0_8 = arith.constant 0 : index
    %c128 = arith.constant 128 : index
    %7 = vector.load %arg10[%c0_8, %c128] : memref<6x2304xf32, #tpu.memory_space<vmem>>, vector<2x16xf32>
    tpu.vector_store %arg10[%c0_8, %c128], %6 {strides = array<i32>} : memref<6x2304xf32, #tpu.memory_space<vmem>>, vector<2x16xf32>,
    %c0_9 = arith.constant 0 : index
    %c272 = arith.constant 272 : index
    %8 = vector.load %arg10[%c0_9, %c272] : memref<6x2304xf32, #tpu.memory_space<vmem>>, vector<6x112xf32>
    tpu.vector_store %arg10[%c0_9, %c272], %1 {strides = array<i32>} : memref<6x2304xf32, #tpu.memory_space<vmem>>, vector<6x112xf32>,
    %c0_10 = arith.constant 0 : index
    %c0_11 = arith.constant 0 : index
    %c1 = arith.constant 1 : index
    %c0_12 = arith.constant 0 : index
    %9 = vector.load %arg1[%c0_10, %c0_11, %c1, %c0_12] : memref<1x2x16x16xf32, #tpu.memory_space<vmem>>, vector<1x2x1x16xf32>
    %10 = vector.shape_cast %9 : vector<1x2x1x16xf32> to vector<2x16xf32>
    %c0_13 = arith.constant 0 : index
    %c256 = arith.constant 256 : index
    %11 = vector.load %arg10[%c0_13, %c256] : memref<6x2304xf32, #tpu.memory_space<vmem>>, vector<2x16xf32>
    tpu.vector_store %arg10[%c0_13, %c256], %10 {strides = array<i32>} : memref<6x2304xf32, #tpu.memory_space<vmem>>, vector<2x16xf32>,
    %c0_14 = arith.constant 0 : index
    %c400 = arith.constant 400 : index
    %12 = vector.load %arg10[%c0_14, %c400] : memref<6x2304xf32, #tpu.memory_space<vmem>>, vector<6x112xf32>
    tpu.vector_store %arg10[%c0_14, %c400], %1 {strides = array<i32>} : memref<6x2304xf32, #tpu.memory_space<vmem>>, vector<6x112xf32>,
    %c0_15 = arith.constant 0 : index
    %c0_16 = arith.constant 0 : index
    %c2 = arith.constant 2 : index
    %c0_17 = arith.constant 0 : index
    %13 = vector.load %arg1[%c0_15, %c0_16, %c2, %c0_17] : memref<1x2x16x16xf32, #tpu.memory_space<vmem>>, vector<1x2x1x16xf32>
    %14 = vector.shape_cast %13 : vector<1x2x1x16xf32> to vector<2x16xf32>
    %c0_18 = arith.constant 0 : index
    %c384 = arith.constant 384 : index
    %15 = vector.load %arg10[%c0_18, %c384] : memref<6x2304xf32, #tpu.memory_space<vmem>>, vector<2x16xf32>
    tpu.vector_store %arg10[%c0_18, %c384], %14 {strides = array<i32>} : memref<6x2304xf32, #tpu.memory_space<vmem>>, vector<2x16xf32>,
    %c0_19 = arith.constant 0 : index
    %c528 = arith.constant 528 : index
    %16 = vector.load %arg10[%c0_19, %c528] : memref<6x2304xf32, #tpu.memory_space<vmem>>, vector<6x112xf32>
    tpu.vector_store %arg10[%c0_19, %c528], %1 {strides = array<i32>} : memref<6x2304xf32, #tpu.memory_space<vmem>>, vector<6x112xf32>,
    %c0_20 = arith.constant 0 : index
    %c0_21 = arith.constant 0 : index
    %c3 = arith.constant 3 : index
    %c0_22 = arith.constant 0 : index
    %17 = vector.load %arg1[%c0_20, %c0_21, %c3, %c0_22] : memref<1x2x16x16xf32, #tpu.memory_space<vmem>>, vector<1x2x1x16xf32>
    %18 = vector.shape_cast %17 : vector<1x2x1x16xf32> to vector<2x16xf32>
    %c0_23 = arith.constant 0 : index
    %c512 = arith.constant 512 : index
    %19 = vector.load %arg10[%c0_23, %c512] : memref<6x2304xf32, #tpu.memory_space<vmem>>, vector<2x16xf32>
    tpu.vector_store %arg10[%c0_23, %c512], %18 {strides = array<i32>} : memref<6x2304xf32, #tpu.memory_space<vmem>>, vector<2x16xf32>,
    %c0_24 = arith.constant 0 : index
    %c656 = arith.constant 656 : index
    %20 = vector.load %arg10[%c0_24, %c656] : memref<6x2304xf32, #tpu.memory_space<vmem>>, vector<6x112xf32>
    tpu.vector_store %arg10[%c0_24, %c656], %1 {strides = array<i32>} : memref<6x2304xf32, #tpu.memory_space<vmem>>, vector<6x112xf32>,
    %c0_25 = arith.constant 0 : index
    %c0_26 = arith.constant 0 : index
    %c4 = arith.constant 4 : index
    %c0_27 = arith.constant 0 : index
    %21 = vector.load %arg1[%c0_25, %c0_26, %c4, %c0_27] : memref<1x2x16x16xf32, #tpu.memory_space<vmem>>, vector<1x2x1x16xf32>
    %22 = vector.shape_cast %21 : vector<1x2x1x16xf32> to vector<2x16xf32>
    %c0_28 = arith.constant 0 : index
    %c640 = arith.constant 640 : index
    %23 = vector.load %arg10[%c0_28, %c640] : memref<6x2304xf32, #tpu.memory_space<vmem>>, vector<2x16xf32>
    tpu.vector_store %arg10[%c0_28, %c640], %22 {strides = array<i32>} : memref<6x2304xf32, #tpu.memory_space<vmem>>, vector<2x16xf32>,
    %c0_29 = arith.constant 0 : index
    %c784 = arith.constant 784 : index
    %24 = vector.load %arg10[%c0_29, %c784] : memref<6x2304xf32, #tpu.memory_space<vmem>>, vector<6x112xf32>
    tpu.vector_store %arg10[%c0_29, %c784], %1 {strides = array<i32>} : memref<6x2304xf32, #tpu.memory_space<vmem>>, vector<6x112xf32>,
    %c0_30 = arith.constant 0 : index
    %c0_31 = arith.constant 0 : index
    %c5 = arith.constant 5 : index
    %c0_32 = arith.constant 0 : index
    %25 = vector.load %arg1[%c0_30, %c0_31, %c5, %c0_32] : memref<1x2x16x16xf32, #tpu.memory_space<vmem>>, vector<1x2x1x16xf32>
    %26 = vector.shape_cast %25 : vector<1x2x1x16xf32> to vector<2x16xf32>
    %c0_33 = arith.constant 0 : index
    %c768 = arith.constant 768 : index
    %27 = vector.load %arg10[%c0_33, %c768] : memref<6x2304xf32, #tpu.memory_space<vmem>>, vector<2x16xf32>
    tpu.vector_store %arg10[%c0_33, %c768], %26 {strides = array<i32>} : memref<6x2304xf32, #tpu.memory_space<vmem>>, vector<2x16xf32>,
    %c0_34 = arith.constant 0 : index
    %c912 = arith.constant 912 : index
    %28 = vector.load %arg10[%c0_34, %c912] : memref<6x2304xf32, #tpu.memory_space<vmem>>, vector<6x112xf32>
    tpu.vector_store %arg10[%c0_34, %c912], %1 {strides = array<i32>} : memref<6x2304xf32, #tpu.memory_space<vmem>>, vector<6x112xf32>,
    %c0_35 = arith.constant 0 : index
    %c0_36 = arith.constant 0 : index
    %c6 = arith.constant 6 : index
    %c0_37 = arith.constant 0 : index
    %29 = vector.load %arg1[%c0_35, %c0_36, %c6, %c0_37] : memref<1x2x16x16xf32, #tpu.memory_space<vmem>>, vector<1x2x1x16xf32>
    %30 = vector.shape_cast %29 : vector<1x2x1x16xf32> to vector<2x16xf32>
    %c0_38 = arith.constant 0 : index
    %c896 = arith.constant 896 : index
    %31 = vector.load %arg10[%c0_38, %c896] : memref<6x2304xf32, #tpu.memory_space<vmem>>, vector<2x16xf32>
    tpu.vector_store %arg10[%c0_38, %c896], %30 {strides = array<i32>} : memref<6x2304xf32, #tpu.memory_space<vmem>>, vector<2x16xf32>,
    %c0_39 = arith.constant 0 : index
    %c1040 = arith.constant 1040 : index
    %32 = vector.load %arg10[%c0_39, %c1040] : memref<6x2304xf32, #tpu.memory_space<vmem>>, vector<6x112xf32>
    tpu.vector_store %arg10[%c0_39, %c1040], %1 {strides = array<i32>} : memref<6x2304xf32, #tpu.memory_space<vmem>>, vector<6x112xf32>,
    %c0_40 = arith.constant 0 : index
    %c0_41 = arith.constant 0 : index
    %c7 = arith.constant 7 : index
    %c0_42 = arith.constant 0 : index
    %33 = vector.load %arg1[%c0_40, %c0_41, %c7, %c0_42] : memref<1x2x16x16xf32, #tpu.memory_space<vmem>>, vector<1x2x1x16xf32>
    %34 = vector.shape_cast %33 : vector<1x2x1x16xf32> to vector<2x16xf32>
    %c0_43 = arith.constant 0 : index
    %c1024 = arith.constant 1024 : index
    %35 = vector.load %arg10[%c0_43, %c1024] : memref<6x2304xf32, #tpu.memory_space<vmem>>, vector<2x16xf32>
    tpu.vector_store %arg10[%c0_43, %c1024], %34 {strides = array<i32>} : memref<6x2304xf32, #tpu.memory_space<vmem>>, vector<2x16xf32>,
    %c0_44 = arith.constant 0 : index
    %c1168 = arith.constant 1168 : index
    %36 = vector.load %arg10[%c0_44, %c1168] : memref<6x2304xf32, #tpu.memory_space<vmem>>, vector<6x112xf32>
    tpu.vector_store %arg10[%c0_44, %c1168], %1 {strides = array<i32>} : memref<6x2304xf32, #tpu.memory_space<vmem>>, vector<6x112xf32>,
    %c0_45 = arith.constant 0 : index
    %c0_46 = arith.constant 0 : index
    %c8 = arith.constant 8 : index
    %c0_47 = arith.constant 0 : index
    %37 = vector.load %arg1[%c0_45, %c0_46, %c8, %c0_47] : memref<1x2x16x16xf32, #tpu.memory_space<vmem>>, vector<1x2x1x16xf32>
    %38 = vector.shape_cast %37 : vector<1x2x1x16xf32> to vector<2x16xf32>
    %c0_48 = arith.constant 0 : index
    %c1152 = arith.constant 1152 : index
    %39 = vector.load %arg10[%c0_48, %c1152] : memref<6x2304xf32, #tpu.memory_space<vmem>>, vector<2x16xf32>
    tpu.vector_store %arg10[%c0_48, %c1152], %38 {strides = array<i32>} : memref<6x2304xf32, #tpu.memory_space<vmem>>, vector<2x16xf32>,
    %c0_49 = arith.constant 0 : index
    %c1296 = arith.constant 1296 : index
    %40 = vector.load %arg10[%c0_49, %c1296] : memref<6x2304xf32, #tpu.memory_space<vmem>>, vector<6x112xf32>
    tpu.vector_store %arg10[%c0_49, %c1296], %1 {strides = array<i32>} : memref<6x2304xf32, #tpu.memory_space<vmem>>, vector<6x112xf32>,
    %c0_50 = arith.constant 0 : index
    %c0_51 = arith.constant 0 : index
    %c9 = arith.constant 9 : index
    %c0_52 = arith.constant 0 : index
    %41 = vector.load %arg1[%c0_50, %c0_51, %c9, %c0_52] : memref<1x2x16x16xf32, #tpu.memory_space<vmem>>, vector<1x2x1x16xf32>
    %42 = vector.shape_cast %41 : vector<1x2x1x16xf32> to vector<2x16xf32>
    %c0_53 = arith.constant 0 : index
    %c1280 = arith.constant 1280 : index
    %43 = vector.load %arg10[%c0_53, %c1280] : memref<6x2304xf32, #tpu.memory_space<vmem>>, vector<2x16xf32>
    tpu.vector_store %arg10[%c0_53, %c1280], %42 {strides = array<i32>} : memref<6x2304xf32, #tpu.memory_space<vmem>>, vector<2x16xf32>,
    %c0_54 = arith.constant 0 : index
    %c1424 = arith.constant 1424 : index
    %44 = vector.load %arg10[%c0_54, %c1424] : memref<6x2304xf32, #tpu.memory_space<vmem>>, vector<6x112xf32>
    tpu.vector_store %arg10[%c0_54, %c1424], %1 {strides = array<i32>} : memref<6x2304xf32, #tpu.memory_space<vmem>>, vector<6x112xf32>,
    %c0_55 = arith.constant 0 : index
    %c0_56 = arith.constant 0 : index
    %c10 = arith.constant 10 : index
    %c0_57 = arith.constant 0 : index
    %45 = vector.load %arg1[%c0_55, %c0_56, %c10, %c0_57] : memref<1x2x16x16xf32, #tpu.memory_space<vmem>>, vector<1x2x1x16xf32>
    %46 = vector.shape_cast %45 : vector<1x2x1x16xf32> to vector<2x16xf32>
    %c0_58 = arith.constant 0 : index
    %c1408 = arith.constant 1408 : index
    %47 = vector.load %arg10[%c0_58, %c1408] : memref<6x2304xf32, #tpu.memory_space<vmem>>, vector<2x16xf32>
    tpu.vector_store %arg10[%c0_58, %c1408], %46 {strides = array<i32>} : memref<6x2304xf32, #tpu.memory_space<vmem>>, vector<2x16xf32>,
    %c0_59 = arith.constant 0 : index
    %c1552 = arith.constant 1552 : index
    %48 = vector.load %arg10[%c0_59, %c1552] : memref<6x2304xf32, #tpu.memory_space<vmem>>, vector<6x112xf32>
    tpu.vector_store %arg10[%c0_59, %c1552], %1 {strides = array<i32>} : memref<6x2304xf32, #tpu.memory_space<vmem>>, vector<6x112xf32>,
    %c0_60 = arith.constant 0 : index
    %c0_61 = arith.constant 0 : index
    %c11 = arith.constant 11 : index
    %c0_62 = arith.constant 0 : index
    %49 = vector.load %arg1[%c0_60, %c0_61, %c11, %c0_62] : memref<1x2x16x16xf32, #tpu.memory_space<vmem>>, vector<1x2x1x16xf32>
    %50 = vector.shape_cast %49 : vector<1x2x1x16xf32> to vector<2x16xf32>
    %c0_63 = arith.constant 0 : index
    %c1536 = arith.constant 1536 : index
    %51 = vector.load %arg10[%c0_63, %c1536] : memref<6x2304xf32, #tpu.memory_space<vmem>>, vector<2x16xf32>
    tpu.vector_store %arg10[%c0_63, %c1536], %50 {strides = array<i32>} : memref<6x2304xf32, #tpu.memory_space<vmem>>, vector<2x16xf32>,
    %c0_64 = arith.constant 0 : index
    %c1680 = arith.constant 1680 : index
    %52 = vector.load %arg10[%c0_64, %c1680] : memref<6x2304xf32, #tpu.memory_space<vmem>>, vector<6x112xf32>
    tpu.vector_store %arg10[%c0_64, %c1680], %1 {strides = array<i32>} : memref<6x2304xf32, #tpu.memory_space<vmem>>, vector<6x112xf32>,
    %c0_65 = arith.constant 0 : index
    %c0_66 = arith.constant 0 : index
    %c12 = arith.constant 12 : index
    %c0_67 = arith.constant 0 : index
    %53 = vector.load %arg1[%c0_65, %c0_66, %c12, %c0_67] : memref<1x2x16x16xf32, #tpu.memory_space<vmem>>, vector<1x2x1x16xf32>
    %54 = vector.shape_cast %53 : vector<1x2x1x16xf32> to vector<2x16xf32>
    %c0_68 = arith.constant 0 : index
    %c1664 = arith.constant 1664 : index
    %55 = vector.load %arg10[%c0_68, %c1664] : memref<6x2304xf32, #tpu.memory_space<vmem>>, vector<2x16xf32>
    tpu.vector_store %arg10[%c0_68, %c1664], %54 {strides = array<i32>} : memref<6x2304xf32, #tpu.memory_space<vmem>>, vector<2x16xf32>,
    %c0_69 = arith.constant 0 : index
    %c1808 = arith.constant 1808 : index
    %56 = vector.load %arg10[%c0_69, %c1808] : memref<6x2304xf32, #tpu.memory_space<vmem>>, vector<6x112xf32>
    tpu.vector_store %arg10[%c0_69, %c1808], %1 {strides = array<i32>} : memref<6x2304xf32, #tpu.memory_space<vmem>>, vector<6x112xf32>,
    %c0_70 = arith.constant 0 : index
    %c0_71 = arith.constant 0 : index
    %c13 = arith.constant 13 : index
    %c0_72 = arith.constant 0 : index
    %57 = vector.load %arg1[%c0_70, %c0_71, %c13, %c0_72] : memref<1x2x16x16xf32, #tpu.memory_space<vmem>>, vector<1x2x1x16xf32>
    %58 = vector.shape_cast %57 : vector<1x2x1x16xf32> to vector<2x16xf32>
    %c0_73 = arith.constant 0 : index
    %c1792 = arith.constant 1792 : index
    %59 = vector.load %arg10[%c0_73, %c1792] : memref<6x2304xf32, #tpu.memory_space<vmem>>, vector<2x16xf32>
    tpu.vector_store %arg10[%c0_73, %c1792], %58 {strides = array<i32>} : memref<6x2304xf32, #tpu.memory_space<vmem>>, vector<2x16xf32>,
    %c0_74 = arith.constant 0 : index
    %c1936 = arith.constant 1936 : index
    %60 = vector.load %arg10[%c0_74, %c1936] : memref<6x2304xf32, #tpu.memory_space<vmem>>, vector<6x112xf32>
    tpu.vector_store %arg10[%c0_74, %c1936], %1 {strides = array<i32>} : memref<6x2304xf32, #tpu.memory_space<vmem>>, vector<6x112xf32>,
    %c0_75 = arith.constant 0 : index
    %c0_76 = arith.constant 0 : index
    %c14 = arith.constant 14 : index
    %c0_77 = arith.constant 0 : index
    %61 = vector.load %arg1[%c0_75, %c0_76, %c14, %c0_77] : memref<1x2x16x16xf32, #tpu.memory_space<vmem>>, vector<1x2x1x16xf32>
    %62 = vector.shape_cast %61 : vector<1x2x1x16xf32> to vector<2x16xf32>
    %c0_78 = arith.constant 0 : index
    %c1920 = arith.constant 1920 : index
    %63 = vector.load %arg10[%c0_78, %c1920] : memref<6x2304xf32, #tpu.memory_space<vmem>>, vector<2x16xf32>
    tpu.vector_store %arg10[%c0_78, %c1920], %62 {strides = array<i32>} : memref<6x2304xf32, #tpu.memory_space<vmem>>, vector<2x16xf32>,
    %c0_79 = arith.constant 0 : index
    %c2064 = arith.constant 2064 : index
    %64 = vector.load %arg10[%c0_79, %c2064] : memref<6x2304xf32, #tpu.memory_space<vmem>>, vector<6x112xf32>
    tpu.vector_store %arg10[%c0_79, %c2064], %1 {strides = array<i32>} : memref<6x2304xf32, #tpu.memory_space<vmem>>, vector<6x112xf32>,
    %c0_80 = arith.constant 0 : index
    %c0_81 = arith.constant 0 : index
    %c15 = arith.constant 15 : index
    %c0_82 = arith.constant 0 : index
    %65 = vector.load %arg1[%c0_80, %c0_81, %c15, %c0_82] : memref<1x2x16x16xf32, #tpu.memory_space<vmem>>, vector<1x2x1x16xf32>
    %66 = vector.shape_cast %65 : vector<1x2x1x16xf32> to vector<2x16xf32>
    %c0_83 = arith.constant 0 : index
    %c2048 = arith.constant 2048 : index
    %67 = vector.load %arg10[%c0_83, %c2048] : memref<6x2304xf32, #tpu.memory_space<vmem>>, vector<2x16xf32>
    tpu.vector_store %arg10[%c0_83, %c2048], %66 {strides = array<i32>} : memref<6x2304xf32, #tpu.memory_space<vmem>>, vector<2x16xf32>,
    %c0_84 = arith.constant 0 : index
    %c0_85 = arith.constant 0 : index
    %c0_86 = arith.constant 0 : index
    %68 = vector.load %arg2[%c0_84, %c0_85, %c0_86] : memref<1x4x64xf32, #tpu.memory_space<vmem>>, vector<1x4x64xf32>
    %69 = vector.shape_cast %68 : vector<1x4x64xf32> to vector<4x64xf32>
    %c0_87 = arith.constant 0 : index
    %c0_88 = arith.constant 0 : index
    %70 = vector.load %arg3[%c0_87, %c0_88] : memref<64x128xf32, #tpu.memory_space<vmem>>, vector<64x128xf32>
    %cst_89 = arith.constant dense<0.000000e+00> : vector<4x128xf32>
    %71 = tpu.matmul %69, %70, %cst_89 {dimension_numbers = #tpu.dot_dimension_numbers<[1], [0], [0], [1], [0, 0, 1, 1], [], []>} : vector<4x64xf32>, vector<64x128xf32>, vector<4x128xf32> -> vector<4x128xf32>
    %72 = vector.extract_strided_slice %71 {offsets = [0, 0], sizes = [4, 16], strides = [1, 1]} : vector<4x128xf32> to vector<4x16xf32>
    %c2_90 = arith.constant 2 : index
    %c128_91 = arith.constant 128 : index
    %73 = vector.load %arg10[%c2_90, %c128_91] : memref<6x2304xf32, #tpu.memory_space<vmem>>, vector<4x16xf32>
    tpu.vector_store %arg10[%c2_90, %c128_91], %72 {strides = array<i32>} : memref<6x2304xf32, #tpu.memory_space<vmem>>, vector<4x16xf32>,
    %c2_92 = arith.constant 2 : index
    %c256_93 = arith.constant 256 : index
    %74 = vector.load %arg10[%c2_92, %c256_93] : memref<6x2304xf32, #tpu.memory_space<vmem>>, vector<4x16xf32>
    tpu.vector_store %arg10[%c2_92, %c256_93], %72 {strides = array<i32>} : memref<6x2304xf32, #tpu.memory_space<vmem>>, vector<4x16xf32>,
    %75 = vector.extract_strided_slice %71 {offsets = [0, 16], sizes = [4, 16], strides = [1, 1]} : vector<4x128xf32> to vector<4x16xf32>
    %c2_94 = arith.constant 2 : index
    %c384_95 = arith.constant 384 : index
    %76 = vector.load %arg10[%c2_94, %c384_95] : memref<6x2304xf32, #tpu.memory_space<vmem>>, vector<4x16xf32>
    tpu.vector_store %arg10[%c2_94, %c384_95], %75 {strides = array<i32>} : memref<6x2304xf32, #tpu.memory_space<vmem>>, vector<4x16xf32>,
    %c2_96 = arith.constant 2 : index
    %c512_97 = arith.constant 512 : index
    %77 = vector.load %arg10[%c2_96, %c512_97] : memref<6x2304xf32, #tpu.memory_space<vmem>>, vector<4x16xf32>
    tpu.vector_store %arg10[%c2_96, %c512_97], %75 {strides = array<i32>} : memref<6x2304xf32, #tpu.memory_space<vmem>>, vector<4x16xf32>,
    %78 = vector.extract_strided_slice %71 {offsets = [0, 32], sizes = [4, 16], strides = [1, 1]} : vector<4x128xf32> to vector<4x16xf32>
    %c2_98 = arith.constant 2 : index
    %c640_99 = arith.constant 640 : index
    %79 = vector.load %arg10[%c2_98, %c640_99] : memref<6x2304xf32, #tpu.memory_space<vmem>>, vector<4x16xf32>
    tpu.vector_store %arg10[%c2_98, %c640_99], %78 {strides = array<i32>} : memref<6x2304xf32, #tpu.memory_space<vmem>>, vector<4x16xf32>,
    %c2_100 = arith.constant 2 : index
    %c768_101 = arith.constant 768 : index
    %80 = vector.load %arg10[%c2_100, %c768_101] : memref<6x2304xf32, #tpu.memory_space<vmem>>, vector<4x16xf32>
    tpu.vector_store %arg10[%c2_100, %c768_101], %78 {strides = array<i32>} : memref<6x2304xf32, #tpu.memory_space<vmem>>, vector<4x16xf32>,
    %81 = vector.extract_strided_slice %71 {offsets = [0, 48], sizes = [4, 16], strides = [1, 1]} : vector<4x128xf32> to vector<4x16xf32>
    %c2_102 = arith.constant 2 : index
    %c896_103 = arith.constant 896 : index
    %82 = vector.load %arg10[%c2_102, %c896_103] : memref<6x2304xf32, #tpu.memory_space<vmem>>, vector<4x16xf32>
    tpu.vector_store %arg10[%c2_102, %c896_103], %81 {strides = array<i32>} : memref<6x2304xf32, #tpu.memory_space<vmem>>, vector<4x16xf32>,
    %c2_104 = arith.constant 2 : index
    %c1024_105 = arith.constant 1024 : index
    %83 = vector.load %arg10[%c2_104, %c1024_105] : memref<6x2304xf32, #tpu.memory_space<vmem>>, vector<4x16xf32>
    tpu.vector_store %arg10[%c2_104, %c1024_105], %81 {strides = array<i32>} : memref<6x2304xf32, #tpu.memory_space<vmem>>, vector<4x16xf32>,
    %84 = vector.extract_strided_slice %71 {offsets = [0, 64], sizes = [4, 16], strides = [1, 1]} : vector<4x128xf32> to vector<4x16xf32>
    %c2_106 = arith.constant 2 : index
    %c1152_107 = arith.constant 1152 : index
    %85 = vector.load %arg10[%c2_106, %c1152_107] : memref<6x2304xf32, #tpu.memory_space<vmem>>, vector<4x16xf32>
    tpu.vector_store %arg10[%c2_106, %c1152_107], %84 {strides = array<i32>} : memref<6x2304xf32, #tpu.memory_space<vmem>>, vector<4x16xf32>,
    %c2_108 = arith.constant 2 : index
    %c1280_109 = arith.constant 1280 : index
    %86 = vector.load %arg10[%c2_108, %c1280_109] : memref<6x2304xf32, #tpu.memory_space<vmem>>, vector<4x16xf32>
    tpu.vector_store %arg10[%c2_108, %c1280_109], %84 {strides = array<i32>} : memref<6x2304xf32, #tpu.memory_space<vmem>>, vector<4x16xf32>,
    %87 = vector.extract_strided_slice %71 {offsets = [0, 80], sizes = [4, 16], strides = [1, 1]} : vector<4x128xf32> to vector<4x16xf32>
    %c2_110 = arith.constant 2 : index
    %c1408_111 = arith.constant 1408 : index
    %88 = vector.load %arg10[%c2_110, %c1408_111] : memref<6x2304xf32, #tpu.memory_space<vmem>>, vector<4x16xf32>
    tpu.vector_store %arg10[%c2_110, %c1408_111], %87 {strides = array<i32>} : memref<6x2304xf32, #tpu.memory_space<vmem>>, vector<4x16xf32>,
    %c2_112 = arith.constant 2 : index
    %c1536_113 = arith.constant 1536 : index
    %89 = vector.load %arg10[%c2_112, %c1536_113] : memref<6x2304xf32, #tpu.memory_space<vmem>>, vector<4x16xf32>
    tpu.vector_store %arg10[%c2_112, %c1536_113], %87 {strides = array<i32>} : memref<6x2304xf32, #tpu.memory_space<vmem>>, vector<4x16xf32>,
    %90 = vector.extract_strided_slice %71 {offsets = [0, 96], sizes = [4, 16], strides = [1, 1]} : vector<4x128xf32> to vector<4x16xf32>
    %c2_114 = arith.constant 2 : index
    %c1664_115 = arith.constant 1664 : index
    %91 = vector.load %arg10[%c2_114, %c1664_115] : memref<6x2304xf32, #tpu.memory_space<vmem>>, vector<4x16xf32>
    tpu.vector_store %arg10[%c2_114, %c1664_115], %90 {strides = array<i32>} : memref<6x2304xf32, #tpu.memory_space<vmem>>, vector<4x16xf32>,
    %c2_116 = arith.constant 2 : index
    %c1792_117 = arith.constant 1792 : index
    %92 = vector.load %arg10[%c2_116, %c1792_117] : memref<6x2304xf32, #tpu.memory_space<vmem>>, vector<4x16xf32>
    tpu.vector_store %arg10[%c2_116, %c1792_117], %90 {strides = array<i32>} : memref<6x2304xf32, #tpu.memory_space<vmem>>, vector<4x16xf32>,
    %93 = vector.extract_strided_slice %71 {offsets = [0, 112], sizes = [4, 16], strides = [1, 1]} : vector<4x128xf32> to vector<4x16xf32>
    %c2_118 = arith.constant 2 : index
    %c1920_119 = arith.constant 1920 : index
    %94 = vector.load %arg10[%c2_118, %c1920_119] : memref<6x2304xf32, #tpu.memory_space<vmem>>, vector<4x16xf32>
    tpu.vector_store %arg10[%c2_118, %c1920_119], %93 {strides = array<i32>} : memref<6x2304xf32, #tpu.memory_space<vmem>>, vector<4x16xf32>,
    %c2_120 = arith.constant 2 : index
    %c2048_121 = arith.constant 2048 : index
    %95 = vector.load %arg10[%c2_120, %c2048_121] : memref<6x2304xf32, #tpu.memory_space<vmem>>, vector<4x16xf32>
    tpu.vector_store %arg10[%c2_120, %c2048_121], %93 {strides = array<i32>} : memref<6x2304xf32, #tpu.memory_space<vmem>>, vector<4x16xf32>,
    %c0_122 = arith.constant 0 : index
    %c0_123 = arith.constant 0 : index
    %96 = vector.load %arg10[%c0_122, %c0_123] : memref<6x2304xf32, #tpu.memory_space<vmem>>, vector<6x2304xf32>
    %c2303_i32 = arith.constant 2303 : i32
    %97 = tpu.dynamic_rotate %96 by %c2303_i32 dim 1 : vector<6x2304xf32>, i32 -> vector<6x2304xf32>
    %c1_i32 = arith.constant 1 : i32
    %98 = tpu.dynamic_rotate %96 by %c1_i32 dim 1 : vector<6x2304xf32>, i32 -> vector<6x2304xf32>
    %cst_124 = arith.constant 0.000000e+00 : f32
    %99 = vector.broadcast %cst_124 : f32 to vector<4x2048xf32>
    %c0_125 = arith.constant 0 : index
    %c0_126 = arith.constant 0 : index
    %c0_127 = arith.constant 0 : index
    %100 = vector.load %arg5[%c0_125, %c0_126, %c0_127] : memref<9x4x6xf32, #tpu.memory_space<vmem>>, vector<1x4x6xf32>
    %101 = vector.shape_cast %100 : vector<1x4x6xf32> to vector<4x6xf32>
    %102 = vector.extract_strided_slice %98 {offsets = [0, 0], sizes = [6, 2048], strides = [1, 1]} : vector<6x2304xf32> to vector<6x2048xf32>
    %cst_128 = arith.constant dense<0.000000e+00> : vector<4x2048xf32>
    %103 = tpu.matmul %101, %102, %cst_128 {dimension_numbers = #tpu.dot_dimension_numbers<[1], [0], [0], [1], [0, 0, 1, 1], [], []>} : vector<4x6xf32>, vector<6x2048xf32>, vector<4x2048xf32> -> vector<4x2048xf32>
    %104 = arith.addf %99, %103 : vector<4x2048xf32>
    %c1_129 = arith.constant 1 : index
    %c0_130 = arith.constant 0 : index
    %c0_131 = arith.constant 0 : index
    %105 = vector.load %arg5[%c1_129, %c0_130, %c0_131] : memref<9x4x6xf32, #tpu.memory_space<vmem>>, vector<1x4x6xf32>
    %106 = vector.shape_cast %105 : vector<1x4x6xf32> to vector<4x6xf32>
    %107 = vector.extract_strided_slice %96 {offsets = [0, 0], sizes = [6, 2048], strides = [1, 1]} : vector<6x2304xf32> to vector<6x2048xf32>
    %cst_132 = arith.constant dense<0.000000e+00> : vector<4x2048xf32>
    %108 = tpu.matmul %106, %107, %cst_132 {dimension_numbers = #tpu.dot_dimension_numbers<[1], [0], [0], [1], [0, 0, 1, 1], [], []>} : vector<4x6xf32>, vector<6x2048xf32>, vector<4x2048xf32> -> vector<4x2048xf32>
    %109 = arith.addf %104, %108 : vector<4x2048xf32>
    %c2_133 = arith.constant 2 : index
    %c0_134 = arith.constant 0 : index
    %c0_135 = arith.constant 0 : index
    %110 = vector.load %arg5[%c2_133, %c0_134, %c0_135] : memref<9x4x6xf32, #tpu.memory_space<vmem>>, vector<1x4x6xf32>
    %111 = vector.shape_cast %110 : vector<1x4x6xf32> to vector<4x6xf32>
    %112 = vector.extract_strided_slice %97 {offsets = [0, 0], sizes = [6, 2048], strides = [1, 1]} : vector<6x2304xf32> to vector<6x2048xf32>
    %cst_136 = arith.constant dense<0.000000e+00> : vector<4x2048xf32>
    %113 = tpu.matmul %111, %112, %cst_136 {dimension_numbers = #tpu.dot_dimension_numbers<[1], [0], [0], [1], [0, 0, 1, 1], [], []>} : vector<4x6xf32>, vector<6x2048xf32>, vector<4x2048xf32> -> vector<4x2048xf32>
    %114 = arith.addf %109, %113 : vector<4x2048xf32>
    %c3_137 = arith.constant 3 : index
    %c0_138 = arith.constant 0 : index
    %c0_139 = arith.constant 0 : index
    %115 = vector.load %arg5[%c3_137, %c0_138, %c0_139] : memref<9x4x6xf32, #tpu.memory_space<vmem>>, vector<1x4x6xf32>
    %116 = vector.shape_cast %115 : vector<1x4x6xf32> to vector<4x6xf32>
    %117 = vector.extract_strided_slice %98 {offsets = [0, 128], sizes = [6, 2048], strides = [1, 1]} : vector<6x2304xf32> to vector<6x2048xf32>
    %cst_140 = arith.constant dense<0.000000e+00> : vector<4x2048xf32>
    %118 = tpu.matmul %116, %117, %cst_140 {dimension_numbers = #tpu.dot_dimension_numbers<[1], [0], [0], [1], [0, 0, 1, 1], [], []>} : vector<4x6xf32>, vector<6x2048xf32>, vector<4x2048xf32> -> vector<4x2048xf32>
    %119 = arith.addf %114, %118 : vector<4x2048xf32>
    %c4_141 = arith.constant 4 : index
    %c0_142 = arith.constant 0 : index
    %c0_143 = arith.constant 0 : index
    %120 = vector.load %arg5[%c4_141, %c0_142, %c0_143] : memref<9x4x6xf32, #tpu.memory_space<vmem>>, vector<1x4x6xf32>
    %121 = vector.shape_cast %120 : vector<1x4x6xf32> to vector<4x6xf32>
    %122 = vector.extract_strided_slice %96 {offsets = [0, 128], sizes = [6, 2048], strides = [1, 1]} : vector<6x2304xf32> to vector<6x2048xf32>
    %cst_144 = arith.constant dense<0.000000e+00> : vector<4x2048xf32>
    %123 = tpu.matmul %121, %122, %cst_144 {dimension_numbers = #tpu.dot_dimension_numbers<[1], [0], [0], [1], [0, 0, 1, 1], [], []>} : vector<4x6xf32>, vector<6x2048xf32>, vector<4x2048xf32> -> vector<4x2048xf32>
    %124 = arith.addf %119, %123 : vector<4x2048xf32>
    %c5_145 = arith.constant 5 : index
    %c0_146 = arith.constant 0 : index
    %c0_147 = arith.constant 0 : index
    %125 = vector.load %arg5[%c5_145, %c0_146, %c0_147] : memref<9x4x6xf32, #tpu.memory_space<vmem>>, vector<1x4x6xf32>
    %126 = vector.shape_cast %125 : vector<1x4x6xf32> to vector<4x6xf32>
    %127 = vector.extract_strided_slice %97 {offsets = [0, 128], sizes = [6, 2048], strides = [1, 1]} : vector<6x2304xf32> to vector<6x2048xf32>
    %cst_148 = arith.constant dense<0.000000e+00> : vector<4x2048xf32>
    %128 = tpu.matmul %126, %127, %cst_148 {dimension_numbers = #tpu.dot_dimension_numbers<[1], [0], [0], [1], [0, 0, 1, 1], [], []>} : vector<4x6xf32>, vector<6x2048xf32>, vector<4x2048xf32> -> vector<4x2048xf32>
    %129 = arith.addf %124, %128 : vector<4x2048xf32>
    %c6_149 = arith.constant 6 : index
    %c0_150 = arith.constant 0 : index
    %c0_151 = arith.constant 0 : index
    %130 = vector.load %arg5[%c6_149, %c0_150, %c0_151] : memref<9x4x6xf32, #tpu.memory_space<vmem>>, vector<1x4x6xf32>
    %131 = vector.shape_cast %130 : vector<1x4x6xf32> to vector<4x6xf32>
    %132 = vector.extract_strided_slice %98 {offsets = [0, 256], sizes = [6, 2048], strides = [1, 1]} : vector<6x2304xf32> to vector<6x2048xf32>
    %cst_152 = arith.constant dense<0.000000e+00> : vector<4x2048xf32>
    %133 = tpu.matmul %131, %132, %cst_152 {dimension_numbers = #tpu.dot_dimension_numbers<[1], [0], [0], [1], [0, 0, 1, 1], [], []>} : vector<4x6xf32>, vector<6x2048xf32>, vector<4x2048xf32> -> vector<4x2048xf32>
    %134 = arith.addf %129, %133 : vector<4x2048xf32>
    %c7_153 = arith.constant 7 : index
    %c0_154 = arith.constant 0 : index
    %c0_155 = arith.constant 0 : index
    %135 = vector.load %arg5[%c7_153, %c0_154, %c0_155] : memref<9x4x6xf32, #tpu.memory_space<vmem>>, vector<1x4x6xf32>
    %136 = vector.shape_cast %135 : vector<1x4x6xf32> to vector<4x6xf32>
    %137 = vector.extract_strided_slice %96 {offsets = [0, 256], sizes = [6, 2048], strides = [1, 1]} : vector<6x2304xf32> to vector<6x2048xf32>
    %cst_156 = arith.constant dense<0.000000e+00> : vector<4x2048xf32>
    %138 = tpu.matmul %136, %137, %cst_156 {dimension_numbers = #tpu.dot_dimension_numbers<[1], [0], [0], [1], [0, 0, 1, 1], [], []>} : vector<4x6xf32>, vector<6x2048xf32>, vector<4x2048xf32> -> vector<4x2048xf32>
    %139 = arith.addf %134, %138 : vector<4x2048xf32>
    %c8_157 = arith.constant 8 : index
    %c0_158 = arith.constant 0 : index
    %c0_159 = arith.constant 0 : index
    %140 = vector.load %arg5[%c8_157, %c0_158, %c0_159] : memref<9x4x6xf32, #tpu.memory_space<vmem>>, vector<1x4x6xf32>
    %141 = vector.shape_cast %140 : vector<1x4x6xf32> to vector<4x6xf32>
    %142 = vector.extract_strided_slice %97 {offsets = [0, 256], sizes = [6, 2048], strides = [1, 1]} : vector<6x2304xf32> to vector<6x2048xf32>
    %cst_160 = arith.constant dense<0.000000e+00> : vector<4x2048xf32>
    %143 = tpu.matmul %141, %142, %cst_160 {dimension_numbers = #tpu.dot_dimension_numbers<[1], [0], [0], [1], [0, 0, 1, 1], [], []>} : vector<4x6xf32>, vector<6x2048xf32>, vector<4x2048xf32> -> vector<4x2048xf32>
    %144 = arith.addf %139, %143 : vector<4x2048xf32>
    %c0_161 = arith.constant 0 : index
    %c0_162 = arith.constant 0 : index
    %145 = vector.load %arg6[%c0_161, %c0_162] : memref<4x1xf32, #tpu.memory_space<vmem>>, vector<4x1xf32>
    %146 = vector.broadcast %145 : vector<4x1xf32> to vector<4x2048xf32>
    %147 = arith.addf %144, %146 : vector<4x2048xf32>
    %cst_163 = arith.constant 0.000000e+00 : f32
    %148 = vector.broadcast %cst_163 : f32 to vector<4x2048xf32>
    %149 = arith.maximumf %147, %148 : vector<4x2048xf32>
    %cst_164 = arith.constant 0.000000e+00 : f32
    %150 = vector.broadcast %cst_164 : f32 to vector<4x128xf32>
    %c0_165 = arith.constant 0 : index
    %c0_166 = arith.constant 0 : index
    %151 = vector.load %arg11[%c0_165, %c0_166] : memref<4x2304xf32, #tpu.memory_space<vmem>>, vector<4x128xf32>
    tpu.vector_store %arg11[%c0_165, %c0_166], %150 {strides = array<i32>} : memref<4x2304xf32, #tpu.memory_space<vmem>>, vector<4x128xf32>,
    %c0_167 = arith.constant 0 : index
    %c0_168 = arith.constant 0 : index
    %152 = vector.load %arg4[%c0_167, %c0_168] : memref<1x2048xf32, #tpu.memory_space<vmem>>, vector<1x2048xf32>
    %153 = vector.broadcast %152 : vector<1x2048xf32> to vector<4x2048xf32>
    %154 = arith.mulf %149, %153 : vector<4x2048xf32>
    %c0_169 = arith.constant 0 : index
    %c128_170 = arith.constant 128 : index
    %155 = vector.load %arg11[%c0_169, %c128_170] : memref<4x2304xf32, #tpu.memory_space<vmem>>, vector<4x2048xf32>
    tpu.vector_store %arg11[%c0_169, %c128_170], %154 {strides = array<i32>} : memref<4x2304xf32, #tpu.memory_space<vmem>>, vector<4x2048xf32>,
    %cst_171 = arith.constant 0.000000e+00 : f32
    %156 = vector.broadcast %cst_171 : f32 to vector<4x128xf32>
    %c0_172 = arith.constant 0 : index
    %c2176_173 = arith.constant 2176 : index
    %157 = vector.load %arg11[%c0_172, %c2176_173] : memref<4x2304xf32, #tpu.memory_space<vmem>>, vector<4x128xf32>
    tpu.vector_store %arg11[%c0_172, %c2176_173], %156 {strides = array<i32>} : memref<4x2304xf32, #tpu.memory_space<vmem>>, vector<4x128xf32>,
    %c0_174 = arith.constant 0 : index
    %c0_175 = arith.constant 0 : index
    %158 = vector.load %arg11[%c0_174, %c0_175] : memref<4x2304xf32, #tpu.memory_space<vmem>>, vector<4x2304xf32>
    %c2303_i32_176 = arith.constant 2303 : i32
    %159 = tpu.dynamic_rotate %158 by %c2303_i32_176 dim 1 : vector<4x2304xf32>, i32 -> vector<4x2304xf32>
    %c1_i32_177 = arith.constant 1 : i32
    %160 = tpu.dynamic_rotate %158 by %c1_i32_177 dim 1 : vector<4x2304xf32>, i32 -> vector<4x2304xf32>
    %cst_178 = arith.constant 0.000000e+00 : f32
    %161 = vector.broadcast %cst_178 : f32 to vector<4x2048xf32>
    %c0_179 = arith.constant 0 : index
    %c0_180 = arith.constant 0 : index
    %c0_181 = arith.constant 0 : index
    %162 = vector.load %arg7[%c0_179, %c0_180, %c0_181] : memref<9x4x4xf32, #tpu.memory_space<vmem>>, vector<1x4x4xf32>
    %163 = vector.shape_cast %162 : vector<1x4x4xf32> to vector<4x4xf32>
    %164 = vector.extract_strided_slice %160 {offsets = [0, 0], sizes = [4, 2048], strides = [1, 1]} : vector<4x2304xf32> to vector<4x2048xf32>
    %cst_182 = arith.constant dense<0.000000e+00> : vector<4x2048xf32>
    %165 = tpu.matmul %163, %164, %cst_182 {dimension_numbers = #tpu.dot_dimension_numbers<[1], [0], [0], [1], [0, 0, 1, 1], [], []>} : vector<4x4xf32>, vector<4x2048xf32>, vector<4x2048xf32> -> vector<4x2048xf32>
    %166 = arith.addf %161, %165 : vector<4x2048xf32>
    %c1_183 = arith.constant 1 : index
    %c0_184 = arith.constant 0 : index
    %c0_185 = arith.constant 0 : index
    %167 = vector.load %arg7[%c1_183, %c0_184, %c0_185] : memref<9x4x4xf32, #tpu.memory_space<vmem>>, vector<1x4x4xf32>
    %168 = vector.shape_cast %167 : vector<1x4x4xf32> to vector<4x4xf32>
    %169 = vector.extract_strided_slice %158 {offsets = [0, 0], sizes = [4, 2048], strides = [1, 1]} : vector<4x2304xf32> to vector<4x2048xf32>
    %cst_186 = arith.constant dense<0.000000e+00> : vector<4x2048xf32>
    %170 = tpu.matmul %168, %169, %cst_186 {dimension_numbers = #tpu.dot_dimension_numbers<[1], [0], [0], [1], [0, 0, 1, 1], [], []>} : vector<4x4xf32>, vector<4x2048xf32>, vector<4x2048xf32> -> vector<4x2048xf32>
    %171 = arith.addf %166, %170 : vector<4x2048xf32>
    %c2_187 = arith.constant 2 : index
    %c0_188 = arith.constant 0 : index
    %c0_189 = arith.constant 0 : index
    %172 = vector.load %arg7[%c2_187, %c0_188, %c0_189] : memref<9x4x4xf32, #tpu.memory_space<vmem>>, vector<1x4x4xf32>
    %173 = vector.shape_cast %172 : vector<1x4x4xf32> to vector<4x4xf32>
    %174 = vector.extract_strided_slice %159 {offsets = [0, 0], sizes = [4, 2048], strides = [1, 1]} : vector<4x2304xf32> to vector<4x2048xf32>
    %cst_190 = arith.constant dense<0.000000e+00> : vector<4x2048xf32>
    %175 = tpu.matmul %173, %174, %cst_190 {dimension_numbers = #tpu.dot_dimension_numbers<[1], [0], [0], [1], [0, 0, 1, 1], [], []>} : vector<4x4xf32>, vector<4x2048xf32>, vector<4x2048xf32> -> vector<4x2048xf32>
    %176 = arith.addf %171, %175 : vector<4x2048xf32>
    %c3_191 = arith.constant 3 : index
    %c0_192 = arith.constant 0 : index
    %c0_193 = arith.constant 0 : index
    %177 = vector.load %arg7[%c3_191, %c0_192, %c0_193] : memref<9x4x4xf32, #tpu.memory_space<vmem>>, vector<1x4x4xf32>
    %178 = vector.shape_cast %177 : vector<1x4x4xf32> to vector<4x4xf32>
    %179 = vector.extract_strided_slice %160 {offsets = [0, 128], sizes = [4, 2048], strides = [1, 1]} : vector<4x2304xf32> to vector<4x2048xf32>
    %cst_194 = arith.constant dense<0.000000e+00> : vector<4x2048xf32>
    %180 = tpu.matmul %178, %179, %cst_194 {dimension_numbers = #tpu.dot_dimension_numbers<[1], [0], [0], [1], [0, 0, 1, 1], [], []>} : vector<4x4xf32>, vector<4x2048xf32>, vector<4x2048xf32> -> vector<4x2048xf32>
    %181 = arith.addf %176, %180 : vector<4x2048xf32>
    %c4_195 = arith.constant 4 : index
    %c0_196 = arith.constant 0 : index
    %c0_197 = arith.constant 0 : index
    %182 = vector.load %arg7[%c4_195, %c0_196, %c0_197] : memref<9x4x4xf32, #tpu.memory_space<vmem>>, vector<1x4x4xf32>
    %183 = vector.shape_cast %182 : vector<1x4x4xf32> to vector<4x4xf32>
    %184 = vector.extract_strided_slice %158 {offsets = [0, 128], sizes = [4, 2048], strides = [1, 1]} : vector<4x2304xf32> to vector<4x2048xf32>
    %cst_198 = arith.constant dense<0.000000e+00> : vector<4x2048xf32>
    %185 = tpu.matmul %183, %184, %cst_198 {dimension_numbers = #tpu.dot_dimension_numbers<[1], [0], [0], [1], [0, 0, 1, 1], [], []>} : vector<4x4xf32>, vector<4x2048xf32>, vector<4x2048xf32> -> vector<4x2048xf32>
    %186 = arith.addf %181, %185 : vector<4x2048xf32>
    %c5_199 = arith.constant 5 : index
    %c0_200 = arith.constant 0 : index
    %c0_201 = arith.constant 0 : index
    %187 = vector.load %arg7[%c5_199, %c0_200, %c0_201] : memref<9x4x4xf32, #tpu.memory_space<vmem>>, vector<1x4x4xf32>
    %188 = vector.shape_cast %187 : vector<1x4x4xf32> to vector<4x4xf32>
    %189 = vector.extract_strided_slice %159 {offsets = [0, 128], sizes = [4, 2048], strides = [1, 1]} : vector<4x2304xf32> to vector<4x2048xf32>
    %cst_202 = arith.constant dense<0.000000e+00> : vector<4x2048xf32>
    %190 = tpu.matmul %188, %189, %cst_202 {dimension_numbers = #tpu.dot_dimension_numbers<[1], [0], [0], [1], [0, 0, 1, 1], [], []>} : vector<4x4xf32>, vector<4x2048xf32>, vector<4x2048xf32> -> vector<4x2048xf32>
    %191 = arith.addf %186, %190 : vector<4x2048xf32>
    %c6_203 = arith.constant 6 : index
    %c0_204 = arith.constant 0 : index
    %c0_205 = arith.constant 0 : index
    %192 = vector.load %arg7[%c6_203, %c0_204, %c0_205] : memref<9x4x4xf32, #tpu.memory_space<vmem>>, vector<1x4x4xf32>
    %193 = vector.shape_cast %192 : vector<1x4x4xf32> to vector<4x4xf32>
    %194 = vector.extract_strided_slice %160 {offsets = [0, 256], sizes = [4, 2048], strides = [1, 1]} : vector<4x2304xf32> to vector<4x2048xf32>
    %cst_206 = arith.constant dense<0.000000e+00> : vector<4x2048xf32>
    %195 = tpu.matmul %193, %194, %cst_206 {dimension_numbers = #tpu.dot_dimension_numbers<[1], [0], [0], [1], [0, 0, 1, 1], [], []>} : vector<4x4xf32>, vector<4x2048xf32>, vector<4x2048xf32> -> vector<4x2048xf32>
    %196 = arith.addf %191, %195 : vector<4x2048xf32>
    %c7_207 = arith.constant 7 : index
    %c0_208 = arith.constant 0 : index
    %c0_209 = arith.constant 0 : index
    %197 = vector.load %arg7[%c7_207, %c0_208, %c0_209] : memref<9x4x4xf32, #tpu.memory_space<vmem>>, vector<1x4x4xf32>
    %198 = vector.shape_cast %197 : vector<1x4x4xf32> to vector<4x4xf32>
    %199 = vector.extract_strided_slice %158 {offsets = [0, 256], sizes = [4, 2048], strides = [1, 1]} : vector<4x2304xf32> to vector<4x2048xf32>
    %cst_210 = arith.constant dense<0.000000e+00> : vector<4x2048xf32>
    %200 = tpu.matmul %198, %199, %cst_210 {dimension_numbers = #tpu.dot_dimension_numbers<[1], [0], [0], [1], [0, 0, 1, 1], [], []>} : vector<4x4xf32>, vector<4x2048xf32>, vector<4x2048xf32> -> vector<4x2048xf32>
    %201 = arith.addf %196, %200 : vector<4x2048xf32>
    %c8_211 = arith.constant 8 : index
    %c0_212 = arith.constant 0 : index
    %c0_213 = arith.constant 0 : index
    %202 = vector.load %arg7[%c8_211, %c0_212, %c0_213] : memref<9x4x4xf32, #tpu.memory_space<vmem>>, vector<1x4x4xf32>
    %203 = vector.shape_cast %202 : vector<1x4x4xf32> to vector<4x4xf32>
    %204 = vector.extract_strided_slice %159 {offsets = [0, 256], sizes = [4, 2048], strides = [1, 1]} : vector<4x2304xf32> to vector<4x2048xf32>
    %cst_214 = arith.constant dense<0.000000e+00> : vector<4x2048xf32>
    %205 = tpu.matmul %203, %204, %cst_214 {dimension_numbers = #tpu.dot_dimension_numbers<[1], [0], [0], [1], [0, 0, 1, 1], [], []>} : vector<4x4xf32>, vector<4x2048xf32>, vector<4x2048xf32> -> vector<4x2048xf32>
    %206 = arith.addf %201, %205 : vector<4x2048xf32>
    %c0_215 = arith.constant 0 : index
    %c0_216 = arith.constant 0 : index
    %207 = vector.load %arg8[%c0_215, %c0_216] : memref<4x1xf32, #tpu.memory_space<vmem>>, vector<4x1xf32>
    %208 = vector.broadcast %207 : vector<4x1xf32> to vector<4x2048xf32>
    %209 = arith.addf %206, %208 : vector<4x2048xf32>
    %cst_217 = arith.constant 0.000000e+00 : f32
    %210 = vector.broadcast %cst_217 : f32 to vector<4x2048xf32>
    %211 = arith.maximumf %209, %210 : vector<4x2048xf32>
    %212 = vector.extract_strided_slice %211 {offsets = [0, 0], sizes = [4, 16], strides = [1, 1]} : vector<4x2048xf32> to vector<4x16xf32>
    %c0_218 = arith.constant 0 : index
    %c0_219 = arith.constant 0 : index
    %c0_220 = arith.constant 0 : index
    %c0_221 = arith.constant 0 : index
    %213 = vector.load %arg9[%c0_218, %c0_219, %c0_220, %c0_221] : memref<1x4x16x16xf32, #tpu.memory_space<vmem>>, vector<1x4x1x16xf32>
    %214 = vector.shape_cast %213 : vector<1x4x1x16xf32> to vector<4x16xf32>
    %215 = vector.shape_cast %212 : vector<4x16xf32> to vector<1x4x1x16xf32>
    tpu.vector_store %arg9[%c0_218, %c0_219, %c0_220, %c0_221], %215 {strides = array<i32>} : memref<1x4x16x16xf32, #tpu.memory_space<vmem>>, vector<1x4x1x16xf32>,
    %216 = vector.extract_strided_slice %211 {offsets = [0, 128], sizes = [4, 16], strides = [1, 1]} : vector<4x2048xf32> to vector<4x16xf32>
    %c0_222 = arith.constant 0 : index
    %c0_223 = arith.constant 0 : index
    %c1_224 = arith.constant 1 : index
    %c0_225 = arith.constant 0 : index
    %217 = vector.load %arg9[%c0_222, %c0_223, %c1_224, %c0_225] : memref<1x4x16x16xf32, #tpu.memory_space<vmem>>, vector<1x4x1x16xf32>
    %218 = vector.shape_cast %217 : vector<1x4x1x16xf32> to vector<4x16xf32>
    %219 = vector.shape_cast %216 : vector<4x16xf32> to vector<1x4x1x16xf32>
    tpu.vector_store %arg9[%c0_222, %c0_223, %c1_224, %c0_225], %219 {strides = array<i32>} : memref<1x4x16x16xf32, #tpu.memory_space<vmem>>, vector<1x4x1x16xf32>,
    %220 = vector.extract_strided_slice %211 {offsets = [0, 256], sizes = [4, 16], strides = [1, 1]} : vector<4x2048xf32> to vector<4x16xf32>
    %c0_226 = arith.constant 0 : index
    %c0_227 = arith.constant 0 : index
    %c2_228 = arith.constant 2 : index
    %c0_229 = arith.constant 0 : index
    %221 = vector.load %arg9[%c0_226, %c0_227, %c2_228, %c0_229] : memref<1x4x16x16xf32, #tpu.memory_space<vmem>>, vector<1x4x1x16xf32>
    %222 = vector.shape_cast %221 : vector<1x4x1x16xf32> to vector<4x16xf32>
    %223 = vector.shape_cast %220 : vector<4x16xf32> to vector<1x4x1x16xf32>
    tpu.vector_store %arg9[%c0_226, %c0_227, %c2_228, %c0_229], %223 {strides = array<i32>} : memref<1x4x16x16xf32, #tpu.memory_space<vmem>>, vector<1x4x1x16xf32>,
    %224 = vector.extract_strided_slice %211 {offsets = [0, 384], sizes = [4, 16], strides = [1, 1]} : vector<4x2048xf32> to vector<4x16xf32>
    %c0_230 = arith.constant 0 : index
    %c0_231 = arith.constant 0 : index
    %c3_232 = arith.constant 3 : index
    %c0_233 = arith.constant 0 : index
    %225 = vector.load %arg9[%c0_230, %c0_231, %c3_232, %c0_233] : memref<1x4x16x16xf32, #tpu.memory_space<vmem>>, vector<1x4x1x16xf32>
    %226 = vector.shape_cast %225 : vector<1x4x1x16xf32> to vector<4x16xf32>
    %227 = vector.shape_cast %224 : vector<4x16xf32> to vector<1x4x1x16xf32>
    tpu.vector_store %arg9[%c0_230, %c0_231, %c3_232, %c0_233], %227 {strides = array<i32>} : memref<1x4x16x16xf32, #tpu.memory_space<vmem>>, vector<1x4x1x16xf32>,
    %228 = vector.extract_strided_slice %211 {offsets = [0, 512], sizes = [4, 16], strides = [1, 1]} : vector<4x2048xf32> to vector<4x16xf32>
    %c0_234 = arith.constant 0 : index
    %c0_235 = arith.constant 0 : index
    %c4_236 = arith.constant 4 : index
    %c0_237 = arith.constant 0 : index
    %229 = vector.load %arg9[%c0_234, %c0_235, %c4_236, %c0_237] : memref<1x4x16x16xf32, #tpu.memory_space<vmem>>, vector<1x4x1x16xf32>
    %230 = vector.shape_cast %229 : vector<1x4x1x16xf32> to vector<4x16xf32>
    %231 = vector.shape_cast %228 : vector<4x16xf32> to vector<1x4x1x16xf32>
    tpu.vector_store %arg9[%c0_234, %c0_235, %c4_236, %c0_237], %231 {strides = array<i32>} : memref<1x4x16x16xf32, #tpu.memory_space<vmem>>, vector<1x4x1x16xf32>,
    %232 = vector.extract_strided_slice %211 {offsets = [0, 640], sizes = [4, 16], strides = [1, 1]} : vector<4x2048xf32> to vector<4x16xf32>
    %c0_238 = arith.constant 0 : index
    %c0_239 = arith.constant 0 : index
    %c5_240 = arith.constant 5 : index
    %c0_241 = arith.constant 0 : index
    %233 = vector.load %arg9[%c0_238, %c0_239, %c5_240, %c0_241] : memref<1x4x16x16xf32, #tpu.memory_space<vmem>>, vector<1x4x1x16xf32>
    %234 = vector.shape_cast %233 : vector<1x4x1x16xf32> to vector<4x16xf32>
    %235 = vector.shape_cast %232 : vector<4x16xf32> to vector<1x4x1x16xf32>
    tpu.vector_store %arg9[%c0_238, %c0_239, %c5_240, %c0_241], %235 {strides = array<i32>} : memref<1x4x16x16xf32, #tpu.memory_space<vmem>>, vector<1x4x1x16xf32>,
    %236 = vector.extract_strided_slice %211 {offsets = [0, 768], sizes = [4, 16], strides = [1, 1]} : vector<4x2048xf32> to vector<4x16xf32>
    %c0_242 = arith.constant 0 : index
    %c0_243 = arith.constant 0 : index
    %c6_244 = arith.constant 6 : index
    %c0_245 = arith.constant 0 : index
    %237 = vector.load %arg9[%c0_242, %c0_243, %c6_244, %c0_245] : memref<1x4x16x16xf32, #tpu.memory_space<vmem>>, vector<1x4x1x16xf32>
    %238 = vector.shape_cast %237 : vector<1x4x1x16xf32> to vector<4x16xf32>
    %239 = vector.shape_cast %236 : vector<4x16xf32> to vector<1x4x1x16xf32>
    tpu.vector_store %arg9[%c0_242, %c0_243, %c6_244, %c0_245], %239 {strides = array<i32>} : memref<1x4x16x16xf32, #tpu.memory_space<vmem>>, vector<1x4x1x16xf32>,
    %240 = vector.extract_strided_slice %211 {offsets = [0, 896], sizes = [4, 16], strides = [1, 1]} : vector<4x2048xf32> to vector<4x16xf32>
    %c0_246 = arith.constant 0 : index
    %c0_247 = arith.constant 0 : index
    %c7_248 = arith.constant 7 : index
    %c0_249 = arith.constant 0 : index
    %241 = vector.load %arg9[%c0_246, %c0_247, %c7_248, %c0_249] : memref<1x4x16x16xf32, #tpu.memory_space<vmem>>, vector<1x4x1x16xf32>
    %242 = vector.shape_cast %241 : vector<1x4x1x16xf32> to vector<4x16xf32>
    %243 = vector.shape_cast %240 : vector<4x16xf32> to vector<1x4x1x16xf32>
    tpu.vector_store %arg9[%c0_246, %c0_247, %c7_248, %c0_249], %243 {strides = array<i32>} : memref<1x4x16x16xf32, #tpu.memory_space<vmem>>, vector<1x4x1x16xf32>,
    %244 = vector.extract_strided_slice %211 {offsets = [0, 1024], sizes = [4, 16], strides = [1, 1]} : vector<4x2048xf32> to vector<4x16xf32>
    %c0_250 = arith.constant 0 : index
    %c0_251 = arith.constant 0 : index
    %c8_252 = arith.constant 8 : index
    %c0_253 = arith.constant 0 : index
    %245 = vector.load %arg9[%c0_250, %c0_251, %c8_252, %c0_253] : memref<1x4x16x16xf32, #tpu.memory_space<vmem>>, vector<1x4x1x16xf32>
    %246 = vector.shape_cast %245 : vector<1x4x1x16xf32> to vector<4x16xf32>
    %247 = vector.shape_cast %244 : vector<4x16xf32> to vector<1x4x1x16xf32>
    tpu.vector_store %arg9[%c0_250, %c0_251, %c8_252, %c0_253], %247 {strides = array<i32>} : memref<1x4x16x16xf32, #tpu.memory_space<vmem>>, vector<1x4x1x16xf32>,
    %248 = vector.extract_strided_slice %211 {offsets = [0, 1152], sizes = [4, 16], strides = [1, 1]} : vector<4x2048xf32> to vector<4x16xf32>
    %c0_254 = arith.constant 0 : index
    %c0_255 = arith.constant 0 : index
    %c9_256 = arith.constant 9 : index
    %c0_257 = arith.constant 0 : index
    %249 = vector.load %arg9[%c0_254, %c0_255, %c9_256, %c0_257] : memref<1x4x16x16xf32, #tpu.memory_space<vmem>>, vector<1x4x1x16xf32>
    %250 = vector.shape_cast %249 : vector<1x4x1x16xf32> to vector<4x16xf32>
    %251 = vector.shape_cast %248 : vector<4x16xf32> to vector<1x4x1x16xf32>
    tpu.vector_store %arg9[%c0_254, %c0_255, %c9_256, %c0_257], %251 {strides = array<i32>} : memref<1x4x16x16xf32, #tpu.memory_space<vmem>>, vector<1x4x1x16xf32>,
    %252 = vector.extract_strided_slice %211 {offsets = [0, 1280], sizes = [4, 16], strides = [1, 1]} : vector<4x2048xf32> to vector<4x16xf32>
    %c0_258 = arith.constant 0 : index
    %c0_259 = arith.constant 0 : index
    %c10_260 = arith.constant 10 : index
    %c0_261 = arith.constant 0 : index
    %253 = vector.load %arg9[%c0_258, %c0_259, %c10_260, %c0_261] : memref<1x4x16x16xf32, #tpu.memory_space<vmem>>, vector<1x4x1x16xf32>
    %254 = vector.shape_cast %253 : vector<1x4x1x16xf32> to vector<4x16xf32>
    %255 = vector.shape_cast %252 : vector<4x16xf32> to vector<1x4x1x16xf32>
    tpu.vector_store %arg9[%c0_258, %c0_259, %c10_260, %c0_261], %255 {strides = array<i32>} : memref<1x4x16x16xf32, #tpu.memory_space<vmem>>, vector<1x4x1x16xf32>,
    %256 = vector.extract_strided_slice %211 {offsets = [0, 1408], sizes = [4, 16], strides = [1, 1]} : vector<4x2048xf32> to vector<4x16xf32>
    %c0_262 = arith.constant 0 : index
    %c0_263 = arith.constant 0 : index
    %c11_264 = arith.constant 11 : index
    %c0_265 = arith.constant 0 : index
    %257 = vector.load %arg9[%c0_262, %c0_263, %c11_264, %c0_265] : memref<1x4x16x16xf32, #tpu.memory_space<vmem>>, vector<1x4x1x16xf32>
    %258 = vector.shape_cast %257 : vector<1x4x1x16xf32> to vector<4x16xf32>
    %259 = vector.shape_cast %256 : vector<4x16xf32> to vector<1x4x1x16xf32>
    tpu.vector_store %arg9[%c0_262, %c0_263, %c11_264, %c0_265], %259 {strides = array<i32>} : memref<1x4x16x16xf32, #tpu.memory_space<vmem>>, vector<1x4x1x16xf32>,
    %260 = vector.extract_strided_slice %211 {offsets = [0, 1536], sizes = [4, 16], strides = [1, 1]} : vector<4x2048xf32> to vector<4x16xf32>
    %c0_266 = arith.constant 0 : index
    %c0_267 = arith.constant 0 : index
    %c12_268 = arith.constant 12 : index
    %c0_269 = arith.constant 0 : index
    %261 = vector.load %arg9[%c0_266, %c0_267, %c12_268, %c0_269] : memref<1x4x16x16xf32, #tpu.memory_space<vmem>>, vector<1x4x1x16xf32>
    %262 = vector.shape_cast %261 : vector<1x4x1x16xf32> to vector<4x16xf32>
    %263 = vector.shape_cast %260 : vector<4x16xf32> to vector<1x4x1x16xf32>
    tpu.vector_store %arg9[%c0_266, %c0_267, %c12_268, %c0_269], %263 {strides = array<i32>} : memref<1x4x16x16xf32, #tpu.memory_space<vmem>>, vector<1x4x1x16xf32>,
    %264 = vector.extract_strided_slice %211 {offsets = [0, 1664], sizes = [4, 16], strides = [1, 1]} : vector<4x2048xf32> to vector<4x16xf32>
    %c0_270 = arith.constant 0 : index
    %c0_271 = arith.constant 0 : index
    %c13_272 = arith.constant 13 : index
    %c0_273 = arith.constant 0 : index
    %265 = vector.load %arg9[%c0_270, %c0_271, %c13_272, %c0_273] : memref<1x4x16x16xf32, #tpu.memory_space<vmem>>, vector<1x4x1x16xf32>
    %266 = vector.shape_cast %265 : vector<1x4x1x16xf32> to vector<4x16xf32>
    %267 = vector.shape_cast %264 : vector<4x16xf32> to vector<1x4x1x16xf32>
    tpu.vector_store %arg9[%c0_270, %c0_271, %c13_272, %c0_273], %267 {strides = array<i32>} : memref<1x4x16x16xf32, #tpu.memory_space<vmem>>, vector<1x4x1x16xf32>,
    %268 = vector.extract_strided_slice %211 {offsets = [0, 1792], sizes = [4, 16], strides = [1, 1]} : vector<4x2048xf32> to vector<4x16xf32>
    %c0_274 = arith.constant 0 : index
    %c0_275 = arith.constant 0 : index
    %c14_276 = arith.constant 14 : index
    %c0_277 = arith.constant 0 : index
    %269 = vector.load %arg9[%c0_274, %c0_275, %c14_276, %c0_277] : memref<1x4x16x16xf32, #tpu.memory_space<vmem>>, vector<1x4x1x16xf32>
    %270 = vector.shape_cast %269 : vector<1x4x1x16xf32> to vector<4x16xf32>
    %271 = vector.shape_cast %268 : vector<4x16xf32> to vector<1x4x1x16xf32>
    tpu.vector_store %arg9[%c0_274, %c0_275, %c14_276, %c0_277], %271 {strides = array<i32>} : memref<1x4x16x16xf32, #tpu.memory_space<vmem>>, vector<1x4x1x16xf32>,
    %272 = vector.extract_strided_slice %211 {offsets = [0, 1920], sizes = [4, 16], strides = [1, 1]} : vector<4x2048xf32> to vector<4x16xf32>
    %c0_278 = arith.constant 0 : index
    %c0_279 = arith.constant 0 : index
    %c15_280 = arith.constant 15 : index
    %c0_281 = arith.constant 0 : index
    %273 = vector.load %arg9[%c0_278, %c0_279, %c15_280, %c0_281] : memref<1x4x16x16xf32, #tpu.memory_space<vmem>>, vector<1x4x1x16xf32>
    %274 = vector.shape_cast %273 : vector<1x4x1x16xf32> to vector<4x16xf32>
    %275 = vector.shape_cast %272 : vector<4x16xf32> to vector<1x4x1x16xf32>
    tpu.vector_store %arg9[%c0_278, %c0_279, %c15_280, %c0_281], %275 {strides = array<i32>} : memref<1x4x16x16xf32, #tpu.memory_space<vmem>>, vector<1x4x1x16xf32>,
    return
  }
  func.func @transform_0(%arg0: i32) -> (i32, i32, i32, i32) {
    %c0_i32 = arith.constant 0 : i32
    %c0_i32_0 = arith.constant 0 : i32
    %c0_i32_1 = arith.constant 0 : i32
    %c0_i32_2 = arith.constant 0 : i32
    return %arg0, %c0_i32, %c0_i32_0, %c0_i32_1 : i32, i32, i32, i32
  }
  func.func @transform_1(%arg0: i32) -> (i32, i32, i32) {
    %c0_i32 = arith.constant 0 : i32
    %c0_i32_0 = arith.constant 0 : i32
    %c0_i32_1 = arith.constant 0 : i32
    return %arg0, %c0_i32, %c0_i32_0 : i32, i32, i32
  }
  func.func @transform_2(%arg0: i32) -> (i32, i32) {
    %c0_i32 = arith.constant 0 : i32
    %c0_i32_0 = arith.constant 0 : i32
    %c0_i32_1 = arith.constant 0 : i32
    return %c0_i32, %c0_i32_0 : i32, i32
  }
  func.func @transform_3(%arg0: i32) -> (i32, i32) {
    %c0_i32 = arith.constant 0 : i32
    %c0_i32_0 = arith.constant 0 : i32
    %c0_i32_1 = arith.constant 0 : i32
    return %c0_i32, %c0_i32_0 : i32, i32
  }
  func.func @transform_4(%arg0: i32) -> (i32, i32, i32) {
    %c0_i32 = arith.constant 0 : i32
    %c0_i32_0 = arith.constant 0 : i32
    %c0_i32_1 = arith.constant 0 : i32
    %c0_i32_2 = arith.constant 0 : i32
    return %c0_i32, %c0_i32_0, %c0_i32_1 : i32, i32, i32
  }
  func.func @transform_5(%arg0: i32) -> (i32, i32) {
    %c0_i32 = arith.constant 0 : i32
    %c0_i32_0 = arith.constant 0 : i32
    %c0_i32_1 = arith.constant 0 : i32
    return %c0_i32, %c0_i32_0 : i32, i32
  }
  func.func @transform_6(%arg0: i32) -> (i32, i32, i32) {
    %c0_i32 = arith.constant 0 : i32
    %c0_i32_0 = arith.constant 0 : i32
    %c0_i32_1 = arith.constant 0 : i32
    %c0_i32_2 = arith.constant 0 : i32
    return %c0_i32, %c0_i32_0, %c0_i32_1 : i32, i32, i32
  }
  func.func @transform_7(%arg0: i32) -> (i32, i32) {
    %c0_i32 = arith.constant 0 : i32
    %c0_i32_0 = arith.constant 0 : i32
    %c0_i32_1 = arith.constant 0 : i32
    return %c0_i32, %c0_i32_0 : i32, i32
  }
  func.func @transform_8(%arg0: i32) -> (i32, i32, i32, i32) {
    %c0_i32 = arith.constant 0 : i32
    %c0_i32_0 = arith.constant 0 : i32
    %c0_i32_1 = arith.constant 0 : i32
    %c0_i32_2 = arith.constant 0 : i32
    return %arg0, %c0_i32, %c0_i32_0, %c0_i32_1 : i32, i32, i32, i32
  }
}

</mosaic_0001>

<bundles_post_ra>
// kernel: tpu_custom_call.1
= control target key start
LH: loop header
LB: loop body
LE: loop exit
PB: predicated region body
PF: predicated region fallthrough
CT: control target
= control target key end

     0   :  { %13 = vsyncpa [#allocation5], 0  ;;  %s15801_s0 = inlined_call_operand.vmem [shape: f32[2,2,16,16], index: 0, kind: input, shape index: {}]   ;;  %s15802_s1 = inlined_call_operand.vmem [shape: f32[2,4,64], index: 1, kind: input, shape index: {}]   ;;  %s15803_s2 = inlined_call_operand.hbm [shape: f32[64,128], index: 2, kind: input, shape index: {}]   ;;  %s15804_s3 = inlined_call_operand.vmem [shape: f32[1,2048], index: 3, kind: input, shape index: {}]   ;;  %s15805_s4 = inlined_call_operand.vmem [shape: f32[9,4,6], index: 4, kind: input, shape index: {}]   ;;  %s15806_s5 = inlined_call_operand.vmem [shape: f32[4,1], index: 5, kind: input, shape index: {}]   ;;  %s15807_s6 = inlined_call_operand.vmem [shape: f32[9,4,4], index: 6, kind: input, shape index: {}]   ;;  %s15808_s7 = inlined_call_operand.vmem [shape: f32[4,1], index: 7, kind: input, shape index: {}]   ;;  %s15809_s8 = inlined_call_operand.hbm [shape: f32[2,4,16,16], index: 8, kind: output, shape index: {}]  }
   0x1   :  { %14 = vsyncpa [#allocation6], 0 }
   0x2   :  { %16 = vsyncpa [#allocation6 + $0x1], 0  ;;  %s13304_s27 = smov 0   ;;  %s13306_s28 = smov 0  }
   0x3   :  { %s13308_s29 = smov 0   ;;  %s13310_s30 = smov 0  }
   0x4 LB: > { %s13325_s9 = sadd.s32 4294967295, %s13238_s30   ;;  %s12576_s10 = sadd.s32 4294967294, %s13238_s30   ;;  %s13238_s30 = sphi %s13310_s30, %s15937_s30   ;;  %s13234_s29 = sphi %s13308_s29, %s15936_s29   ;;  %s13230_s28 = sphi %s13306_s28, %s15935_s28   ;;  %s13226_s27 = sphi %s13304_s27, %s15934_s27  }
   0x5   : > { %s13329_s11 = sadd.s32 1, %s13238_s30   ;;  %s207_s12 = sadd.s32 1, %s13234_s29 }
   0x6   : > { %s204_s13 = ssub.s32 %s13238_s30, %s13329_s11  ;;  %p217_p0 = scmp.ne.s32.totalorder %s13234_s29, %s13230_s28 }
   0x7   : > { %p205_p1 = scmp.eq.s32.totalorder %s204_s13, 0  ;;  %p218_p2 = scmp.eq.s32.totalorder %s13325_s9, 1 }
   0x8   : > { %p223_p3 = scmp.ne.s32.totalorder %s13230_s28, %s13226_s27  ;;  %p224_p4 = scmp.eq.s32.totalorder %s12576_s10, 1 }
   0x9   : > { %s13340_s14 = scalar_select %p205_p1, %s13234_s29, %s207_s12  }
   0xa   : > { %p13342_p5 = por %p218_p2, %p217_p0  ;;  %p13346_p6 = por %p224_p4, %p223_p3 }
   0xb   : > { %p12577_p7 = scmp.ge.s32.totalorder %s13238_s30, 1  ;;  %p231_p8 = scmp.lt.s32.totalorder %s13238_s30, 3 }
   0xc   : > { %s15817_s16 = scalar_select %p13346_p6, 1, 0 }
   0xd   : > { %p13084_p9 = scmp.eq.s32.totalorder %s13325_s9, 0  ;;  %p13353_p10 = pnand %p12577_p7, %p231_p8 }
   0xe   : > { %s13240_s18 = smov [#allocation4]  }
   0xf   : > { %s243_s19 = sshll.u32 %s13240_s18, 4  ;;  %p13076_p11 = pneg %p13353_p10  ;;  %s244_s19 = int_to_ptr.vmem [resolvable:$true] %s243_s19 }
  0x10   : > { %s13159_s20 = scalar_lea.vmem %s244_s19, 1024  ;;  %p13167_p3 = scmp.lt.s32.totalorder %s244_s19, %s244_s19 }
  0x11   : > { %p13077_p12 = pnand %p13084_p9, %p13076_p11  ;;  %p13160_p0 = scmp.ne.s32.totalorder %s244_s19, %s13159_s20 }
  0x12   : > { %p13168_p4 = scmp.lt.s32.totalorder %s13159_s20, %s13159_s20 }
  0x13   : > { %p13150_p13 = pneg %p13077_p12 }
  0x14   : > { %p13169_p6 = por %p13168_p4, %p13167_p3 }
  0x15   : > { %p13162_p1 = pnand %p13160_p0, %p13150_p13 }
  0x17   : > { %p13163_p2 = pneg %p13162_p1 }
  0x19   : > { %p13170_p7 = pnand %p13169_p6, %p13163_p2 }
  0x1b   : > { %13173 = shalt.err (!%p13170_p7)
}
  0x1c   : > { %s13241_s21 = smov 128   ;;  %s13242_s22 = smov 8  }
  0x1d   : > { %13079 = dma.hbm_to_vmem [thread:$0]  (!%p13077_p12), %s15803_s2, 1024, %s244_s19, [#allocation5], %s13241_s21, %s13241_s21, %s13242_s22  }
  0x1e   : > { %289 = sbr.rel (%p13353_p10) target bundleno = 1370 (0x55a), region = 52 }
  0x23   : > { %13217 = dma.done.wait (%p13084_p9), [#allocation5], 1024  }
  0x24   : > { %13219 = vsyncadd (%p13084_p9), [#allocation5], 4294966272  ;;  %v15810_v0 = vmov 0.0   ;;  %vm13244_vm0 = vmmov 0   ;;  %p327_p6 = scmp.lt.s32.totalorder %s13325_s9, 1  ;;  %v493_v1 = vld [vmem:[#allocation4 + $0x38] sm:$0xff] }
  0x25   : > { %13051 = vmatprep.subr.mxu0 %v15810_v0  ;;  %336 = vst [vmem:[#allocation2] sm:$0x3f] %v15810_v0  ;;  %337 = vst [vmem:[#allocation2 + $0x88] sm:$0x3f] %v15810_v0  ;;  %13067 = vmatprep.mubr.msk.f32.mxu0 %vm13244_vm0, %v15810_v0  ;;  %v492_v2 = vld [vmem:[#allocation4 + $0x30] sm:$0xff]  ;;  %v491_v3 = vld [vmem:[#allocation4 + $0x28] sm:$0xff] }
  0x26   : > { %6209 = vst [vmem:[#allocation3] sm:$0xf] %v15810_v0  ;;  %6350 = vst [vmem:[#allocation3 + $0x44] sm:$0xf] %v15810_v0  ;;  %859 = vmatprep.mubr.f32.mxu1 %v15810_v0  ;;  %13052 = vmatpush3.msra.mxu0 %v493_v1  ;;  %s328_s25 = scalar_select %p327_p6, %s13325_s9, 1  ;;  %v490_v4 = vld [vmem:[#allocation4 + $0x20] sm:$0xff] }
  0x27   : > { %13053 = vmatprep.subr.mxu0 %v15810_v0  ;;  %v489_v5 = vld [vmem:[#allocation4 + $0x18] sm:$0xff]  ;;  %v488_v6 = vld [vmem:[#allocation4 + $0x10] sm:$0xff]  ;;  %v487_v7 = vld [vmem:[#allocation4 + $0x8] sm:$0xff]  ;;  %vm494_vm1 = vcmask 523264   ;;  %vm338_vm2 = vcmask 1045632   ;;  %vm345_vm3 = vcmask 1041409  }
  0x28   : > { %13054 = vmatpush3.msra.mxu0 %v492_v2  ;;  %s12585_s26 = sshll.u32 %s328_s25, 2  ;;  %v486_v8 = vld [vmem:[#allocation4] sm:$0xff]  ;;  %s13040_s17 = sshll.u32 %s328_s25, 5  ;;  %339 = vst.msk [vmem:[#allocation2 + $0x8] sm:$0x3f] %vm338_vm2, %v15810_v0  ;;  %vm348_vm4 = vcmask 123904  }
  0x29   : > { %13055 = vmatprep.subr.mxu0 %v15810_v0  ;;  %s335_s13 = scalar_lea.vmem %s15802_s1, %s12585_s26  ;;  %s13393_s20 = scalar_lea.vmem %s15801_s0, %s13040_s17  ;;  %350 = vst.msk [vmem:[#allocation2 + $0x10] sm:$0x3f] %vm338_vm2, %v15810_v0  ;;  %359 = vst.msk [vmem:[#allocation2 + $0x18] sm:$0x3f] %vm338_vm2, %v15810_v0  ;;  %vm571_vm5 = vcmask 128002   ;;  %vm746_vm6 = vcmask 1045504  }
  0x2a   : > { %13056 = vmatpush3.msra.mxu0 %v491_v3  ;;  %v485_v9 = vld [vmem:[%s335_s13] sm:$0xf]  ;;  %v341_v10 = vld [vmem:[%s13393_s20 + $0x10] sm:$0x1]  ;;  %v352_v12 = vld [vmem:[%s13393_s20 + $0x11] sm:$0x1] }
  0x2b   : > { %13057 = vmatprep.subr.mxu0 %v15810_v0  ;;  %v344_v11 = vrot.slane %v341_v10, 7  ;;  %v340_v13 = vld [vmem:[%s13393_s20] sm:$0x1]  ;;  %v355_v14 = vrot.slane %v352_v12, 7  ;;  %368 = vst.msk [vmem:[#allocation2 + $0x20] sm:$0x3f] %vm338_vm2, %v15810_v0 }
  0x2c   : > { %13058 = vmatpush3.msra.mxu0 %v490_v4  ;;  %377 = vst.msk [vmem:[#allocation2 + $0x28] sm:$0x3f] %vm338_vm2, %v15810_v0  ;;  %386 = vst.msk [vmem:[#allocation2 + $0x30] sm:$0x3f] %vm338_vm2, %v15810_v0  ;;  %v351_v16 = vld [vmem:[%s13393_s20 + $0x1] sm:$0x1] }
  0x2d   : > { %13059 = vmatprep.subr.mxu0 %v15810_v0  ;;  %v346_v15 = vsel %vm345_vm3, %v344_v11, %v340_v13  ;;  %395 = vst.msk [vmem:[#allocation2 + $0x38] sm:$0x3f] %vm338_vm2, %v15810_v0  ;;  %404 = vst.msk [vmem:[#allocation2 + $0x40] sm:$0x3f] %vm338_vm2, %v15810_v0  ;;  %v356_v17 = vsel %vm345_vm3, %v355_v14, %v351_v16  ;;  %v397_v18 = vld [vmem:[%s13393_s20 + $0x16] sm:$0x1] }
  0x2e   : > { %13060 = vmatpush3.msra.mxu0 %v489_v5  ;;  %413 = vst.msk [vmem:[#allocation2 + $0x48] sm:$0x3f] %vm338_vm2, %v15810_v0  ;;  %422 = vst.msk [vmem:[#allocation2 + $0x50] sm:$0x3f] %vm338_vm2, %v15810_v0  ;;  %v406_v19 = vld [vmem:[%s13393_s20 + $0x17] sm:$0x1] }
  0x2f   : > { %13061 = vmatprep.subr.mxu0 %v15810_v0  ;;  %431 = vst.msk [vmem:[#allocation2 + $0x58] sm:$0x3f] %vm338_vm2, %v15810_v0  ;;  %440 = vst.msk [vmem:[#allocation2 + $0x60] sm:$0x3f] %vm338_vm2, %v15810_v0  ;;  %v361_v20 = vld [vmem:[%s13393_s20 + $0x12] sm:$0x1] }
  0x30   : > { %13062 = vmatpush3.msra.mxu0 %v488_v6  ;;  %449 = vst.msk [vmem:[#allocation2 + $0x68] sm:$0x3f] %vm338_vm2, %v15810_v0  ;;  %458 = vst.msk [vmem:[#allocation2 + $0x70] sm:$0x3f] %vm338_vm2, %v15810_v0  ;;  %v400_v21 = vrot.slane %v397_v18, 7  ;;  %v409_v22 = vrot.slane %v406_v19, 7 }
  0x31   : > { %13063 = vmatprep.subr.mxu0 %v15810_v0  ;;  %467 = vst.msk [vmem:[#allocation2 + $0x78] sm:$0x3f] %vm338_vm2, %v15810_v0  ;;  %476 = vst.msk [vmem:[#allocation2 + $0x80] sm:$0x3f] %vm338_vm2, %v15810_v0  ;;  %v364_v23 = vrot.slane %v361_v20, 7  ;;  %s13245_s21 = smov 80  }
  0x32   : > { %13064 = vmatpush3.msra.mxu0 %v487_v7  ;;  %349 = vst.msk [vmem:[#allocation2 + $0x8] sm:$0x3] %vm348_vm4, %v346_v15  ;;  %358 = vst.msk [vmem:[#allocation2 + $0x10] sm:$0x3] %vm348_vm4, %v356_v17  ;;  %v370_v24 = vld [vmem:[%s13393_s20 + $0x13] sm:$0x1] }
  0x33   : > { %13065 = vmatprep.subr.mxu0 %v15810_v0  ;;  %v396_v25 = vld [vmem:[%s13393_s20 + $0x6] sm:$0x1]  ;;  %v405_v26 = vld [vmem:[%s13393_s20 + $0x7] sm:$0x1]  ;;  %v360_v27 = vld [vmem:[%s13393_s20 + $0x2] sm:$0x1] }
  0x34   : > { %13066 = vmatpush3.msra.mxu0 %v486_v8  ;;  %v401_v28 = vsel %vm345_vm3, %v400_v21, %v396_v25  ;;  %v410_v29 = vsel %vm345_vm3, %v409_v22, %v405_v26  ;;  %v365_v30 = vsel %vm345_vm3, %v364_v23, %v360_v27  ;;  %v369_v31 = vld [vmem:[%s13393_s20 + $0x3] sm:$0x1]  ;;  %v373_v32 = vrot.slane %v370_v24, 7  ;;  %v415_v33 = vld [vmem:[%s13393_s20 + $0x18] sm:$0x1]  ;;  %s13246_s22 = smov 112  }
  0x35   : > { %13068 = vmatmul.mubr.msk.f32.vlgmr.msra.gmra.mxu0 %vm494_vm1, %v485_v9  ;;  %403 = vst.msk [vmem:[#allocation2 + $0x38] sm:$0x3] %vm348_vm4, %v401_v28  ;;  %412 = vst.msk [vmem:[#allocation2 + $0x40] sm:$0x3] %vm348_vm4, %v410_v29  ;;  %v424_v34 = vld [vmem:[%s13393_s20 + $0x19] sm:$0x1] }
  0x36   : > { %1214 = vmatprep.mubr.f32.mxu0 %v15810_v0  ;;  %367 = vst.msk [vmem:[#allocation2 + $0x18] sm:$0x3] %vm348_vm4, %v365_v30  ;;  %v379_v35 = vld [vmem:[%s13393_s20 + $0x14] sm:$0x1]  ;;  %v374_v36 = vsel %vm345_vm3, %v373_v32, %v369_v31  ;;  %v418_v37 = vrot.slane %v415_v33, 7  ;;  %v427_v38 = vrot.slane %v424_v34, 7  ;;  %v15812_v33 = vlaneseq }
  0x37   : > { %v382_v39 = vrot.slane %v379_v35, 7  ;;  %v388_v40 = vld [vmem:[%s13393_s20 + $0x15] sm:$0x1]  ;;  %376 = vst.msk [vmem:[#allocation2 + $0x20] sm:$0x3] %vm348_vm4, %v374_v36  ;;  %s13247_s23 = smov 64  }
  0x38   : > { %v414_v41 = vld [vmem:[%s13393_s20 + $0x8] sm:$0x1]  ;;  %v423_v42 = vld [vmem:[%s13393_s20 + $0x9] sm:$0x1]  ;;  %v378_v43 = vld [vmem:[%s13393_s20 + $0x4] sm:$0x1] }
  0x39   : > { %v419_v44 = vsel %vm345_vm3, %v418_v37, %v414_v41  ;;  %v428_v45 = vsel %vm345_vm3, %v427_v38, %v423_v42  ;;  %v383_v46 = vsel %vm345_vm3, %v382_v39, %v378_v43  ;;  %v387_v47 = vld [vmem:[%s13393_s20 + $0x5] sm:$0x1]  ;;  %v391_v48 = vrot.slane %v388_v40, 7  ;;  %v451_v49 = vld [vmem:[%s13393_s20 + $0x1c] sm:$0x1]  ;;  %s13248_s24 = smov 96  }
  0x3a   : > { %421 = vst.msk [vmem:[#allocation2 + $0x48] sm:$0x3] %vm348_vm4, %v419_v44  ;;  %430 = vst.msk [vmem:[#allocation2 + $0x50] sm:$0x3] %vm348_vm4, %v428_v45  ;;  %v460_v50 = vld [vmem:[%s13393_s20 + $0x1d] sm:$0x1] }
  0x3b   : > { %385 = vst.msk [vmem:[#allocation2 + $0x28] sm:$0x3] %vm348_vm4, %v383_v46  ;;  %v392_v51 = vsel %vm345_vm3, %v391_v48, %v387_v47  ;;  %v454_v52 = vrot.slane %v451_v49, 7  ;;  %v463_v53 = vrot.slane %v460_v50, 7  ;;  %v433_v54 = vld [vmem:[%s13393_s20 + $0x1a] sm:$0x1] }
  0x3c   : > { %v442_v55 = vld [vmem:[%s13393_s20 + $0x1b] sm:$0x1]  ;;  %394 = vst.msk [vmem:[#allocation2 + $0x30] sm:$0x3] %vm348_vm4, %v392_v51  ;;  %v450_v56 = vld [vmem:[%s13393_s20 + $0xc] sm:$0x1] }
  0x3d   : > { %v459_v57 = vld [vmem:[%s13393_s20 + $0xd] sm:$0x1]  ;;  %v432_v58 = vld [vmem:[%s13393_s20 + $0xa] sm:$0x1]  ;;  %v455_v59 = vsel %vm345_vm3, %v454_v52, %v450_v56  ;;  %v436_v61 = vrot.slane %v433_v54, 7  ;;  %v445_v63 = vrot.slane %v442_v55, 7 }
  0x3e   : > { %v464_v60 = vsel %vm345_vm3, %v463_v53, %v459_v57  ;;  %v441_v62 = vld [vmem:[%s13393_s20 + $0xb] sm:$0x1]  ;;  %457 = vst.msk [vmem:[#allocation2 + $0x68] sm:$0x3] %vm348_vm4, %v455_v59  ;;  %v469_v1 = vld [vmem:[%s13393_s20 + $0x1e] sm:$0x1] }
  0x3f   : > { %466 = vst.msk [vmem:[#allocation2 + $0x70] sm:$0x3] %vm348_vm4, %v464_v60  ;;  %v478_v2 = vld [vmem:[%s13393_s20 + $0x1f] sm:$0x1]  ;;  %v437_v4 = vsel %vm345_vm3, %v436_v61, %v432_v58  ;;  %v446_v5 = vsel %vm345_vm3, %v445_v63, %v441_v62  ;;  %v472_v6 = vrot.slane %v469_v1, 7  ;;  %s13249_s25 = smov 32  }
  0x40   : > { %v481_v7 = vrot.slane %v478_v2, 7  ;;  %439 = vst.msk [vmem:[#allocation2 + $0x58] sm:$0x3] %vm348_vm4, %v437_v4  ;;  %448 = vst.msk [vmem:[#allocation2 + $0x60] sm:$0x3] %vm348_vm4, %v446_v5  ;;  %s13250_s26 = smov 48  }
  0x41   : > { %v468_v9 = vld [vmem:[%s13393_s20 + $0xe] sm:$0x1]  ;;  %v477_v10 = vld [vmem:[%s13393_s20 + $0xf] sm:$0x1]  ;;  %v13498_v15 = vld [vmem:[%s15805_s4 + $0x4] sm:$0xf] }
  0x42   : > { %v473_v12 = vsel %vm345_vm3, %v472_v6, %v468_v9  ;;  %v482_v13 = vsel %vm345_vm3, %v481_v7, %v477_v10  ;;  %vm742_vm7 = vcmask 48128   ;;  %v13502_v16 = vld [vmem:[#allocation2 + $0x88] sm:$0x3f]  ;;  %v609_v17 = vld [vmem:[#allocation2] sm:$0x3f]  ;;  %s13251_s13 = smov 16  }
  0x43   : > { %475 = vst.msk [vmem:[#allocation2 + $0x78] sm:$0x3] %vm348_vm4, %v473_v12  ;;  %484 = vst.msk [vmem:[#allocation2 + $0x80] sm:$0x3] %vm348_vm4, %v482_v13  ;;  %s13252_s17 = smov 1   ;;  %s13253_s18 = smov 127  }
  0x44   : > { %v13584_v37 = vand.u32 127, %v15812_v33  ;;  %v13650_v47 = vld [vmem:[%s15805_s4] sm:$0xf]  ;;  %vm6502_vm10 = vcmask 1043456   ;;  %vm6498_vm11 = vcmask 31744   ;;  %vm11976_vm12 = vcmask 122880  }
  0x45   : > { %s13041_s10 = sshll.u32 %s13325_s9, 10 }
  0x46   : > { %15819 = vst [vmem:[#allocation10_spill] sm:$0xff] %v13584_v37  ;;  %vm720_vm8 = vcmp.lt.s32.totalorder %v13584_v37, 1  ;;  %vm665_vm9 = vcmp.lt.s32.totalorder %v13584_v37, 127  ;;  %s15745_s19 = scalar_lea.hbm %s15809_s8, %s13041_s10 }
  0xf5   : > { %v564_v3 = vpop.f32.mrf.mxu0 }
  0xf6   : > { %v569_v8 = vrot.slane %v564_v3, 6 }
  0xf7   : > { %v13069_v11 = vpop.f32.mrf.mxu0 }
  0xf8   : > { %584 = vrot.lane.b32.xlu1 %v569_v8, %s13245_s21  ;;  %574 = vrot.lane.b32.xlu0 %v569_v8, %s13246_s22  ;;  %572 = vst.msk [vmem:[#allocation2 + $0x8] sm:$0x3c] %vm571_vm5, %v569_v8  ;;  %573 = vst.msk [vmem:[#allocation2 + $0x10] sm:$0x3c] %vm571_vm5, %v569_v8 }
  0xfc   : > { %589 = vrot.lane.b32.xlu1 %v569_v8, %s13247_s23  ;;  %579 = vrot.lane.b32.xlu0 %v569_v8, %s13248_s24  ;;  %s324_s24 = sand.u32 1, %s13230_s28  }
  0xfd   : > { %s15761_s20 = scalar_lea.sflag [#allocation6], %s324_s24 }
  0xff   : > { %v13493_v14 = vld [vmem:[#allocation2 + $0x8] sm:$0x3f]  ;;  %v13510_v18 = vld [vmem:[#allocation2 + $0x10] sm:$0x3f] }
 0x100   : > { %599 = vrot.lane.b32.xlu1 %v569_v8, %s13249_s25  ;;  %594 = vrot.lane.b32.xlu0 %v569_v8, %s13250_s26  ;;  %s12582_s25 = sshll.u32 %s324_s24, 6 }
 0x101   : > { %12588 = vmatprep.subr.msk.mxu1 %vm746_vm6, %v13493_v14  ;;  %s15561_s26 = scalar_lea.vmem [#allocation7], %s12582_s25 }
 0x102   : > { %12589 = vmatpush1.msk.msra.mxu1 %vm746_vm6, %v609_v17  ;;  %s12490_s12 = sshll.u32 %s15561_s26, 4  ;;  %s15747_s12 = int_to_ptr.vmem [resolvable:$true] %s12490_s12 }
 0x103   : > { %12590 = vmatmul.mubr.msk.f32.vlgmr.msra.gmra.mxu1 %vm742_vm7, %v13498_v15 }
 0x104   : > { %604 = vrot.lane.b32.xlu0 %v569_v8, %s13251_s13  ;;  %718 = vrot.lane.b32.xlu1 %v13502_v16, %s13252_s17 }
 0x105   : > { %930 = vmatprep.mubr.f32.mxu1 %v15810_v0 }
 0x108   : > { %688 = vrot.lane.b32.xlu1 %v13510_v18, %s13252_s17  ;;  %684 = vrot.lane.b32.xlu0 %v609_v17, %s13252_s17 }
 0x10c   : > { %686 = vrot.lane.b32.xlu1 %v13493_v14, %s13252_s17  ;;  %627 = vrot.lane.b32.xlu0 %v609_v17, %s13253_s18 }
 0x110   : > { %629 = vrot.lane.b32.xlu1 %v13493_v14, %s13253_s18  ;;  %631 = vrot.lane.b32.xlu0 %v13510_v18, %s13253_s18 }
 0x16a   : > { %v585_v19 = vpop.permute.xlu1 %584  ;;  %v575_v20 = vpop.permute.xlu0 %574 }
 0x16b   : > { %587 = vst.msk [vmem:[#allocation2 + $0x38] sm:$0x3c] %vm571_vm5, %v585_v19  ;;  %588 = vst.msk [vmem:[#allocation2 + $0x40] sm:$0x3c] %vm571_vm5, %v585_v19 }
 0x16c   : > { %577 = vst.msk [vmem:[#allocation2 + $0x18] sm:$0x3c] %vm571_vm5, %v575_v20  ;;  %578 = vst.msk [vmem:[#allocation2 + $0x20] sm:$0x3c] %vm571_vm5, %v575_v20  ;;  %v13809_v20 = vld [vmem:[%s15805_s4 + $0x8] sm:$0xf] }
 0x16e   : > { %v590_v21 = vpop.permute.xlu1 %589  ;;  %v580_v22 = vpop.permute.xlu0 %579 }
 0x16f   : > { %592 = vst.msk [vmem:[#allocation2 + $0x48] sm:$0x3c] %vm571_vm5, %v590_v21  ;;  %593 = vst.msk [vmem:[#allocation2 + $0x50] sm:$0x3c] %vm571_vm5, %v590_v21 }
 0x170   : > { %582 = vst.msk [vmem:[#allocation2 + $0x28] sm:$0x3c] %vm571_vm5, %v580_v22  ;;  %583 = vst.msk [vmem:[#allocation2 + $0x30] sm:$0x3c] %vm571_vm5, %v580_v22 }
 0x172   : > { %v600_v23 = vpop.permute.xlu1 %599  ;;  %v595_v24 = vpop.permute.xlu0 %594  ;;  %v13530_v25 = vld [vmem:[#allocation2 + $0x38] sm:$0x3f]  ;;  %v13597_v38 = vld [vmem:[#allocation2 + $0x40] sm:$0x3f] }
 0x173   : > { %v13532_v26 = vld [vmem:[#allocation2 + $0x18] sm:$0x3f]  ;;  %602 = vst.msk [vmem:[#allocation2 + $0x68] sm:$0x3c] %vm571_vm5, %v600_v23  ;;  %603 = vst.msk [vmem:[#allocation2 + $0x70] sm:$0x3c] %vm571_vm5, %v600_v23  ;;  %698 = vrot.lane.b32.xlu1 %v13530_v25, %s13252_s17 }
 0x174   : > { %597 = vst.msk [vmem:[#allocation2 + $0x58] sm:$0x3c] %vm571_vm5, %v595_v24  ;;  %598 = vst.msk [vmem:[#allocation2 + $0x60] sm:$0x3c] %vm571_vm5, %v595_v24  ;;  %690 = vrot.lane.b32.xlu0 %v13532_v26, %s13252_s17  ;;  %12591 = vmatprep.subr.msk.mxu1 %vm746_vm6, %v13532_v26  ;;  %v13564_v32 = vld [vmem:[#allocation2 + $0x20] sm:$0x3f] }
 0x175   : > { %12592 = vmatpush1.msk.msra.mxu1 %vm746_vm6, %v13510_v18  ;;  %v13254_v24 = vmov 0  }
 0x176   : > { %12593 = vmatmul.mubr.msk.f32.vlgmr.msra.gmra.mxu1 %vm742_vm7, %v13498_v15  ;;  %v605_v27 = vpop.permute.xlu0 %604  ;;  %v13548_v28 = vpop.permute.xlu1 %718  ;;  %v13550_v29 = vld [vmem:[#allocation2 + $0x50] sm:$0x3f]  ;;  %v13581_v36 = vld [vmem:[#allocation2 + $0x48] sm:$0x3f]  ;;  %13137 = vset.pattern.permute.xlu1 %v13254_v24 }
 0x177   : > { %v13552_v30 = vld [vmem:[#allocation2 + $0x30] sm:$0x3f]  ;;  %v13554_v31 = vld [vmem:[#allocation2 + $0x28] sm:$0x3f]  ;;  %607 = vst.msk [vmem:[#allocation2 + $0x78] sm:$0x3c] %vm571_vm5, %v605_v27  ;;  %704 = vrot.lane.b32.xlu1 %v13550_v29, %s13252_s17  ;;  %1001 = vmatprep.mubr.f32.mxu1 %v15810_v0 }
 0x178   : > { %608 = vst.msk [vmem:[#allocation2 + $0x80] sm:$0x3c] %vm571_vm5, %v605_v27  ;;  %696 = vrot.lane.b32.xlu0 %v13552_v30, %s13252_s17  ;;  %12594 = vmatprep.subr.msk.mxu1 %vm746_vm6, %v13554_v31 }
 0x179   : > { %12595 = vmatpush1.msk.msra.mxu1 %vm746_vm6, %v13564_v32  ;;  %13138 = vset.pattern.permute.xlu0 %v13254_v24  ;;  %v12661_v24 = vld [vmem:[%s15805_s4 + $0xc] sm:$0xf] }
 0x17a   : > { %12596 = vmatmul.mubr.msk.f32.vlgmr.msra.gmra.mxu1 %vm742_vm7, %v13498_v15  ;;  %12597 = vmatprep.subr.msk.mxu1 %vm746_vm6, %v13530_v25  ;;  %v13573_v34 = vpop.permute.xlu1 %688  ;;  %v13603_v40 = vld [vmem:[#allocation2 + $0x68] sm:$0x3f]  ;;  %v13607_v41 = vld [vmem:[#allocation2 + $0x70] sm:$0x3f]  ;;  %v685_v43 = vpop.permute.xlu0 %684 }
 0x17b   : > { %v13575_v35 = vld [vmem:[#allocation2 + $0x58] sm:$0x3f]  ;;  %12598 = vmatpush1.msk.msra.mxu1 %vm746_vm6, %v13552_v30  ;;  %702 = vrot.lane.b32.xlu1 %v13581_v36, %s13252_s17  ;;  %v13621_v44 = vld [vmem:[#allocation2 + $0x60] sm:$0x3f]  ;;  %v738_v46 = vsel %vm720_vm8, %v13548_v28, %v685_v43 }
 0x17c   : > { %12603 = vmatprep.subr.msk.mxu0 %vm746_vm6, %v13575_v35  ;;  %694 = vrot.lane.b32.xlu0 %v13554_v31, %s13252_s17 }
 0x17d   : > { %12600 = vmatprep.subr.msk.mxu1 %vm746_vm6, %v13581_v36  ;;  %1072 = vmatprep.mubr.f32.mxu1 %v15810_v0 }
 0x17e   : > { %12604 = vmatpush1.msk.msra.mxu0 %vm746_vm6, %v13550_v29  ;;  %12599 = vmatmul.mubr.msk.f32.vlgmr.msra.gmra.mxu1 %vm742_vm7, %v13498_v15  ;;  %v13599_v39 = vld [vmem:[#allocation2 + $0x78] sm:$0x3f]  ;;  %v687_v42 = vpop.permute.xlu1 %686  ;;  %v13697_v49 = vpop.permute.xlu0 %627 }
 0x17f   : > { %12601 = vmatpush1.msk.msra.mxu1 %vm746_vm6, %v13597_v38  ;;  %12609 = vmatprep.subr.msk.mxu0 %vm746_vm6, %v13599_v39  ;;  %v13625_v45 = vsel %vm720_vm8, %v685_v43, %v687_v42  ;;  %v13683_v48 = vld [vmem:[#allocation2 + $0x80] sm:$0x3f]  ;;  %v13711_v55 = vsel %vm720_vm8, %v687_v42, %v13573_v34 }
 0x180   : > { %12606 = vmatprep.subr.msk.mxu1 %vm746_vm6, %v13603_v40  ;;  %712 = vrot.lane.b32.xlu1 %v13607_v41, %s13252_s17 }
 0x181   : > { %706 = vrot.lane.b32.xlu0 %v13575_v35, %s13252_s17  ;;  %1143 = vmatprep.mubr.f32.mxu1 %v15810_v0 }
 0x182   : > { %12605 = vmatmul.mubr.msk.f32.vlgmr.msra.gmra.mxu0 %vm742_vm7, %v13498_v15  ;;  %12602 = vmatmul.mubr.msk.f32.vlgmr.msra.gmra.mxu1 %vm742_vm7, %v13498_v15  ;;  %v13699_v50 = vpop.permute.xlu1 %629  ;;  %v13701_v51 = vpop.permute.xlu0 %631 }
 0x183   : > { %12610 = vmatpush1.msk.msra.mxu0 %vm746_vm6, %v13607_v41  ;;  %12607 = vmatpush1.msk.msra.mxu1 %vm746_vm6, %v13621_v44 }
 0x184   : > { %12612 = vmatprep.subr.msk.mxu1 %vm746_vm6, %v13625_v45  ;;  %692 = vrot.lane.b32.xlu1 %v13564_v32, %s13252_s17 }
 0x185   : > { %714 = vrot.lane.b32.xlu0 %v13599_v39, %s13252_s17  ;;  %1285 = vmatprep.mubr.f32.mxu1 %v15810_v0 }
 0x186   : > { %12608 = vmatmul.mubr.msk.f32.vlgmr.msra.gmra.mxu1 %vm742_vm7, %v13498_v15  ;;  %1356 = vmatprep.mubr.f32.mxu0 %v15810_v0 }
 0x187   : > { %12613 = vmatpush1.msk.msra.mxu1 %vm746_vm6, %v738_v46  ;;  %12611 = vmatmul.mubr.msk.f32.vlgmr.msra.gmra.mxu0 %vm742_vm7, %v13498_v15 }
 0x188   : > { %635 = vrot.lane.b32.xlu1 %v13564_v32, %s13253_s18  ;;  %1478 = vmatprep.mubr.f32.mxu1 %v15810_v0 }
 0x189   : > { %710 = vrot.lane.b32.xlu0 %v13603_v40, %s13252_s17  ;;  %1549 = vmatprep.mubr.f32.mxu0 %v15810_v0 }
 0x18a   : > { %12614 = vmatmul.mubr.msk.f32.vlgmr.msra.gmra.mxu1 %vm742_vm7, %v13650_v47 }
 0x18b   : > { %1620 = vmatprep.mubr.f32.mxu1 %v15810_v0 }
 0x18c   : > { %700 = vrot.lane.b32.xlu1 %v13597_v38, %s13252_s17 }
 0x18d   : > { %633 = vrot.lane.b32.xlu0 %v13532_v26, %s13253_s18 }
 0x190   : > { %643 = vrot.lane.b32.xlu1 %v13597_v38, %s13253_s18 }
 0x191   : > { %641 = vrot.lane.b32.xlu0 %v13530_v25, %s13253_s18 }
 0x194   : > { %708 = vrot.lane.b32.xlu1 %v13621_v44, %s13252_s17 }
 0x195   : > { %639 = vrot.lane.b32.xlu0 %v13552_v30, %s13253_s18 }
 0x198   : > { %651 = vrot.lane.b32.xlu1 %v13621_v44, %s13253_s18 }
 0x199   : > { %649 = vrot.lane.b32.xlu0 %v13575_v35, %s13253_s18 }
 0x19c   : > { %657 = vrot.lane.b32.xlu1 %v13599_v39, %s13253_s18 }
 0x19d   : > { %647 = vrot.lane.b32.xlu0 %v13550_v29, %s13253_s18 }
 0x1a0   : > { %655 = vrot.lane.b32.xlu1 %v13607_v41, %s13253_s18 }
 0x1a1   : > { %659 = vrot.lane.b32.xlu0 %v13683_v48, %s13253_s18 }
 0x1a4   : > { %645 = vrot.lane.b32.xlu1 %v13581_v36, %s13253_s18 }
 0x1a5   : > { %637 = vrot.lane.b32.xlu0 %v13554_v31, %s13253_s18 }
 0x1a8   : > { %716 = vrot.lane.b32.xlu1 %v13683_v48, %s13252_s17 }
 0x1a9   : > { %653 = vrot.lane.b32.xlu0 %v13603_v40, %s13253_s18 }
 0x1ad   : > { %661 = vrot.lane.b32.xlu0 %v13502_v16, %s13253_s18 }
 0x1e5   : > { %v699_v52 = vpop.permute.xlu1 %698 }
 0x1e6   : > { %v691_v53 = vpop.permute.xlu0 %690 }
 0x1e7   : > { %v13706_v54 = vsel %vm720_vm8, %v13573_v34, %v691_v53 }
 0x1e8   : > { %12615 = vmatprep.subr.msk.mxu0 %vm746_vm6, %v13706_v54 }
 0x1e9   : > { %12616 = vmatpush1.msk.msra.mxu0 %vm746_vm6, %v13711_v55  ;;  %v705_v56 = vpop.permute.xlu1 %704 }
 0x1ea   : > { %v697_v57 = vpop.permute.xlu0 %696  ;;  %12617 = vmatmul.mubr.msk.f32.vlgmr.msra.gmra.mxu0 %vm742_vm7, %v13650_v47 }
 0x1eb   : > { %v13721_v58 = vsel %vm720_vm8, %v697_v57, %v699_v52  ;;  %1691 = vmatprep.mubr.f32.mxu0 %v15810_v0 }
 0x1ec   : > { %12621 = vmatprep.subr.msk.mxu0 %vm746_vm6, %v13721_v58 }
 0x1ed   : > { %v703_v59 = vpop.permute.xlu1 %702 }
 0x1ee   : > { %v695_v60 = vpop.permute.xlu0 %694  ;;  %v13741_v2 = vsel %vm720_vm8, %v703_v59, %v705_v56 }
 0x1ef   : > { %v13728_v61 = vsel %vm720_vm8, %v695_v60, %v697_v57 }
 0x1f0   : > { %12622 = vmatpush1.msk.msra.mxu0 %vm746_vm6, %v13728_v61 }
 0x1f1   : > { %12623 = vmatmul.mubr.msk.f32.vlgmr.msra.gmra.mxu0 %vm742_vm7, %v13650_v47 }
 0x1f2   : > { %v713_v62 = vpop.permute.xlu1 %712  ;;  %1833 = vmatprep.mubr.f32.mxu0 %v15810_v0 }
 0x1f3   : > { %v707_v63 = vpop.permute.xlu0 %706 }
 0x1f4   : > { %v13737_v1 = vsel %vm720_vm8, %v705_v56, %v707_v63  ;;  %v682_v56 = vsel %vm665_vm9, %v13697_v49, %v13699_v50 }
 0x1f5   : > { %12627 = vmatprep.subr.msk.mxu0 %vm746_vm6, %v13737_v1 }
 0x1f6   : > { %12628 = vmatpush1.msk.msra.mxu0 %vm746_vm6, %v13741_v2  ;;  %v693_v3 = vpop.permute.xlu1 %692 }
 0x1f7   : > { %v13749_v4 = vsel %vm720_vm8, %v693_v3, %v695_v60  ;;  %v13753_v5 = vsel %vm720_vm8, %v691_v53, %v693_v3  ;;  %v13755_v6 = vpop.permute.xlu0 %714  ;;  %12629 = vmatmul.mubr.msk.f32.vlgmr.msra.gmra.mxu0 %vm742_vm7, %v13650_v47 }
 0x1f8   : > { %v13762_v7 = vsel %vm720_vm8, %v713_v62, %v13755_v6  ;;  %12618 = vmatprep.subr.msk.mxu1 %vm746_vm6, %v13749_v4  ;;  %1975 = vmatprep.mubr.f32.mxu0 %v15810_v0 }
 0x1f9   : > { %12633 = vmatprep.subr.msk.mxu0 %vm746_vm6, %v13762_v7  ;;  %12619 = vmatpush1.msk.msra.mxu1 %vm746_vm6, %v13753_v5 }
 0x1fa   : > { %v13771_v8 = vpop.permute.xlu1 %635  ;;  %12620 = vmatmul.mubr.msk.f32.vlgmr.msra.gmra.mxu1 %vm742_vm7, %v13650_v47 }
 0x1fb   : > { %v711_v9 = vpop.permute.xlu0 %710  ;;  %1762 = vmatprep.mubr.f32.mxu1 %v15810_v0 }
 0x1fc   : > { %v13778_v10 = vsel %vm720_vm8, %v711_v9, %v713_v62 }
 0x1fd   : > { %12634 = vmatpush1.msk.msra.mxu0 %vm746_vm6, %v13778_v10 }
 0x1fe   : > { %v701_v11 = vpop.permute.xlu1 %700  ;;  %12635 = vmatmul.mubr.msk.f32.vlgmr.msra.gmra.mxu0 %vm742_vm7, %v13650_v47 }
 0x1ff   : > { %v13787_v12 = vsel %vm720_vm8, %v701_v11, %v703_v59  ;;  %v13791_v13 = vsel %vm720_vm8, %v699_v52, %v701_v11  ;;  %v634_v15 = vpop.permute.xlu0 %633  ;;  %2170 = vmatprep.mubr.f32.mxu0 %v15810_v0  ;;  %v13851_v52 = vsel %vm665_vm9, %v13699_v50, %v13701_v51 }
 0x200   : > { %v13797_v17 = vsel %vm665_vm9, %v634_v15, %v13771_v8  ;;  %v13802_v19 = vsel %vm665_vm9, %v13701_v51, %v634_v15  ;;  %12624 = vmatprep.subr.msk.mxu1 %vm746_vm6, %v13787_v12 }
 0x201   : > { %12640 = vmatprep.subr.msk.mxu0 %vm746_vm6, %v13797_v17  ;;  %12625 = vmatpush1.msk.msra.mxu1 %vm746_vm6, %v13791_v13 }
 0x202   : > { %12641 = vmatpush1.msk.msra.mxu0 %vm746_vm6, %v13802_v19  ;;  %v644_v21 = vpop.permute.xlu1 %643  ;;  %12626 = vmatmul.mubr.msk.f32.vlgmr.msra.gmra.mxu1 %vm742_vm7, %v13650_v47 }
 0x203   : > { %12642 = vmatmul.mubr.msk.f32.vlgmr.msra.gmra.mxu0 %vm742_vm7, %v13809_v20  ;;  %v642_v22 = vpop.permute.xlu0 %641  ;;  %1904 = vmatprep.mubr.f32.mxu1 %v15810_v0 }
 0x204   : > { %v13824_v23 = vsel %vm665_vm9, %v642_v22, %v644_v21  ;;  %2312 = vmatprep.mubr.f32.mxu0 %v15810_v0 }
 0x205   : > { %12646 = vmatprep.subr.msk.mxu0 %vm746_vm6, %v13824_v23 }
 0x206   : > { %v709_v27 = vpop.permute.xlu1 %708 }
 0x207   : > { %v13831_v34 = vsel %vm720_vm8, %v709_v27, %v711_v9  ;;  %v13835_v42 = vsel %vm720_vm8, %v707_v63, %v709_v27  ;;  %v640_v43 = vpop.permute.xlu0 %639 }
 0x208   : > { %v13839_v46 = vsel %vm665_vm9, %v640_v43, %v642_v22  ;;  %12630 = vmatprep.subr.msk.mxu1 %vm746_vm6, %v13831_v34 }
 0x209   : > { %12647 = vmatpush1.msk.msra.mxu0 %vm746_vm6, %v13839_v46  ;;  %12631 = vmatpush1.msk.msra.mxu1 %vm746_vm6, %v13835_v42 }
 0x20a   : > { %12648 = vmatmul.mubr.msk.f32.vlgmr.msra.gmra.mxu0 %vm742_vm7, %v13809_v20  ;;  %v652_v53 = vpop.permute.xlu1 %651  ;;  %12632 = vmatmul.mubr.msk.f32.vlgmr.msra.gmra.mxu1 %vm742_vm7, %v13650_v47 }
 0x20b   : > { %v650_v57 = vpop.permute.xlu0 %649  ;;  %12637 = vmatprep.subr.msk.mxu1 %vm746_vm6, %v13851_v52  ;;  %2099 = vmatprep.mubr.f32.mxu1 %v15810_v0 }
 0x20c   : > { %v13866_v51 = vsel %vm665_vm9, %v650_v57, %v652_v53  ;;  %12638 = vmatpush1.msk.msra.mxu1 %vm746_vm6, %v682_v56  ;;  %2454 = vmatprep.mubr.f32.mxu0 %v15810_v0 }
 0x20d   : > { %12652 = vmatprep.subr.msk.mxu0 %vm746_vm6, %v13866_v51 }
 0x20e   : > { %v658_v47 = vpop.permute.xlu1 %657  ;;  %12639 = vmatmul.mubr.msk.f32.vlgmr.msra.gmra.mxu1 %vm742_vm7, %v13809_v20 }
 0x20f   : > { %v648_v50 = vpop.permute.xlu0 %647  ;;  %2241 = vmatprep.mubr.f32.mxu1 %v15810_v0 }
 0x210   : > { %v13877_v59 = vsel %vm665_vm9, %v648_v50, %v650_v57 }
 0x211   : > { %12653 = vmatpush1.msk.msra.mxu0 %vm746_vm6, %v13877_v59 }
 0x212   : > { %12654 = vmatmul.mubr.msk.f32.vlgmr.msra.gmra.mxu0 %vm742_vm7, %v13809_v20  ;;  %v656_v60 = vpop.permute.xlu1 %655 }
 0x213   : > { %v13885_v62 = vsel %vm665_vm9, %v656_v60, %v658_v47  ;;  %v13887_v63 = vpop.permute.xlu0 %659  ;;  %2596 = vmatprep.mubr.f32.mxu0 %v15810_v0 }
 0x214   : > { %v13893_v3 = vsel %vm665_vm9, %v658_v47, %v13887_v63 }
 0x215   : > { %12658 = vmatprep.subr.msk.mxu0 %vm746_vm6, %v13893_v3 }
 0x216   : > { %12659 = vmatpush1.msk.msra.mxu0 %vm746_vm6, %v13885_v62  ;;  %v646_v11 = vpop.permute.xlu1 %645 }
 0x217   : > { %12660 = vmatmul.mubr.msk.f32.vlgmr.msra.gmra.mxu0 %vm742_vm7, %v13809_v20  ;;  %12665 = vmatprep.subr.msk.mxu0 %vm746_vm6, %v13753_v5  ;;  %v638_v9 = vpop.permute.xlu0 %637 }
 0x218   : > { %v13905_v15 = vsel %vm665_vm9, %v638_v9, %v640_v43  ;;  %v13910_v22 = vsel %vm665_vm9, %v13771_v8, %v638_v9  ;;  %12666 = vmatpush1.msk.msra.mxu0 %vm746_vm6, %v13706_v54  ;;  %2762 = vmatprep.mubr.f32.mxu0 %v15810_v0  ;;  %v13926_v8 = vsel %vm665_vm9, %v646_v11, %v648_v50 }
 0x219   : > { %12643 = vmatprep.subr.msk.mxu1 %vm746_vm6, %v13905_v15  ;;  %12671 = vmatprep.subr.msk.mxu0 %vm746_vm6, %v13791_v13  ;;  %v13933_v43 = vsel %vm665_vm9, %v644_v21, %v646_v11 }
 0x21a   : > { %12644 = vmatpush1.msk.msra.mxu1 %vm746_vm6, %v13910_v22  ;;  %v13947_v57 = vpop.permute.xlu1 %716 }
 0x21b   : > { %12667 = vmatmul.mubr.msk.f32.vlgmr.msra.gmra.mxu0 %vm742_vm7, %v12661_v24  ;;  %v654_v27 = vpop.permute.xlu0 %653  ;;  %12645 = vmatmul.mubr.msk.f32.vlgmr.msra.gmra.mxu1 %vm742_vm7, %v13809_v20  ;;  %v13966_v47 = vsel %vm720_vm8, %v13755_v6, %v13947_v57 }
 0x21c   : > { %12672 = vmatpush1.msk.msra.mxu0 %vm746_vm6, %v13721_v58  ;;  %v13939_v56 = vsel %vm665_vm9, %v654_v27, %v656_v60  ;;  %12649 = vmatprep.subr.msk.mxu1 %vm746_vm6, %v13926_v8  ;;  %v13954_v21 = vsel %vm665_vm9, %v652_v53, %v654_v27 }
 0x21d   : > { %12650 = vmatpush1.msk.msra.mxu1 %vm746_vm6, %v13933_v43  ;;  %12677 = vmatprep.subr.msk.mxu0 %vm746_vm6, %v13835_v42 }
 0x21e   : > { %12655 = vmatprep.subr.msk.mxu1 %vm746_vm6, %v13939_v56  ;;  %2383 = vmatprep.mubr.f32.mxu1 %v15810_v0 }
 0x21f   : > { %2904 = vmatprep.mubr.f32.mxu0 %v15810_v0  ;;  %12651 = vmatmul.mubr.msk.f32.vlgmr.msra.gmra.mxu1 %vm742_vm7, %v13809_v20  ;;  %v14063_v6 = vpop.permute.xlu0 %661 }
 0x220   : > { %12673 = vmatmul.mubr.msk.f32.vlgmr.msra.gmra.mxu0 %vm742_vm7, %v12661_v24  ;;  %12656 = vmatpush1.msk.msra.mxu1 %vm746_vm6, %v13954_v21 }
 0x221   : > { %12678 = vmatpush1.msk.msra.mxu0 %vm746_vm6, %v13737_v1  ;;  %12662 = vmatprep.subr.msk.mxu1 %vm746_vm6, %v13711_v55 }
 0x222   : > { %12683 = vmatprep.subr.msk.mxu0 %vm746_vm6, %v13966_v47  ;;  %2525 = vmatprep.mubr.f32.mxu1 %v15810_v0 }
 0x223   : > { %3046 = vmatprep.mubr.f32.mxu0 %v15810_v0  ;;  %12657 = vmatmul.mubr.msk.f32.vlgmr.msra.gmra.mxu1 %vm742_vm7, %v13809_v20  ;;  %v14077_v20 = vsel %vm665_vm9, %v13887_v63, %v14063_v6 }
 0x224   : > { %12663 = vmatpush1.msk.msra.mxu1 %vm746_vm6, %v13625_v45  ;;  %12679 = vmatmul.mubr.msk.f32.vlgmr.msra.gmra.mxu0 %vm742_vm7, %v12661_v24  ;;  %v12686_v45 = vld [vmem:[%s15805_s4 + $0x10] sm:$0xf] }
 0x225   : > { %12684 = vmatpush1.msk.msra.mxu0 %vm746_vm6, %v13762_v7  ;;  %12668 = vmatprep.subr.msk.mxu1 %vm746_vm6, %v13728_v61 }
 0x226   : > { %12690 = vmatprep.subr.msk.mxu0 %vm746_vm6, %v13564_v32  ;;  %2691 = vmatprep.mubr.f32.mxu1 %v15810_v0 }
 0x227   : > { %3188 = vmatprep.mubr.f32.mxu0 %v15810_v0  ;;  %12664 = vmatmul.mubr.msk.f32.vlgmr.msra.gmra.mxu1 %vm742_vm7, %v12661_v24 }
 0x228   : > { %12669 = vmatpush1.msk.msra.mxu1 %vm746_vm6, %v13749_v4  ;;  %12685 = vmatmul.mubr.msk.f32.vlgmr.msra.gmra.mxu0 %vm742_vm7, %v12661_v24 }
 0x229   : > { %12691 = vmatpush1.msk.msra.mxu0 %vm746_vm6, %v13532_v26  ;;  %12674 = vmatprep.subr.msk.mxu1 %vm746_vm6, %v13741_v2 }
 0x22a   : > { %12696 = vmatprep.subr.msk.mxu0 %vm746_vm6, %v13597_v38  ;;  %2833 = vmatprep.mubr.f32.mxu1 %v15810_v0 }
 0x22b   : > { %3354 = vmatprep.mubr.f32.mxu0 %v15810_v0  ;;  %12670 = vmatmul.mubr.msk.f32.vlgmr.msra.gmra.mxu1 %vm742_vm7, %v12661_v24 }
 0x22c   : > { %12675 = vmatpush1.msk.msra.mxu1 %vm746_vm6, %v13787_v12  ;;  %12692 = vmatmul.mubr.msk.f32.vlgmr.msra.gmra.mxu0 %vm742_vm7, %v12686_v45 }
 0x22d   : > { %12697 = vmatpush1.msk.msra.mxu0 %vm746_vm6, %v13530_v25  ;;  %12680 = vmatprep.subr.msk.mxu1 %vm746_vm6, %v13778_v10 }
 0x22e   : > { %12702 = vmatprep.subr.msk.mxu0 %vm746_vm6, %v13621_v44  ;;  %2975 = vmatprep.mubr.f32.mxu1 %v15810_v0 }
 0x22f   : > { %3496 = vmatprep.mubr.f32.mxu0 %v15810_v0  ;;  %12676 = vmatmul.mubr.msk.f32.vlgmr.msra.gmra.mxu1 %vm742_vm7, %v12661_v24 }
 0x230   : > { %12681 = vmatpush1.msk.msra.mxu1 %vm746_vm6, %v13831_v34  ;;  %12698 = vmatmul.mubr.msk.f32.vlgmr.msra.gmra.mxu0 %vm742_vm7, %v12686_v45 }
 0x231   : > { %12703 = vmatpush1.msk.msra.mxu0 %vm746_vm6, %v13575_v35  ;;  %12687 = vmatprep.subr.msk.mxu1 %vm746_vm6, %v13510_v18 }
 0x232   : > { %12708 = vmatprep.subr.msk.mxu0 %vm746_vm6, %v13683_v48  ;;  %3117 = vmatprep.mubr.f32.mxu1 %v15810_v0 }
 0x233   : > { %3638 = vmatprep.mubr.f32.mxu0 %v15810_v0  ;;  %12682 = vmatmul.mubr.msk.f32.vlgmr.msra.gmra.mxu1 %vm742_vm7, %v12661_v24 }
 0x234   : > { %12688 = vmatpush1.msk.msra.mxu1 %vm746_vm6, %v13493_v14  ;;  %12704 = vmatmul.mubr.msk.f32.vlgmr.msra.gmra.mxu0 %vm742_vm7, %v12686_v45  ;;  %v12711_v14 = vld [vmem:[%s15805_s4 + $0x14] sm:$0xf] }
 0x235   : > { %12709 = vmatpush1.msk.msra.mxu0 %vm746_vm6, %v13599_v39  ;;  %12693 = vmatprep.subr.msk.mxu1 %vm746_vm6, %v13552_v30 }
 0x236   : > { %12715 = vmatprep.subr.msk.mxu0 %vm746_vm6, %v13910_v22  ;;  %3283 = vmatprep.mubr.f32.mxu1 %v15810_v0 }
 0x237   : > { %3780 = vmatprep.mubr.f32.mxu0 %v15810_v0  ;;  %12689 = vmatmul.mubr.msk.f32.vlgmr.msra.gmra.mxu1 %vm742_vm7, %v12686_v45 }
 0x238   : > { %12694 = vmatpush1.msk.msra.mxu1 %vm746_vm6, %v13554_v31  ;;  %12710 = vmatmul.mubr.msk.f32.vlgmr.msra.gmra.mxu0 %vm742_vm7, %v12686_v45 }
 0x239   : > { %12716 = vmatpush1.msk.msra.mxu0 %vm746_vm6, %v13797_v17  ;;  %12699 = vmatprep.subr.msk.mxu1 %vm746_vm6, %v13550_v29 }
 0x23a   : > { %12721 = vmatprep.subr.msk.mxu0 %vm746_vm6, %v13933_v43  ;;  %3425 = vmatprep.mubr.f32.mxu1 %v15810_v0 }
 0x23b   : > { %3946 = vmatprep.mubr.f32.mxu0 %v15810_v0  ;;  %12695 = vmatmul.mubr.msk.f32.vlgmr.msra.gmra.mxu1 %vm742_vm7, %v12686_v45 }
 0x23c   : > { %12700 = vmatpush1.msk.msra.mxu1 %vm746_vm6, %v13581_v36  ;;  %12717 = vmatmul.mubr.msk.f32.vlgmr.msra.gmra.mxu0 %vm742_vm7, %v12711_v14 }
 0x23d   : > { %12722 = vmatpush1.msk.msra.mxu0 %vm746_vm6, %v13824_v23  ;;  %12705 = vmatprep.subr.msk.mxu1 %vm746_vm6, %v13607_v41 }
 0x23e   : > { %12727 = vmatprep.subr.msk.mxu0 %vm746_vm6, %v13954_v21  ;;  %3567 = vmatprep.mubr.f32.mxu1 %v15810_v0 }
 0x23f   : > { %4088 = vmatprep.mubr.f32.mxu0 %v15810_v0  ;;  %12701 = vmatmul.mubr.msk.f32.vlgmr.msra.gmra.mxu1 %vm742_vm7, %v12686_v45 }
 0x240   : > { %12706 = vmatpush1.msk.msra.mxu1 %vm746_vm6, %v13603_v40  ;;  %12723 = vmatmul.mubr.msk.f32.vlgmr.msra.gmra.mxu0 %vm742_vm7, %v12711_v14 }
 0x241   : > { %12728 = vmatpush1.msk.msra.mxu0 %vm746_vm6, %v13866_v51  ;;  %12712 = vmatprep.subr.msk.mxu1 %vm746_vm6, %v13802_v19 }
 0x242   : > { %12733 = vmatprep.subr.msk.mxu0 %vm746_vm6, %v14077_v20  ;;  %3709 = vmatprep.mubr.f32.mxu1 %v15810_v0 }
 0x243   : > { %4230 = vmatprep.mubr.f32.mxu0 %v15810_v0  ;;  %12707 = vmatmul.mubr.msk.f32.vlgmr.msra.gmra.mxu1 %vm742_vm7, %v12686_v45 }
 0x244   : > { %12713 = vmatpush1.msk.msra.mxu1 %vm746_vm6, %v13851_v52  ;;  %12729 = vmatmul.mubr.msk.f32.vlgmr.msra.gmra.mxu0 %vm742_vm7, %v12711_v14 }
 0x245   : > { %12734 = vmatpush1.msk.msra.mxu0 %vm746_vm6, %v13893_v3  ;;  %12718 = vmatprep.subr.msk.mxu1 %vm746_vm6, %v13839_v46 }
 0x246   : > { %12740 = vmatprep.subr.msk.mxu0 %vm746_vm6, %v13749_v4  ;;  %3875 = vmatprep.mubr.f32.mxu1 %v15810_v0  ;;  %v12736_v4 = vld [vmem:[%s15805_s4 + $0x18] sm:$0xf] }
 0x247   : > { %4372 = vmatprep.mubr.f32.mxu0 %v15810_v0  ;;  %12714 = vmatmul.mubr.msk.f32.vlgmr.msra.gmra.mxu1 %vm742_vm7, %v12711_v14 }
 0x248   : > { %12719 = vmatpush1.msk.msra.mxu1 %vm746_vm6, %v13905_v15  ;;  %12735 = vmatmul.mubr.msk.f32.vlgmr.msra.gmra.mxu0 %vm742_vm7, %v12711_v14 }
 0x249   : > { %12741 = vmatpush1.msk.msra.mxu0 %vm746_vm6, %v13753_v5  ;;  %12724 = vmatprep.subr.msk.mxu1 %vm746_vm6, %v13877_v59  ;;  %v721_v5 = vsel %vm720_vm8, %v13947_v57, %v13548_v28  ;;  %v12761_v28 = vld [vmem:[%s15805_s4 + $0x1c] sm:$0xf] }
 0x24a   : > { %12746 = vmatprep.subr.msk.mxu0 %vm746_vm6, %v13787_v12  ;;  %4017 = vmatprep.mubr.f32.mxu1 %v15810_v0 }
 0x24b   : > { %4538 = vmatprep.mubr.f32.mxu0 %v15810_v0  ;;  %12720 = vmatmul.mubr.msk.f32.vlgmr.msra.gmra.mxu1 %vm742_vm7, %v12711_v14 }
 0x24c   : > { %12725 = vmatpush1.msk.msra.mxu1 %vm746_vm6, %v13926_v8  ;;  %12742 = vmatmul.mubr.msk.f32.vlgmr.msra.gmra.mxu0 %vm742_vm7, %v12736_v4 }
 0x24d   : > { %12747 = vmatpush1.msk.msra.mxu0 %vm746_vm6, %v13791_v13  ;;  %12730 = vmatprep.subr.msk.mxu1 %vm746_vm6, %v13885_v62 }
 0x24e   : > { %12752 = vmatprep.subr.msk.mxu0 %vm746_vm6, %v13831_v34  ;;  %4159 = vmatprep.mubr.f32.mxu1 %v15810_v0 }
 0x24f   : > { %4680 = vmatprep.mubr.f32.mxu0 %v15810_v0  ;;  %12726 = vmatmul.mubr.msk.f32.vlgmr.msra.gmra.mxu1 %vm742_vm7, %v12711_v14 }
 0x250   : > { %12731 = vmatpush1.msk.msra.mxu1 %vm746_vm6, %v13939_v56  ;;  %12748 = vmatmul.mubr.msk.f32.vlgmr.msra.gmra.mxu0 %vm742_vm7, %v12736_v4 }
 0x251   : > { %12753 = vmatpush1.msk.msra.mxu0 %vm746_vm6, %v13835_v42  ;;  %12737 = vmatprep.subr.msk.mxu1 %vm746_vm6, %v13706_v54 }
 0x252   : > { %12758 = vmatprep.subr.msk.mxu0 %vm746_vm6, %v721_v5  ;;  %4301 = vmatprep.mubr.f32.mxu1 %v15810_v0 }
 0x253   : > { %4822 = vmatprep.mubr.f32.mxu0 %v15810_v0  ;;  %12732 = vmatmul.mubr.msk.f32.vlgmr.msra.gmra.mxu1 %vm742_vm7, %v12711_v14 }
 0x254   : > { %12738 = vmatpush1.msk.msra.mxu1 %vm746_vm6, %v13711_v55  ;;  %12754 = vmatmul.mubr.msk.f32.vlgmr.msra.gmra.mxu0 %vm742_vm7, %v12736_v4 }
 0x255   : > { %12759 = vmatpush1.msk.msra.mxu0 %vm746_vm6, %v13966_v47  ;;  %12743 = vmatprep.subr.msk.mxu1 %vm746_vm6, %v13721_v58 }
 0x256   : > { %12765 = vmatprep.subr.msk.mxu0 %vm746_vm6, %v13554_v31  ;;  %4467 = vmatprep.mubr.f32.mxu1 %v15810_v0 }
 0x257   : > { %4964 = vmatprep.mubr.f32.mxu0 %v15810_v0  ;;  %12739 = vmatmul.mubr.msk.f32.vlgmr.msra.gmra.mxu1 %vm742_vm7, %v12736_v4 }
 0x258   : > { %12744 = vmatpush1.msk.msra.mxu1 %vm746_vm6, %v13728_v61  ;;  %12760 = vmatmul.mubr.msk.f32.vlgmr.msra.gmra.mxu0 %vm742_vm7, %v12736_v4 }
 0x259   : > { %12766 = vmatpush1.msk.msra.mxu0 %vm746_vm6, %v13564_v32  ;;  %12749 = vmatprep.subr.msk.mxu1 %vm746_vm6, %v13737_v1 }
 0x25a   : > { %12771 = vmatprep.subr.msk.mxu0 %vm746_vm6, %v13581_v36  ;;  %4609 = vmatprep.mubr.f32.mxu1 %v15810_v0 }
 0x25b   : > { %5130 = vmatprep.mubr.f32.mxu0 %v15810_v0  ;;  %12745 = vmatmul.mubr.msk.f32.vlgmr.msra.gmra.mxu1 %vm742_vm7, %v12736_v4 }
 0x25c   : > { %12750 = vmatpush1.msk.msra.mxu1 %vm746_vm6, %v13741_v2  ;;  %12767 = vmatmul.mubr.msk.f32.vlgmr.msra.gmra.mxu0 %vm742_vm7, %v12761_v28 }
 0x25d   : > { %12772 = vmatpush1.msk.msra.mxu0 %vm746_vm6, %v13597_v38  ;;  %12755 = vmatprep.subr.msk.mxu1 %vm746_vm6, %v13762_v7 }
 0x25e   : > { %12777 = vmatprep.subr.msk.mxu0 %vm746_vm6, %v13603_v40  ;;  %4751 = vmatprep.mubr.f32.mxu1 %v15810_v0 }
 0x25f   : > { %5272 = vmatprep.mubr.f32.mxu0 %v15810_v0  ;;  %12751 = vmatmul.mubr.msk.f32.vlgmr.msra.gmra.mxu1 %vm742_vm7, %v12736_v4 }
 0x260   : > { %12756 = vmatpush1.msk.msra.mxu1 %vm746_vm6, %v13778_v10  ;;  %12773 = vmatmul.mubr.msk.f32.vlgmr.msra.gmra.mxu0 %vm742_vm7, %v12761_v28 }
 0x261   : > { %12778 = vmatpush1.msk.msra.mxu0 %vm746_vm6, %v13621_v44  ;;  %12762 = vmatprep.subr.msk.mxu1 %vm746_vm6, %v13532_v26  ;;  %v861_v26 = vpop.f32.mrf.mxu1 }
 0x262   : > { %4893 = vmatprep.mubr.f32.mxu1 %v15810_v0  ;;  %5414 = vmatprep.mubr.f32.mxu0 %v15810_v0 }
 0x263   : > { %12783 = vmatprep.subr.msk.mxu0 %vm746_vm6, %v13502_v16  ;;  %12757 = vmatmul.mubr.msk.f32.vlgmr.msra.gmra.mxu1 %vm742_vm7, %v12736_v4  ;;  %v12786_v16 = vld [vmem:[%s15805_s4 + $0x20] sm:$0xf] }
 0x264   : > { %12763 = vmatpush1.msk.msra.mxu1 %vm746_vm6, %v13510_v18  ;;  %12779 = vmatmul.mubr.msk.f32.vlgmr.msra.gmra.mxu0 %vm742_vm7, %v12761_v28  ;;  %v683_v18 = vsel %vm665_vm9, %v14063_v6, %v13697_v49 }
 0x265   : > { %12784 = vmatpush1.msk.msra.mxu0 %vm746_vm6, %v13683_v48  ;;  %12768 = vmatprep.subr.msk.mxu1 %vm746_vm6, %v13530_v25  ;;  %v6171_v25 = vld [vmem:[%s15806_s5] sm:$0xf] }
 0x266   : > { %12790 = vmatprep.subr.msk.mxu0 %vm746_vm6, %v13905_v15  ;;  %5059 = vmatprep.mubr.f32.mxu1 %v15810_v0 }
 0x267   : > { %5556 = vmatprep.mubr.f32.mxu0 %v15810_v0  ;;  %12764 = vmatmul.mubr.msk.f32.vlgmr.msra.gmra.mxu1 %vm742_vm7, %v12761_v28 }
 0x268   : > { %12769 = vmatpush1.msk.msra.mxu1 %vm746_vm6, %v13552_v30  ;;  %12785 = vmatmul.mubr.msk.f32.vlgmr.msra.gmra.mxu0 %vm742_vm7, %v12761_v28 }
 0x269   : > { %12791 = vmatpush1.msk.msra.mxu0 %vm746_vm6, %v13910_v22  ;;  %12774 = vmatprep.subr.msk.mxu1 %vm746_vm6, %v13575_v35  ;;  %v1216_v35 = vpop.f32.mrf.mxu0 }
 0x26a   : > { %12796 = vmatprep.subr.msk.mxu0 %vm746_vm6, %v13926_v8  ;;  %5201 = vmatprep.mubr.f32.mxu1 %v15810_v0 }
 0x26b   : > { %5722 = vmatprep.mubr.f32.mxu0 %v15810_v0  ;;  %12770 = vmatmul.mubr.msk.f32.vlgmr.msra.gmra.mxu1 %vm742_vm7, %v12761_v28  ;;  %v14285_v38 = vpop.f32.mrf.mxu0 }
 0x26c   : > { %12775 = vmatpush1.msk.msra.mxu1 %vm746_vm6, %v13550_v29  ;;  %12792 = vmatmul.mubr.msk.f32.vlgmr.msra.gmra.mxu0 %vm742_vm7, %v12786_v16  ;;  %v14279_v29 = vpop.f32.mrf.mxu1 }
 0x26d   : > { %12797 = vmatpush1.msk.msra.mxu0 %vm746_vm6, %v13933_v43  ;;  %12780 = vmatprep.subr.msk.mxu1 %vm746_vm6, %v13599_v39  ;;  %v1358_v40 = vpop.f32.mrf.mxu0 }
 0x26e   : > { %12802 = vmatprep.subr.msk.mxu0 %vm746_vm6, %v13939_v56  ;;  %5343 = vmatprep.mubr.f32.mxu1 %v15810_v0  ;;  %v932_v30 = vpop.f32.mrf.mxu1 }
 0x26f   : > { %5864 = vmatprep.mubr.f32.mxu0 %v15810_v0  ;;  %12776 = vmatmul.mubr.msk.f32.vlgmr.msra.gmra.mxu1 %vm742_vm7, %v12761_v28  ;;  %v14289_v44 = vpop.f32.mrf.mxu0 }
 0x270   : > { %12781 = vmatpush1.msk.msra.mxu1 %vm746_vm6, %v13607_v41  ;;  %12798 = vmatmul.mubr.msk.f32.vlgmr.msra.gmra.mxu0 %vm742_vm7, %v12786_v16  ;;  %v14281_v31 = vpop.f32.mrf.mxu1 }
 0x271   : > { %12803 = vmatpush1.msk.msra.mxu0 %vm746_vm6, %v13954_v21  ;;  %12787 = vmatprep.subr.msk.mxu1 %vm746_vm6, %v13797_v17 }
 0x272   : > { %12808 = vmatprep.subr.msk.mxu0 %vm746_vm6, %v683_v18  ;;  %5485 = vmatprep.mubr.f32.mxu1 %v15810_v0  ;;  %v1003_v32 = vpop.f32.mrf.mxu1 }
 0x273   : > { %6006 = vmatprep.mubr.f32.mxu0 %v15810_v0  ;;  %12782 = vmatmul.mubr.msk.f32.vlgmr.msra.gmra.mxu1 %vm742_vm7, %v12761_v28 }
 0x274   : > { %12788 = vmatpush1.msk.msra.mxu1 %vm746_vm6, %v13802_v19  ;;  %12804 = vmatmul.mubr.msk.f32.vlgmr.msra.gmra.mxu0 %vm742_vm7, %v12786_v16  ;;  %v14283_v36 = vpop.f32.mrf.mxu1 }
 0x275   : > { %12809 = vmatpush1.msk.msra.mxu0 %vm746_vm6, %v14077_v20  ;;  %12793 = vmatprep.subr.msk.mxu1 %vm746_vm6, %v13824_v23 }
 0x276   : > { %5651 = vmatprep.mubr.f32.mxu1 %v15810_v0  ;;  %6148 = vmatprep.mubr.f32.mxu0 %v15810_v0  ;;  %v1074_v39 = vpop.f32.mrf.mxu1 }
 0x277   : > { %12789 = vmatmul.mubr.msk.f32.vlgmr.msra.gmra.mxu1 %vm742_vm7, %v12786_v16  ;;  %6174 = vperm.xlu1 %13137, %v6171_v25  }
 0x278   : > { %12794 = vmatpush1.msk.msra.mxu1 %vm746_vm6, %v13839_v46  ;;  %12810 = vmatmul.mubr.msk.f32.vlgmr.msra.gmra.mxu0 %vm742_vm7, %v12786_v16  ;;  %v14287_v41 = vpop.f32.mrf.mxu1 }
 0x279   : > { %12799 = vmatprep.subr.msk.mxu1 %vm746_vm6, %v13866_v51  ;;  %5793 = vmatprep.mubr.f32.mxu1 %v15810_v0 }
 0x27a   : > { %6670 = vmatprep.mubr.f32.mxu0 %v15810_v0  ;;  %v1145_v48 = vpop.f32.mrf.mxu1 }
 0x27b   : > { %12795 = vmatmul.mubr.msk.f32.vlgmr.msra.gmra.mxu1 %vm742_vm7, %v12786_v16 }
 0x27c   : > { %12800 = vmatpush1.msk.msra.mxu1 %vm746_vm6, %v13877_v59  ;;  %5935 = vmatprep.mubr.f32.mxu1 %v15810_v0  ;;  %v14291_v54 = vpop.f32.mrf.mxu1 }
 0x27d   : > { %12805 = vmatprep.subr.msk.mxu1 %vm746_vm6, %v13893_v3 }
 0x27e   : > { %v1287_v58 = vpop.f32.mrf.mxu1 }
 0x27f   : > { %12801 = vmatmul.mubr.msk.f32.vlgmr.msra.gmra.mxu1 %vm742_vm7, %v12786_v16 }
 0x280   : > { %12806 = vmatpush1.msk.msra.mxu1 %vm746_vm6, %v13885_v62  ;;  %6077 = vmatprep.mubr.f32.mxu1 %v15810_v0  ;;  %v14297_v2 = vpop.f32.mrf.mxu1 }
 0x282   : > { %v1480_v10 = vpop.f32.mrf.mxu1 }
 0x283   : > { %12807 = vmatmul.mubr.msk.f32.vlgmr.msra.gmra.mxu1 %vm742_vm7, %v12786_v16  ;;  %v1481_v9 = vadd.f32 %v1480_v10, %v861_v26 }
 0x284   : > { %6599 = vmatprep.mubr.f32.mxu1 %v15810_v0  ;;  %v14301_v13 = vpop.f32.mrf.mxu1 }
 0x2aa   : > { %v1551_v49 = vpop.f32.mrf.mxu0 }
 0x2ab   : > { %v1552_v34 = vadd.f32 %v1551_v49, %v932_v30 }
 0x2ac   : > { %v14293_v55 = vpop.f32.mrf.mxu0 }
 0x2b1   : > { %v1693_v61 = vpop.f32.mrf.mxu0 }
 0x2b2   : > { %v1694_v59 = vadd.f32 %v1693_v61, %v1074_v39 }
 0x2b3   : > { %v14295_v1 = vpop.f32.mrf.mxu0 }
 0x2b7   : > { %v1835_v7 = vpop.f32.mrf.mxu0 }
 0x2b8   : > { %v1836_v24 = vadd.f32 %v1835_v7, %v1216_v35 }
 0x2b9   : > { %v14299_v12 = vpop.f32.mrf.mxu0 }
 0x2ba   : > { %v1622_v17 = vpop.f32.mrf.mxu1 }
 0x2bb   : > { %v1623_v14 = vadd.f32 %v1622_v17, %v1003_v32 }
 0x2bc   : > { %v14305_v42 = vpop.f32.mrf.mxu1 }
 0x2be   : > { %v1977_v19 = vpop.f32.mrf.mxu0 }
 0x2bf   : > { %v1978_v56 = vadd.f32 %v1977_v19, %v1358_v40 }
 0x2c0   : > { %v14303_v23 = vpop.f32.mrf.mxu0 }
 0x2c2   : > { %v1764_v52 = vpop.f32.mrf.mxu1 }
 0x2c3   : > { %v2172_v46 = vpop.f32.mrf.mxu0  ;;  %v1765_v18 = vadd.f32 %v1764_v52, %v1145_v48 }
 0x2c4   : > { %v2605_v53 = vadd.f32 %v2172_v46, %v1552_v34  ;;  %v14307_v51 = vpop.f32.mrf.mxu1 }
 0x2c5   : > { %v14309_v50 = vpop.f32.mrf.mxu0 }
 0x2ca   : > { %v2314_v60 = vpop.f32.mrf.mxu0  ;;  %v1906_v62 = vpop.f32.mrf.mxu1 }
 0x2cb   : > { %v2609_v63 = vadd.f32 %v2314_v60, %v1694_v59  ;;  %v1907_v40 = vadd.f32 %v1906_v62, %v1287_v58 }
 0x2cc   : > { %v14311_v3 = vpop.f32.mrf.mxu1  ;;  %v14313_v22 = vpop.f32.mrf.mxu0 }
 0x2ce   : > { %v2101_v11 = vpop.f32.mrf.mxu1 }
 0x2cf   : > { %v2603_v15 = vadd.f32 %v2101_v11, %v1481_v9 }
 0x2d0   : > { %v14317_v47 = vpop.f32.mrf.mxu1 }
 0x2d2   : > { %v2456_v8 = vpop.f32.mrf.mxu0 }
 0x2d3   : > { %v2613_v27 = vadd.f32 %v2456_v8, %v1836_v24 }
 0x2d4   : > { %v14315_v43 = vpop.f32.mrf.mxu0 }
 0x2d7   : > { %v2598_v57 = vpop.f32.mrf.mxu0 }
 0x2d8   : > { %v2617_v21 = vadd.f32 %v2598_v57, %v1978_v56 }
 0x2d9   : > { %v14319_v45 = vpop.f32.mrf.mxu0 }
 0x2db   : > { %v2243_v6 = vpop.f32.mrf.mxu1  ;;  %v2764_v20 = vpop.f32.mrf.mxu0 }
 0x2dc   : > { %v2607_v4 = vadd.f32 %v2243_v6, %v1623_v14  ;;  %v14321_v5 = vadd.f32 %v2764_v20, %v2605_v53 }
 0x2dd   : > { %v14323_v28 = vpop.f32.mrf.mxu1  ;;  %v14325_v16 = vpop.f32.mrf.mxu0 }
 0x2df   : > { %v2385_v25 = vpop.f32.mrf.mxu1 }
 0x2e0   : > { %v2611_v26 = vadd.f32 %v2385_v25, %v1765_v18  ;;  %v2906_v30 = vpop.f32.mrf.mxu0 }
 0x2e1   : > { %v14327_v35 = vadd.f32 %v2906_v30, %v2609_v63  ;;  %v14329_v39 = vpop.f32.mrf.mxu1 }
 0x2e2   : > { %v14331_v49 = vpop.f32.mrf.mxu0 }
 0x2e3   : > { %v2527_v32 = vpop.f32.mrf.mxu1 }
 0x2e4   : > { %v2615_v61 = vadd.f32 %v2527_v32, %v1907_v40  ;;  %v3048_v7 = vpop.f32.mrf.mxu0 }
 0x2e5   : > { %v14333_v10 = vadd.f32 %v3048_v7, %v2613_v27  ;;  %v14335_v17 = vpop.f32.mrf.mxu1 }
 0x2e6   : > { %v14337_v19 = vpop.f32.mrf.mxu0 }
 0x2e7   : > { %v2693_v48 = vpop.f32.mrf.mxu1 }
 0x2e8   : > { %v14339_v34 = vadd.f32 %v2693_v48, %v2603_v15  ;;  %v3190_v46 = vpop.f32.mrf.mxu0 }
 0x2e9   : > { %v14341_v52 = vadd.f32 %v3190_v46, %v2617_v21  ;;  %v14343_v53 = vpop.f32.mrf.mxu1 }
 0x2ea   : > { %v14345_v58 = vpop.f32.mrf.mxu0 }
 0x2eb   : > { %v2835_v59 = vpop.f32.mrf.mxu1 }
 0x2ec   : > { %v14347_v60 = vadd.f32 %v2835_v59, %v2607_v4  ;;  %v14349_v62 = vpop.f32.mrf.mxu0 }
 0x2ed   : > { %v14351_v63 = vpop.f32.mrf.mxu1 }
 0x2ee   : > { %15820 = vst [vmem:[#allocation11_spill] sm:$0xff] %v14347_v60  ;;  %v14353_v9 = vpop.f32.mrf.mxu0 }
 0x2ef   : > { %v2977_v11 = vpop.f32.mrf.mxu1 }
 0x2f0   : > { %v14355_v24 = vadd.f32 %v2977_v11, %v2611_v26  ;;  %v14357_v15 = vpop.f32.mrf.mxu0 }
 0x2f1   : > { %v14359_v8 = vpop.f32.mrf.mxu1 }
 0x2f2   : > { %15821 = vst [vmem:[#allocation12_spill] sm:$0xff] %v14355_v24  ;;  %v14361_v27 = vpop.f32.mrf.mxu0 }
 0x2f3   : > { %v3119_v56 = vpop.f32.mrf.mxu1 }
 0x2f4   : > { %v14363_v57 = vadd.f32 %v3119_v56, %v2615_v61  ;;  %v14365_v21 = vpop.f32.mrf.mxu0 }
 0x2f5   : > { %v14367_v14 = vpop.f32.mrf.mxu1 }
 0x2f6   : > { %15822 = vst [vmem:[#allocation13_spill] sm:$0xff] %v14363_v57  ;;  %v14369_v6 = vpop.f32.mrf.mxu0 }
 0x2f7   : > { %v14371_v20 = vpop.f32.mrf.mxu1 }
 0x2f8   : > { %v14373_v4 = vpop.f32.mrf.mxu0 }
 0x2f9   : > { %v14375_v18 = vpop.f32.mrf.mxu1 }
 0x2fa   : > { %v14377_v25 = vpop.f32.mrf.mxu0 }
 0x2fb   : > { %v14379_v26 = vpop.f32.mrf.mxu1 }
 0x2fc   : > { %15823 = vst [vmem:[#allocation14_spill] sm:$0xff] %v14379_v26  ;;  %v14381_v30 = vpop.f32.mrf.mxu0 }
 0x2fd   : > { %v14383_v40 = vpop.f32.mrf.mxu1 }
 0x2fe   : > { %15824 = vst [vmem:[#allocation15_spill] sm:$0xff] %v14383_v40  ;;  %v14385_v32 = vpop.f32.mrf.mxu0 }
 0x2ff   : > { %15825 = vst [vmem:[#allocation16_spill] sm:$0xff] %v14385_v32  ;;  %v14387_v61 = vpop.f32.mrf.mxu1  ;;  %v1554_v32 = vadd.f32 %v14293_v55, %v14281_v31  ;;  %v1625_v31 = vadd.f32 %v14305_v42, %v14283_v36  ;;  %v1838_v55 = vadd.f32 %v14299_v12, %v14285_v38 }
 0x300   : > { %15826 = vst [vmem:[#allocation17_spill] sm:$0xff] %v14387_v61  ;;  %v14389_v7 = vpop.f32.mrf.mxu0 }
 0x301   : > { %15827 = vst [vmem:[#allocation18_spill] sm:$0xff] %v14389_v7  ;;  %v14391_v48 = vpop.f32.mrf.mxu1  ;;  %v2606_v42 = vadd.f32 %v14309_v50, %v1554_v32 }
 0x302   : > { %15828 = vst [vmem:[#allocation19_spill] sm:$0xff] %v14391_v48  ;;  %v14393_v46 = vpop.f32.mrf.mxu0 }
 0x303   : > { %15829 = vst [vmem:[#allocation20_spill] sm:$0xff] %v14393_v46  ;;  %v14395_v59 = vpop.f32.mrf.mxu1 }
 0x304   : > { %15830 = vst [vmem:[#allocation21_spill] sm:$0xff] %v14395_v59  ;;  %v14397_v11 = vpop.f32.mrf.mxu0 }
 0x305   : > { %15831 = vst [vmem:[#allocation22_spill] sm:$0xff] %v14397_v11  ;;  %v14399_v56 = vpop.f32.mrf.mxu1 }
 0x306   : > { %15832 = vst [vmem:[#allocation23_spill] sm:$0xff] %v14399_v56  ;;  %v14401_v0 = vpop.f32.mrf.mxu0 }
 0x307   : > { %15833 = vst [vmem:[#allocation24_spill] sm:$0xff] %v14401_v0  ;;  %v14403_v33 = vpop.f32.mrf.mxu1 }
 0x308   : > { %15834 = vst [vmem:[#allocation25_spill] sm:$0xff] %v14403_v33  ;;  %v14405_v37 = vpop.f32.mrf.mxu0 }
 0x309   : > { %15835 = vst [vmem:[#allocation26_spill] sm:$0xff] %v14405_v37  ;;  %v14407_v57 = vpop.f32.mrf.mxu1 }
 0x30a   : > { %15836 = vst [vmem:[#allocation27_spill] sm:$0xff] %v14407_v57  ;;  %v14409_v61 = vpop.f32.mrf.mxu0 }
 0x30b   : > { %15837 = vst [vmem:[#allocation28_spill] sm:$0xff] %v14409_v61  ;;  %v14411_v7 = vpop.f32.mrf.mxu1 }
 0x30c   : > { %15838 = vst [vmem:[#allocation29_spill] sm:$0xff] %v14411_v7  ;;  %v14413_v48 = vpop.f32.mrf.mxu0  ;;  %v15849_v7 = vlaneseq }
 0x30d   : > { %15839 = vst [vmem:[#allocation30_spill] sm:$0xff] %v14413_v48  ;;  %v14415_v46 = vpop.f32.mrf.mxu1 }
 0x30e   : > { %15840 = vst [vmem:[#allocation31_spill] sm:$0xff] %v14415_v46  ;;  %v14417_v59 = vpop.f32.mrf.mxu0  ;;  %v14434_v24 = vshrl.u32 %v15849_v7, 7 }
 0x30f   : > { %15841 = vst [vmem:[#allocation32_spill] sm:$0xff] %v14417_v59  ;;  %v14419_v11 = vpop.f32.mrf.mxu1 }
 0x310   : > { %15842 = vst [vmem:[#allocation33_spill] sm:$0xff] %v14419_v11  ;;  %v14421_v56 = vpop.f32.mrf.mxu0  ;;  %v6240_v7 = vsub.s32 6, %v14434_v24  ;;  %v15863_v36 = vsub.s32 1, %v14434_v24 }
 0x311   : > { %15843 = vst [vmem:[#allocation34_spill] sm:$0xff] %v14421_v56  ;;  %v14423_v0 = vpop.f32.mrf.mxu1 }
 0x312   : > { %15844 = vst [vmem:[#allocation35_spill] sm:$0xff] %v14423_v0  ;;  %v14425_v33 = vpop.f32.mrf.mxu0  ;;  %v6224_v0 = vsub.s32 2, %v14434_v24 }
 0x313   : > { %15845 = vst [vmem:[#allocation36_spill] sm:$0xff] %v14425_v33  ;;  %v14427_v37 = vpop.f32.mrf.mxu1 }
 0x314   : > { %15846 = vst [vmem:[#allocation37_spill] sm:$0xff] %v14427_v37  ;;  %v14429_v57 = vpop.f32.mrf.mxu0 }
 0x315   : > { %15847 = vst [vmem:[#allocation38_spill] sm:$0xff] %v14429_v57  ;;  %v14431_v61 = vpop.f32.mrf.mxu1  ;;  %v6210_v57 = vld [vmem:[%s15804_s3] sm:$0xff] }
 0x316   : > { %15848 = vst [vmem:[#allocation39_spill] sm:$0xff] %v14431_v61  ;;  %v14436_v46 = vpop.f32.mrf.mxu0  ;;  %v6228_v61 = vsub.s32 3, %v14434_v24  ;;  %v14507_v38 = vrot.slane %v6210_v57, %v15863_v36  ;;  %v1767_v36 = vadd.f32 %v14307_v51, %v14291_v54 }
 0x317   : > { %15850 = vst [vmem:[#allocation40_spill] sm:$0xff] %v14436_v46  ;;  %v14438_v59 = vpop.f32.mrf.mxu1  ;;  %v6244_v46 = vsub.s32 7, %v14434_v24 }
 0x318   : > { %15851 = vst [vmem:[#allocation41_spill] sm:$0xff] %v14438_v59  ;;  %v14440_v11 = vpop.f32.mrf.mxu0  ;;  %v14478_v60 = vrot.slane %v6210_v57, %v6228_v61  ;;  %v14480_v59 = vrot.slane %v6210_v57, %v6240_v7  ;;  %v2612_v54 = vadd.f32 %v14329_v39, %v1767_v36  ;;  %v15876_v36 = vld [vmem:[#allocation20_spill] sm:$0xff] }
 0x319   : > { %15852 = vst [vmem:[#allocation42_spill] sm:$0xff] %v14440_v11  ;;  %v14442_v56 = vpop.f32.mrf.mxu1  ;;  %v1483_v11 = vadd.f32 %v14301_v13, %v14279_v29  ;;  %v14482_v48 = vrot.slane %v6210_v57, %v6244_v46 }
 0x31a   : > { %15853 = vst [vmem:[#allocation43_spill] sm:$0xff] %v14442_v56  ;;  %v14445_v33 = vpop.f32.mrf.mxu0  ;;  %15857 = vst [vmem:[#allocation47_spill] sm:$0xff] %v14478_v60 }
 0x31b   : > { %15854 = vst [vmem:[#allocation44_spill] sm:$0xff] %v14445_v33  ;;  %v14453_v37 = vpop.f32.mrf.mxu1  ;;  %v14462_v33 = vld [vmem:[%s15804_s3 + $0x8] sm:$0xff]  ;;  %15858 = vst [vmem:[#allocation48_spill] sm:$0xff] %v14480_v59  ;;  %v15860_v59 = vsub.s32 0, %v14434_v24  ;;  %v2604_v32 = vadd.f32 %v14317_v47, %v1483_v11 }
 0x31c   : > { %15855 = vst [vmem:[#allocation45_spill] sm:$0xff] %v14453_v37  ;;  %v14457_v56 = vpop.f32.mrf.mxu0  ;;  %v14470_v37 = vrot.slane %v6210_v57, %v6224_v0  ;;  %15859 = vst [vmem:[#allocation49_spill] sm:$0xff] %v14482_v48  ;;  %v14491_v13 = vrot.slane %v14462_v33, %v6224_v0  ;;  %v14503_v48 = vrot.slane %v14462_v33, %v6240_v7  ;;  %v15866_v7 = vsub.s32 5, %v14434_v24 }
 0x31d   : > { %15856 = vst [vmem:[#allocation46_spill] sm:$0xff] %v14457_v56  ;;  %v14468_v40 = vpop.f32.mrf.mxu1  ;;  %v1696_v56 = vadd.f32 %v14295_v1, %v14287_v41  ;;  %v14494_v41 = vrot.slane %v14462_v33, %v6228_v61  ;;  %v14500_v60 = vrot.slane %v6210_v57, %v15860_v59  ;;  %v14510_v12 = vrot.slane %v14462_v33, %v6244_v46 }
 0x31e   : > { %v14476_v26 = vpop.f32.mrf.mxu0  ;;  %15862 = vst [vmem:[#allocation51_spill] sm:$0xff] %v14503_v48  ;;  %v1980_v0 = vadd.f32 %v14303_v23, %v14289_v44  ;;  %v15864_v59 = vsub.s32 4, %v14434_v24  ;;  %v14523_v48 = vrot.slane %v6210_v57, %v15866_v7  ;;  %v1909_v44 = vadd.f32 %v14311_v3, %v14297_v2 }
 0x31f   : > { %v14488_v29 = vpop.f32.mrf.mxu1  ;;  %15861 = vst [vmem:[#allocation50_spill] sm:$0xff] %v14500_v60  ;;  %v2610_v46 = vadd.f32 %v14313_v22, %v1696_v56  ;;  %v2614_v23 = vadd.f32 %v14315_v43, %v1838_v55  ;;  %v3196_v43 = vadd.f32 %v14343_v53, %v2604_v32  ;;  %v3797_v53 = vadd.f32 %v14365_v21, %v14333_v10  ;;  %v15867_v10 = vld [vmem:[#allocation11_spill] sm:$0xff]  ;;  %v15878_v32 = vld [vmem:[#allocation21_spill] sm:$0xff] }
 0x320   : > { %v14496_v1 = vpop.f32.mrf.mxu0  ;;  %v14519_v60 = vrot.slane %v6210_v57, %v15864_v59  ;;  %v2618_v59 = vadd.f32 %v14319_v45, %v1980_v0  ;;  %v3198_v57 = vadd.f32 %v14325_v16, %v2606_v42  ;;  %v2616_v2 = vadd.f32 %v14335_v17, %v1909_v44  ;;  %v15875_v42 = vld [vmem:[#allocation19_spill] sm:$0xff] }
 0x321   : > { %v14515_v61 = vpop.f32.mrf.mxu1  ;;  %v3202_v51 = vadd.f32 %v14331_v49, %v2610_v46  ;;  %v3206_v3 = vadd.f32 %v14337_v19, %v2614_v23  ;;  %v3789_v45 = vadd.f32 %v14349_v62, %v14321_v5  ;;  %v3793_v49 = vadd.f32 %v14357_v15, %v14327_v35  ;;  %v15877_v23 = vld [vmem:[#allocation13_spill] sm:$0xff] }
 0x322   : > { %15865 = vst [vmem:[#allocation52_spill] sm:$0xff] %v14519_v60  ;;  %v14531_v50 = vpop.f32.mrf.mxu0  ;;  %v2608_v60 = vadd.f32 %v14323_v28, %v1625_v31  ;;  %v3210_v47 = vadd.f32 %v14345_v58, %v2618_v59  ;;  %v3790_v39 = vadd.f32 %v14353_v9, %v3198_v57  ;;  %v3204_v17 = vadd.f32 %v14359_v8, %v2612_v54  ;;  %v15871_v31 = vld [vmem:[#allocation30_spill] sm:$0xff] }
 0x323   : > { %v14537_v7 = vpop.f32.mrf.mxu1  ;;  %v3794_v19 = vadd.f32 %v14361_v27, %v3202_v51  ;;  %v3208_v5 = vadd.f32 %v14367_v14, %v2616_v2  ;;  %v3798_v58 = vadd.f32 %v14369_v6, %v3206_v3  ;;  %v3787_v35 = vadd.f32 %v14371_v20, %v14339_v34  ;;  %v15868_v27 = vld [vmem:[#allocation14_spill] sm:$0xff]  ;;  %v15869_v14 = vld [vmem:[#allocation15_spill] sm:$0xff]  ;;  %v15872_v34 = vld [vmem:[#allocation12_spill] sm:$0xff] }
 0x324   : > { %v14543_v22 = vpop.f32.mrf.mxu0  ;;  %v3200_v28 = vadd.f32 %v14351_v63, %v2608_v60  ;;  %v4381_v60 = vadd.f32 %v14381_v30, %v3789_v45  ;;  %v3801_v63 = vadd.f32 %v14373_v4, %v14341_v52  ;;  %v3788_v9 = vadd.f32 %v14375_v18, %v3196_v43  ;;  %v15870_v30 = vld [vmem:[#allocation16_spill] sm:$0xff]  ;;  %v15873_v20 = vld [vmem:[#allocation17_spill] sm:$0xff]  ;;  %v15874_v4 = vld [vmem:[#allocation18_spill] sm:$0xff] }
 0x325   : > { %v14550_v16 = vpop.f32.mrf.mxu1  ;;  %v3802_v15 = vadd.f32 %v14377_v25, %v3210_v47  ;;  %v3791_v21 = vadd.f32 %v15868_v27, %v15867_v10  ;;  %v4382_v56 = vadd.f32 %v15870_v30, %v3790_v39  ;;  %v3795_v52 = vadd.f32 %v15873_v20, %v15872_v34  ;;  %v15879_v57 = vld [vmem:[#allocation22_spill] sm:$0xff]  ;;  %v15880_v51 = vld [vmem:[#allocation32_spill] sm:$0xff]  ;;  %v15882_v45 = vld [vmem:[#allocation23_spill] sm:$0xff] }
 0x326   : > { %v14557_v11 = vpop.f32.mrf.mxu0  ;;  %v3792_v6 = vadd.f32 %v15869_v14, %v3200_v28  ;;  %v4973_v55 = vadd.f32 %v15871_v31, %v4381_v60  ;;  %v4385_v18 = vadd.f32 %v15874_v4, %v3793_v49  ;;  %v3796_v25 = vadd.f32 %v15875_v42, %v3204_v17  ;;  %v15881_v3 = vld [vmem:[#allocation46_spill] sm:$0xff]  ;;  %v15883_v39 = vld [vmem:[#allocation24_spill] sm:$0xff]  ;;  %v15884_v17 = vld [vmem:[#allocation25_spill] sm:$0xff]  ;;  %v14599_v14 = vpop.permute.xlu1 %6174 }
 0x327   : > { %v14564_v62 = vpop.f32.mrf.mxu1  ;;  %v4386_v46 = vadd.f32 %v15876_v36, %v3794_v19  ;;  %v3799_v59 = vadd.f32 %v15878_v32, %v15877_v23  ;;  %v4389_v54 = vadd.f32 %v15879_v57, %v3797_v53  ;;  %v4974_v2 = vadd.f32 %v15880_v51, %v4382_v56  ;;  %v15885_v19 = vld [vmem:[#allocation26_spill] sm:$0xff]  ;;  %v15886_v30 = vld [vmem:[#allocation27_spill] sm:$0xff]  ;;  %v15888_v4 = vld [vmem:[#allocation28_spill] sm:$0xff] }
 0x328   : > { %v14572_v8 = vpop.f32.mrf.mxu0  ;;  %v5565_v43 = vadd.f32 %v15881_v3, %v4973_v55  ;;  %v3800_v28 = vadd.f32 %v15882_v45, %v3208_v5  ;;  %v4390_v49 = vadd.f32 %v15883_v39, %v3798_v58  ;;  %v4379_v60 = vadd.f32 %v15884_v17, %v3787_v35  ;;  %v15887_v53 = vld [vmem:[#allocation34_spill] sm:$0xff]  ;;  %v15889_v42 = vld [vmem:[#allocation29_spill] sm:$0xff]  ;;  %v15890_v36 = vld [vmem:[#allocation31_spill] sm:$0xff] }
 0x329   : > { %v14579_v0 = vpop.f32.mrf.mxu1  ;;  %v4393_v10 = vadd.f32 %v15885_v19, %v3801_v63  ;;  %v4380_v31 = vadd.f32 %v15886_v30, %v3788_v9  ;;  %v4977_v34 = vadd.f32 %v15887_v53, %v4385_v18  ;;  %v5566_v56 = vadd.f32 %v14476_v26, %v4974_v2  ;;  %v15891_v23 = vld [vmem:[#allocation33_spill] sm:$0xff]  ;;  %v15892_v57 = vld [vmem:[#allocation36_spill] sm:$0xff]  ;;  %v15893_v2 = vld [vmem:[#allocation35_spill] sm:$0xff] }
 0x32a   : > { %v14586_v44 = vpop.f32.mrf.mxu0  ;;  %v4394_v5 = vadd.f32 %v15888_v4, %v3802_v15  ;;  %v4383_v58 = vadd.f32 %v15889_v42, %v3791_v21  ;;  %v4384_v35 = vadd.f32 %v15890_v36, %v3792_v6  ;;  %v4387_v63 = vadd.f32 %v15891_v23, %v3795_v52  ;;  %v15894_v45 = vld [vmem:[#allocation37_spill] sm:$0xff]  ;;  %v15895_v39 = vld [vmem:[#allocation38_spill] sm:$0xff]  ;;  %v15896_v17 = vld [vmem:[#allocation39_spill] sm:$0xff] }
 0x32b   : > { %v14593_v47 = vpop.f32.mrf.mxu1  ;;  %v4978_v51 = vadd.f32 %v15892_v57, %v4386_v46  ;;  %v5569_v9 = vadd.f32 %v14496_v1, %v4977_v34  ;;  %v4391_v15 = vadd.f32 %v15894_v45, %v3799_v59  ;;  %v4981_v21 = vadd.f32 %v15895_v39, %v4389_v54  ;;  %v15897_v53 = vld [vmem:[#allocation40_spill] sm:$0xff]  ;;  %v15900_v4 = vld [vmem:[#allocation43_spill] sm:$0xff] }
 0x32c   : > { %v5724_v27 = vpop.f32.mrf.mxu0  ;;  %v14619_v6 = vadd.f32 %v15896_v17, %v3800_v28  ;;  %v4982_v34 = vadd.f32 %v15897_v53, %v4390_v49  ;;  %v4972_v54 = vadd.f32 %v15900_v4, %v4380_v31  ;;  %v15901_v57 = vld [vmem:[#allocation44_spill] sm:$0xff]  ;;  %v4976_v49 = vadd.f32 %v14468_v40, %v4384_v35 }
 0x32d   : > { %v6157_v55 = vadd.f32 %v5724_v27, %v5565_v43  ;;  %v14604_v20 = vpop.f32.mrf.mxu1  ;;  %v4388_v43 = vadd.f32 %v15893_v2, %v3796_v25  ;;  %v5570_v19 = vadd.f32 %v14531_v50, %v4978_v51  ;;  %v5573_v28 = vadd.f32 %v14543_v22, %v4981_v21 }
 0x32e   : > { %v5726_v32 = vpop.f32.mrf.mxu0  ;;  %v4986_v51 = vadd.f32 %v15901_v57, %v4394_v5  ;;  %v4979_v21 = vadd.f32 %v14488_v29, %v4387_v63  ;;  %v5574_v5 = vadd.f32 %v14557_v11, %v4982_v34  ;;  %v15904_v11 = vld [vmem:[#allocation48_spill] sm:$0xff] }
 0x32f   : > { %v6158_v3 = vadd.f32 %v5726_v32, %v5566_v56  ;;  %v6179_v18 = vadd.f32 %v14599_v14, %v6157_v55  ;;  %v14613_v26 = vpop.f32.mrf.mxu1  ;;  %v15898_v56 = vld [vmem:[#allocation41_spill] sm:$0xff]  ;;  %v15899_v55 = vld [vmem:[#allocation42_spill] sm:$0xff]  ;;  %v4980_v17 = vadd.f32 %v14515_v61, %v4388_v43 }
 0x330   : > { %v5866_v52 = vpop.f32.mrf.mxu0  ;;  %v4971_v25 = vadd.f32 %v15898_v56, %v4379_v60  ;;  %v4985_v59 = vadd.f32 %v15899_v55, %v4393_v10  ;;  %v15905_v43 = vld [vmem:[#allocation49_spill] sm:$0xff] }
 0x331   : > { %v6180_v46 = vadd.f32 %v14599_v14, %v6158_v3  ;;  %v6195_v1 = vmax.f32 %v6179_v18, 0.0  ;;  %v6161_v27 = vadd.f32 %v5866_v52, %v5569_v9  ;;  %v14623_v30 = vpop.f32.mrf.mxu1  ;;  %v15902_v9 = vld [vmem:[#allocation45_spill] sm:$0xff]  ;;  %v15903_v18 = vld [vmem:[#allocation47_spill] sm:$0xff] }
 0x332   : > { %v5868_v42 = vpop.f32.mrf.mxu0  ;;  %v4975_v3 = vadd.f32 %v15902_v9, %v4383_v58  ;;  %v5563_v58 = vadd.f32 %v14564_v62, %v4971_v25  ;;  %v5571_v9 = vadd.f32 %v14613_v26, %v4979_v21  ;;  %v15906_v21 = vld [vmem:[#allocation50_spill] sm:$0xff] }
 0x333   : > { %v6196_v36 = vmax.f32 %v6180_v46, 0.0  ;;  %v6183_v50 = vadd.f32 %v14599_v14, %v6161_v27  ;;  %v6162_v23 = vadd.f32 %v5868_v42, %v5570_v19  ;;  %v14631_v32 = vpop.f32.mrf.mxu1  ;;  %v6296_v60 = vmul.f32 %v14470_v37, %v6195_v1 }
 0x334   : > { %v6008_v10 = vpop.f32.mrf.mxu0  ;;  %v5577_v37 = vadd.f32 %v14572_v8, %v4985_v59  ;;  %v5564_v1 = vadd.f32 %v14579_v0, %v4972_v54  ;;  %v5578_v27 = vadd.f32 %v14586_v44, %v4986_v51  ;;  %v5567_v61 = vadd.f32 %v14593_v47, %v4975_v3 }
 0x335   : > { %v6297_v31 = vmul.f32 %v15903_v18, %v6196_v36  ;;  %v6199_v2 = vmax.f32 %v6183_v50, 0.0  ;;  %v6184_v22 = vadd.f32 %v14599_v14, %v6162_v23  ;;  %v6165_v45 = vadd.f32 %v6008_v10, %v5573_v28  ;;  %v14639_v39 = vpop.f32.mrf.mxu1 }
 0x336   : > { %v6010_v40 = vpop.f32.mrf.mxu0  ;;  %v4983_v44 = vadd.f32 %v14537_v7, %v4391_v15  ;;  %v5568_v51 = vadd.f32 %v14604_v20, %v4976_v49 }
 0x337   : > { %v6327_v35 = vcombine.low %v6296_v60, %v6297_v31  ;;  %v6200_v52 = vmax.f32 %v6184_v22, 0.0  ;;  %v6187_v19 = vadd.f32 %v14599_v14, %v6165_v45  ;;  %v5653_v46 = vpop.f32.mrf.mxu1  ;;  %v6166_v53 = vadd.f32 %v6010_v40, %v5574_v5 }
 0x338   : > { %v6155_v29 = vadd.f32 %v5653_v46, %v5563_v58  ;;  %v6150_v63 = vpop.f32.mrf.mxu0  ;;  %v6300_v62 = vmul.f32 %v15904_v11, %v6199_v2  ;;  %v4984_v2 = vadd.f32 %v14550_v16, %v14619_v6  ;;  %v5572_v22 = vadd.f32 %v14623_v30, %v4980_v17 }
 0x339   : > { %6343 = vst [vmem:[#allocation3 + $0xc] sm:$0xff] %v6327_v35  ;;  %v6301_v34 = vmul.f32 %v15905_v43, %v6200_v52  ;;  %v6169_v8 = vadd.f32 %v6150_v63, %v5577_v37  ;;  %v5655_v56 = vpop.f32.mrf.mxu1  ;;  %v6203_v25 = vmax.f32 %v6187_v19, 0.0  ;;  %v6188_v55 = vadd.f32 %v14599_v14, %v6166_v53 }
 0x33a   : > { %v6177_v59 = vadd.f32 %v14599_v14, %v6155_v29  ;;  %v6156_v0 = vadd.f32 %v5655_v56, %v5564_v1  ;;  %v6152_v4 = vpop.f32.mrf.mxu0  ;;  %v5575_v16 = vadd.f32 %v14631_v32, %v4983_v44  ;;  %v15909_v53 = vsub.s32 1, %v14434_v24 }
 0x33b   : > { %v6329_v54 = vcombine.low %v6300_v62, %v6301_v34  ;;  %v6191_v42 = vadd.f32 %v14599_v14, %v6169_v8  ;;  %v6170_v47 = vadd.f32 %v6152_v4, %v5578_v27  ;;  %v5795_v28 = vpop.f32.mrf.mxu1  ;;  %v6204_v36 = vmax.f32 %v6188_v55, 0.0  ;;  %v15910_v62 = vld [vmem:[#allocation52_spill] sm:$0xff] }
 0x33c   : > { %v6193_v50 = vmax.f32 %v6177_v59, 0.0  ;;  %v6178_v23 = vadd.f32 %v14599_v14, %v6156_v0  ;;  %v6159_v57 = vadd.f32 %v5795_v28, %v5567_v61  ;;  %v6304_v7 = vmul.f32 %v14491_v13, %v6203_v25  ;;  %v15907_v13 = vld [vmem:[#allocation51_spill] sm:$0xff] }
 0x33d   : > { %6345 = vst [vmem:[#allocation3 + $0x1c] sm:$0xff] %v6329_v54  ;;  %v6207_v3 = vmax.f32 %v6191_v42, 0.0  ;;  %v6192_v60 = vadd.f32 %v14599_v14, %v6170_v47  ;;  %v5797_v10 = vpop.f32.mrf.mxu1  ;;  %v6305_v15 = vmul.f32 %v14494_v41, %v6204_v36  ;;  %v5576_v63 = vadd.f32 %v14639_v39, %v4984_v2 }
 0x33e   : > { %v6194_v18 = vmax.f32 %v6178_v23, 0.0  ;;  %v6181_v31 = vadd.f32 %v14599_v14, %v6159_v57  ;;  %v6160_v49 = vadd.f32 %v5797_v10, %v5568_v51  ;;  %v6294_v5 = vmul.f32 %v15906_v21, %v6193_v50 }
 0x33f   : > { %v6208_v20 = vmax.f32 %v6192_v60, 0.0  ;;  %v5937_v26 = vpop.f32.mrf.mxu1  ;;  %v6331_v45 = vcombine.low %v6304_v7, %v6305_v15  ;;  %v6308_v37 = vmul.f32 %v15907_v13, %v6207_v3  ;;  %v15911_v0 = vsub.s32 4, %v14434_v24  ;;  %v12811_v3 = vld [vmem:[%s15807_s6 + $0x4] sm:$0xf] }
 0x340   : > { %v6295_v58 = vmul.f32 %v14507_v38, %v6194_v18  ;;  %v6163_v40 = vadd.f32 %v5937_v26, %v5571_v9  ;;  %v6197_v35 = vmax.f32 %v6181_v31, 0.0  ;;  %v6182_v52 = vadd.f32 %v14599_v14, %v6160_v49 }
 0x341   : > { %v6309_v41 = vmul.f32 %v14510_v12, %v6208_v20  ;;  %v5939_v19 = vpop.f32.mrf.mxu1  ;;  %6347 = vst [vmem:[#allocation3 + $0x2c] sm:$0xff] %v6331_v45  ;;  %v15908_v38 = vsub.s32 0, %v14434_v24  ;;  %v6253_v12 = vrot.slane %v14462_v33, %v15909_v53  ;;  %v6265_v39 = vrot.slane %v14462_v33, %v15911_v0 }
 0x342   : > { %v6326_v6 = vcombine.low %v6294_v5, %v6295_v58  ;;  %v6185_v30 = vadd.f32 %v14599_v14, %v6163_v40  ;;  %v6164_v17 = vadd.f32 %v5939_v19, %v5572_v22  ;;  %v6198_v1 = vmax.f32 %v6182_v52, 0.0 }
 0x343   : > { %v6333_v46 = vcombine.low %v6308_v37, %v6309_v41  ;;  %v6249_v27 = vrot.slane %v14462_v33, %v15908_v38  ;;  %v6079_v29 = vpop.f32.mrf.mxu1  ;;  %v6298_v43 = vmul.f32 %v15910_v62, %v6197_v35  ;;  %v15912_v4 = vsub.s32 5, %v14434_v24  ;;  %v14882_v38 = vld [vmem:[%s15807_s6] sm:$0xf] }
 0x344   : > { %6342 = vst [vmem:[#allocation3 + $0x4] sm:$0xff] %v6326_v6  ;;  %v6201_v32 = vmax.f32 %v6185_v30, 0.0  ;;  %v6186_v61 = vadd.f32 %v14599_v14, %v6164_v17  ;;  %v6167_v11 = vadd.f32 %v6079_v29, %v5575_v16  ;;  %v6299_v34 = vmul.f32 %v14523_v48, %v6198_v1 }
 0x345   : > { %6349 = vst [vmem:[#allocation3 + $0x3c] sm:$0xff] %v6333_v46  ;;  %v6081_v8 = vpop.f32.mrf.mxu1  ;;  %v6269_v44 = vrot.slane %v14462_v33, %v15912_v4  ;;  %v15913_v18 = vmov 0.0  }
 0x346   : > { %v6202_v56 = vmax.f32 %v6186_v61, 0.0  ;;  %v6189_v25 = vadd.f32 %v14599_v14, %v6167_v11  ;;  %v6168_v55 = vadd.f32 %v6081_v8, %v5576_v63  ;;  %v6328_v59 = vcombine.low %v6298_v43, %v6299_v34 }
 0x347   : > { %v6302_v54 = vmul.f32 %v6249_v27, %v6201_v32 }
 0x348   : > { %v6303_v42 = vmul.f32 %v6253_v12, %v6202_v56  ;;  %v6205_v47 = vmax.f32 %v6189_v25, 0.0  ;;  %v6190_v28 = vadd.f32 %v14599_v14, %v6168_v55  ;;  %6344 = vst [vmem:[#allocation3 + $0x14] sm:$0xff] %v6328_v59 }
 0x34a   : > { %v6330_v48 = vcombine.low %v6302_v54, %v6303_v42  ;;  %v6206_v36 = vmax.f32 %v6190_v28, 0.0  ;;  %v6306_v50 = vmul.f32 %v6265_v39, %v6205_v47 }
 0x34b   : > { %v6351_v23 = vld [vmem:[#allocation3] sm:$0xff]  ;;  %v14691_v57 = vld [vmem:[#allocation3 + $0x8] sm:$0xff] }
 0x34c   : > { %6346 = vst [vmem:[#allocation3 + $0x24] sm:$0xff] %v6330_v48  ;;  %v6307_v51 = vmul.f32 %v6269_v44, %v6206_v36  ;;  %6387 = vrot.lane.b32.xlu1 %v6351_v23, %s13253_s18  ;;  %6441 = vrot.lane.b32.xlu0 %v6351_v23, %s13252_s17  ;;  %v14695_v33 = vcombine.high %v6351_v23, %v6351_v23  ;;  %v14815_v5 = vld [vmem:[#allocation3 + $0x40] sm:$0xff] }
 0x34d   : > { %v14699_v9 = vcombine.high %v14691_v57, %v14691_v57  ;;  %v14823_v58 = vcombine.high %v14815_v5, %v14815_v5 }
 0x34e   : > { %v6332_v14 = vcombine.low %v6306_v50, %v6307_v51  ;;  %12812 = vmatprep.subr.msk.mxu1 %vm6502_vm10, %v14695_v33 }
 0x34f   : > { %12815 = vmatprep.subr.msk.mxu0 %vm6502_vm10, %v14699_v9  ;;  %12813 = vmatpush1.msk.msra.mxu1 %vm6502_vm10, %v6351_v23  ;;  %v14715_v60 = vld [vmem:[#allocation3 + $0x10] sm:$0xff]  ;;  %v14717_v10 = vld [vmem:[#allocation3 + $0x18] sm:$0xff] }
 0x350   : > { %12816 = vmatpush1.msk.msra.mxu0 %vm6502_vm10, %v14691_v57  ;;  %6348 = vst [vmem:[#allocation3 + $0x34] sm:$0xff] %v6332_v14  ;;  %6445 = vrot.lane.b32.xlu0 %v14691_v57, %s13252_s17  ;;  %v14721_v7 = vcombine.high %v14715_v60, %v14715_v60  ;;  %v14725_v15 = vcombine.high %v14717_v10, %v14717_v10 }
 0x351   : > { %6443 = vrot.lane.b32.xlu1 %v14695_v33, %s13252_s17  ;;  %12814 = vmatmul.mubr.msk.f32.vlgmr.msra.gmra.mxu1 %vm6498_vm11, %v12811_v3 }
 0x352   : > { %12817 = vmatmul.mubr.msk.f32.vlgmr.msra.gmra.mxu0 %vm6498_vm11, %v12811_v3  ;;  %6741 = vmatprep.mubr.f32.mxu1 %v15913_v18 }
 0x353   : > { %6812 = vmatprep.mubr.f32.mxu0 %v15913_v18  ;;  %12818 = vmatprep.subr.msk.mxu1 %vm6502_vm10, %v14721_v7  ;;  %v14735_v31 = vld [vmem:[#allocation3 + $0x20] sm:$0xff]  ;;  %v14737_v2 = vld [vmem:[#allocation3 + $0x28] sm:$0xff] }
 0x354   : > { %12821 = vmatprep.subr.msk.mxu0 %vm6502_vm10, %v14725_v15  ;;  %12819 = vmatpush1.msk.msra.mxu1 %vm6502_vm10, %v14715_v60  ;;  %v14745_v22 = vcombine.high %v14735_v31, %v14735_v31  ;;  %v14749_v20 = vcombine.high %v14737_v2, %v14737_v2 }
 0x355   : > { %12822 = vmatpush1.msk.msra.mxu0 %vm6502_vm10, %v14717_v10  ;;  %6391 = vrot.lane.b32.xlu0 %v14691_v57, %s13253_s18 }
 0x356   : > { %6389 = vrot.lane.b32.xlu1 %v14695_v33, %s13253_s18  ;;  %12824 = vmatprep.subr.msk.mxu1 %vm6502_vm10, %v14745_v22 }
 0x357   : > { %12827 = vmatprep.subr.msk.mxu0 %vm6502_vm10, %v14749_v20  ;;  %12820 = vmatmul.mubr.msk.f32.vlgmr.msra.gmra.mxu1 %vm6498_vm11, %v12811_v3  ;;  %v14761_v49 = vld [vmem:[#allocation3 + $0x30] sm:$0xff]  ;;  %v14763_v26 = vld [vmem:[#allocation3 + $0x38] sm:$0xff] }
 0x358   : > { %12823 = vmatmul.mubr.msk.f32.vlgmr.msra.gmra.mxu0 %vm6498_vm11, %v12811_v3  ;;  %12825 = vmatpush1.msk.msra.mxu1 %vm6502_vm10, %v14735_v31  ;;  %v14771_v45 = vcombine.high %v14761_v49, %v14761_v49  ;;  %v14775_v21 = vcombine.high %v14763_v26, %v14763_v26 }
 0x359   : > { %12828 = vmatpush1.msk.msra.mxu0 %vm6502_vm10, %v14737_v2  ;;  %6395 = vrot.lane.b32.xlu0 %v14715_v60, %s13253_s18 }
 0x35a   : > { %6449 = vrot.lane.b32.xlu1 %v14715_v60, %s13252_s17  ;;  %6883 = vmatprep.mubr.f32.mxu1 %v15913_v18 }
 0x35b   : > { %6954 = vmatprep.mubr.f32.mxu0 %v15913_v18  ;;  %12830 = vmatprep.subr.msk.mxu1 %vm6502_vm10, %v14771_v45 }
 0x35c   : > { %12833 = vmatprep.subr.msk.mxu0 %vm6502_vm10, %v14775_v21  ;;  %12826 = vmatmul.mubr.msk.f32.vlgmr.msra.gmra.mxu1 %vm6498_vm11, %v12811_v3 }
 0x35d   : > { %12829 = vmatmul.mubr.msk.f32.vlgmr.msra.gmra.mxu0 %vm6498_vm11, %v12811_v3  ;;  %12831 = vmatpush1.msk.msra.mxu1 %vm6502_vm10, %v14761_v49 }
 0x35e   : > { %12834 = vmatpush1.msk.msra.mxu0 %vm6502_vm10, %v14763_v26  ;;  %6451 = vrot.lane.b32.xlu0 %v14721_v7, %s13252_s17 }
 0x35f   : > { %6447 = vrot.lane.b32.xlu1 %v14699_v9, %s13252_s17  ;;  %7096 = vmatprep.mubr.f32.mxu0 %v15913_v18 }
 0x360   : > { %7025 = vmatprep.mubr.f32.mxu1 %v15913_v18 }
 0x361   : > { %12835 = vmatmul.mubr.msk.f32.vlgmr.msra.gmra.mxu0 %vm6498_vm11, %v12811_v3  ;;  %12832 = vmatmul.mubr.msk.f32.vlgmr.msra.gmra.mxu1 %vm6498_vm11, %v12811_v3 }
 0x362   : > { %7289 = vmatprep.mubr.f32.mxu0 %v15913_v18  ;;  %7218 = vmatprep.mubr.f32.mxu1 %v15913_v18 }
 0x363   : > { %6455 = vrot.lane.b32.xlu0 %v14725_v15, %s13252_s17  ;;  %6393 = vrot.lane.b32.xlu1 %v14699_v9, %s13253_s18 }
 0x367   : > { %6459 = vrot.lane.b32.xlu0 %v14745_v22, %s13252_s17  ;;  %6453 = vrot.lane.b32.xlu1 %v14717_v10, %s13252_s17 }
 0x36b   : > { %6463 = vrot.lane.b32.xlu0 %v14749_v20, %s13252_s17  ;;  %6457 = vrot.lane.b32.xlu1 %v14735_v31, %s13252_s17 }
 0x36f   : > { %6467 = vrot.lane.b32.xlu0 %v14771_v45, %s13252_s17  ;;  %6461 = vrot.lane.b32.xlu1 %v14737_v2, %s13252_s17 }
 0x373   : > { %6475 = vrot.lane.b32.xlu0 %v14823_v58, %s13252_s17  ;;  %6465 = vrot.lane.b32.xlu1 %v14761_v49, %s13252_s17 }
 0x377   : > { %6397 = vrot.lane.b32.xlu0 %v14721_v7, %s13253_s18  ;;  %6469 = vrot.lane.b32.xlu1 %v14763_v26, %s13252_s17 }
 0x37b   : > { %6401 = vrot.lane.b32.xlu0 %v14725_v15, %s13253_s18  ;;  %6399 = vrot.lane.b32.xlu1 %v14717_v10, %s13253_s18 }
 0x37f   : > { %6471 = vrot.lane.b32.xlu0 %v14775_v21, %s13252_s17  ;;  %6403 = vrot.lane.b32.xlu1 %v14735_v31, %s13253_s18 }
 0x383   : > { %6405 = vrot.lane.b32.xlu0 %v14745_v22, %s13253_s18  ;;  %6407 = vrot.lane.b32.xlu1 %v14737_v2, %s13253_s18 }
 0x387   : > { %6409 = vrot.lane.b32.xlu0 %v14749_v20, %s13253_s18  ;;  %6411 = vrot.lane.b32.xlu1 %v14761_v49, %s13253_s18 }
 0x38b   : > { %6413 = vrot.lane.b32.xlu0 %v14771_v45, %s13253_s18  ;;  %6415 = vrot.lane.b32.xlu1 %v14763_v26, %s13253_s18 }
 0x38f   : > { %6417 = vrot.lane.b32.xlu0 %v14775_v21, %s13253_s18  ;;  %6419 = vrot.lane.b32.xlu1 %v14815_v5, %s13253_s18 }
 0x393   : > { %6473 = vrot.lane.b32.xlu0 %v14815_v5, %s13252_s17  ;;  %6421 = vrot.lane.b32.xlu1 %v14823_v58, %s13253_s18  ;;  %s13174_s17 = scalar_lea.vmem %s15747_s12, 1024  ;;  %s13256_s18 = smov [#allocation7]  }
 0x394   : > { %p13175_p8 = scmp.ne.s32.totalorder %s15747_s12, %s13174_s17  ;;  %s13178_s21 = sshll.u32 %s13256_s18, 4  ;;  %s13179_s21 = int_to_ptr.vmem [resolvable:$false] %s13178_s21 }
 0x395   : > { %s13180_s22 = scalar_lea.vmem %s13179_s21, 2048  ;;  %p13181_p11 = scmp.lt.s32.totalorder %s15747_s12, %s13179_s21 }
 0x396   : > { %p13176_p9 = pnand %p13175_p8, %p13342_p5  ;;  %p13182_p12 = scmp.lt.s32.totalorder %s13180_s22, %s13174_s17 }
 0x398   : > { %p13177_p10 = pneg %p13176_p9  ;;  %p13183_p13 = por %p13182_p12, %p13181_p11 }
 0x39a   : > { %p13184_p0 = pnand %p13183_p13, %p13177_p10 }
 0x3be   : > { %v14861_v40 = vpop.permute.xlu1 %6387  ;;  %v6442_v13 = vpop.permute.xlu0 %6441 }
 0x3c2   : > { %v6446_v37 = vpop.permute.xlu0 %6445 }
 0x3c3   : > { %v6444_v41 = vpop.permute.xlu1 %6443 }
 0x3c4   : > { %v14865_v52 = vsel %vm720_vm8, %v6442_v13, %v6444_v41  ;;  %v14886_v27 = vsel %vm720_vm8, %v6444_v41, %v6446_v37 }
 0x3c5   : > { %12836 = vmatprep.subr.msk.mxu1 %vm6502_vm10, %v14865_v52 }
 0x3c7   : > { %v14869_v19 = vpop.permute.xlu0 %6391 }
 0x3c8   : > { %v14871_v16 = vpop.permute.xlu1 %6389 }
 0x3c9   : > { %v14979_v50 = vsel %vm665_vm9, %v14871_v16, %v14869_v19 }
 0x3cb   : > { %v14873_v6 = vpop.permute.xlu0 %6395 }
 0x3cc   : > { %v6450_v30 = vpop.permute.xlu1 %6449 }
 0x3d0   : > { %v6452_v17 = vpop.permute.xlu0 %6451 }
 0x3d1   : > { %v6448_v46 = vpop.permute.xlu1 %6447  ;;  %v14934_v0 = vsel %vm720_vm8, %v6450_v30, %v6452_v17 }
 0x3d2   : > { %v14877_v1 = vsel %vm720_vm8, %v6446_v37, %v6448_v46  ;;  %v14939_v39 = vsel %vm720_vm8, %v6448_v46, %v6450_v30 }
 0x3d3   : > { %12839 = vmatprep.subr.msk.mxu0 %vm6502_vm10, %v14877_v1 }
 0x3d4   : > { %12840 = vmatpush1.msk.msra.mxu0 %vm6502_vm10, %v14886_v27 }
 0x3d5   : > { %v6456_v53 = vpop.permute.xlu0 %6455  ;;  %v14892_v12 = vpop.permute.xlu1 %6393  ;;  %12841 = vmatmul.mubr.msk.f32.vlgmr.msra.gmra.mxu0 %vm6498_vm11, %v14882_v38 }
 0x3d6   : > { %7431 = vmatprep.mubr.f32.mxu0 %v15913_v18  ;;  %v15011_v37 = vsel %vm665_vm9, %v14892_v12, %v14873_v6  ;;  %v15027_v46 = vsel %vm665_vm9, %v14869_v19, %v14892_v12 }
 0x3d9   : > { %v6460_v29 = vpop.permute.xlu0 %6459  ;;  %v6454_v63 = vpop.permute.xlu1 %6453 }
 0x3da   : > { %v14899_v32 = vsel %vm720_vm8, %v6454_v63, %v6456_v53  ;;  %v14903_v61 = vsel %vm720_vm8, %v6452_v17, %v6454_v63  ;;  %v12860_v17 = vld [vmem:[%s15807_s6 + $0x8] sm:$0xf] }
 0x3db   : > { %12845 = vmatprep.subr.msk.mxu0 %vm6502_vm10, %v14899_v32 }
 0x3dc   : > { %12846 = vmatpush1.msk.msra.mxu0 %vm6502_vm10, %v14903_v61 }
 0x3dd   : > { %v6464_v11 = vpop.permute.xlu0 %6463  ;;  %v6458_v62 = vpop.permute.xlu1 %6457  ;;  %12847 = vmatmul.mubr.msk.f32.vlgmr.msra.gmra.mxu0 %vm6498_vm11, %v14882_v38 }
 0x3de   : > { %7573 = vmatprep.mubr.f32.mxu0 %v15913_v18  ;;  %v14947_v4 = vsel %vm720_vm8, %v6458_v62, %v6460_v29  ;;  %v14956_v42 = vsel %vm720_vm8, %v6456_v53, %v6458_v62 }
 0x3e1   : > { %v6468_v43 = vpop.permute.xlu0 %6467  ;;  %v6462_v34 = vpop.permute.xlu1 %6461 }
 0x3e2   : > { %v14914_v8 = vsel %vm720_vm8, %v6462_v34, %v6464_v11  ;;  %v14918_v56 = vsel %vm720_vm8, %v6460_v29, %v6462_v34 }
 0x3e3   : > { %12851 = vmatprep.subr.msk.mxu0 %vm6502_vm10, %v14914_v8 }
 0x3e4   : > { %12852 = vmatpush1.msk.msra.mxu0 %vm6502_vm10, %v14918_v56 }
 0x3e5   : > { %v14924_v25 = vpop.permute.xlu0 %6475  ;;  %12853 = vmatmul.mubr.msk.f32.vlgmr.msra.gmra.mxu0 %vm6498_vm11, %v14882_v38  ;;  %v6466_v55 = vpop.permute.xlu1 %6465 }
 0x3e6   : > { %v6494_v59 = vsel %vm720_vm8, %v14924_v25, %v6442_v13  ;;  %7715 = vmatprep.mubr.f32.mxu0 %v15913_v18  ;;  %v14962_v47 = vsel %vm720_vm8, %v6466_v55, %v6468_v43  ;;  %v14971_v36 = vsel %vm720_vm8, %v6464_v11, %v6466_v55  ;;  %v6439_v13 = vsel %vm665_vm9, %v14861_v40, %v14871_v16 }
 0x3e7   : > { %12837 = vmatpush1.msk.msra.mxu1 %vm6502_vm10, %v6494_v59 }
 0x3e8   : > { %12838 = vmatmul.mubr.msk.f32.vlgmr.msra.gmra.mxu1 %vm6498_vm11, %v14882_v38  ;;  %12842 = vmatprep.subr.msk.mxu1 %vm6502_vm10, %v14934_v0 }
 0x3e9   : > { %v6398_v44 = vpop.permute.xlu0 %6397  ;;  %v6470_v54 = vpop.permute.xlu1 %6469  ;;  %12843 = vmatpush1.msk.msra.mxu1 %vm6502_vm10, %v14939_v39  ;;  %7360 = vmatprep.mubr.f32.mxu1 %v15913_v18 }
 0x3ea   : > { %12848 = vmatprep.subr.msk.mxu1 %vm6502_vm10, %v14947_v4  ;;  %v14995_v3 = vsel %vm720_vm8, %v6468_v43, %v6470_v54  ;;  %v15043_v19 = vsel %vm665_vm9, %v14873_v6, %v6398_v44 }
 0x3ec   : > { %12844 = vmatmul.mubr.msk.f32.vlgmr.msra.gmra.mxu1 %vm6498_vm11, %v14882_v38 }
 0x3ed   : > { %12849 = vmatpush1.msk.msra.mxu1 %vm6502_vm10, %v14956_v42  ;;  %v6402_v28 = vpop.permute.xlu0 %6401  ;;  %v6400_v48 = vpop.permute.xlu1 %6399  ;;  %7502 = vmatprep.mubr.f32.mxu1 %v15913_v18 }
 0x3ee   : > { %12854 = vmatprep.subr.msk.mxu1 %vm6502_vm10, %v14962_v47  ;;  %v15015_v41 = vsel %vm665_vm9, %v6398_v44, %v6400_v48  ;;  %v15057_v6 = vsel %vm665_vm9, %v6400_v48, %v6402_v28 }
 0x3f0   : > { %12850 = vmatmul.mubr.msk.f32.vlgmr.msra.gmra.mxu1 %vm6498_vm11, %v14882_v38 }
 0x3f1   : > { %12855 = vmatpush1.msk.msra.mxu1 %vm6502_vm10, %v14971_v36  ;;  %v14983_v23 = vpop.permute.xlu0 %6471  ;;  %v6404_v51 = vpop.permute.xlu1 %6403  ;;  %7644 = vmatprep.mubr.f32.mxu1 %v15913_v18 }
 0x3f2   : > { %v14989_v14 = vsel %vm720_vm8, %v6470_v54, %v14983_v23  ;;  %12861 = vmatprep.subr.msk.mxu1 %vm6502_vm10, %v14979_v50 }
 0x3f3   : > { %12857 = vmatprep.subr.msk.mxu0 %vm6502_vm10, %v14989_v14 }
 0x3f4   : > { %12856 = vmatmul.mubr.msk.f32.vlgmr.msra.gmra.mxu1 %vm6498_vm11, %v14882_v38  ;;  %12858 = vmatpush1.msk.msra.mxu0 %vm6502_vm10, %v14995_v3 }
 0x3f5   : > { %12862 = vmatpush1.msk.msra.mxu1 %vm6502_vm10, %v6439_v13  ;;  %v6406_v30 = vpop.permute.xlu0 %6405  ;;  %12859 = vmatmul.mubr.msk.f32.vlgmr.msra.gmra.mxu0 %vm6498_vm11, %v14882_v38  ;;  %v6408_v16 = vpop.permute.xlu1 %6407  ;;  %v15035_v38 = vsel %vm665_vm9, %v6402_v28, %v6404_v51 }
 0x3f6   : > { %12864 = vmatprep.subr.msk.mxu0 %vm6502_vm10, %v15011_v37  ;;  %12867 = vmatprep.subr.msk.mxu1 %vm6502_vm10, %v15015_v41  ;;  %v15050_v53 = vsel %vm665_vm9, %v6406_v30, %v6408_v16  ;;  %v15071_v11 = vsel %vm665_vm9, %v6404_v51, %v6406_v30  ;;  %v12885_v51 = vld [vmem:[%s15807_s6 + $0xc] sm:$0xf] }
 0x3f7   : > { %12865 = vmatpush1.msk.msra.mxu0 %vm6502_vm10, %v15027_v46  ;;  %7839 = vmatprep.mubr.f32.mxu1 %v15913_v18 }
 0x3f8   : > { %12870 = vmatprep.subr.msk.mxu0 %vm6502_vm10, %v15035_v38  ;;  %12863 = vmatmul.mubr.msk.f32.vlgmr.msra.gmra.mxu1 %vm6498_vm11, %v12860_v17 }
 0x3f9   : > { %7910 = vmatprep.mubr.f32.mxu0 %v15913_v18  ;;  %12868 = vmatpush1.msk.msra.mxu1 %vm6502_vm10, %v15043_v19  ;;  %v6410_v12 = vpop.permute.xlu0 %6409  ;;  %v6412_v29 = vpop.permute.xlu1 %6411 }
 0x3fa   : > { %12866 = vmatmul.mubr.msk.f32.vlgmr.msra.gmra.mxu0 %vm6498_vm11, %v12860_v17  ;;  %v15062_v63 = vsel %vm665_vm9, %v6410_v12, %v6412_v29  ;;  %12873 = vmatprep.subr.msk.mxu1 %vm6502_vm10, %v15050_v53  ;;  %v15081_v34 = vsel %vm665_vm9, %v6408_v16, %v6410_v12  ;;  %v12960_v16 = vld [vmem:[%s15807_s6 + $0x18] sm:$0xf] }
 0x3fb   : > { %12871 = vmatpush1.msk.msra.mxu0 %vm6502_vm10, %v15057_v6  ;;  %7981 = vmatprep.mubr.f32.mxu1 %v15913_v18 }
 0x3fc   : > { %12876 = vmatprep.subr.msk.mxu0 %vm6502_vm10, %v15062_v63  ;;  %12869 = vmatmul.mubr.msk.f32.vlgmr.msra.gmra.mxu1 %vm6498_vm11, %v12860_v17 }
 0x3fd   : > { %8052 = vmatprep.mubr.f32.mxu0 %v15913_v18  ;;  %12874 = vmatpush1.msk.msra.mxu1 %vm6502_vm10, %v15071_v11  ;;  %v6414_v62 = vpop.permute.xlu0 %6413  ;;  %v6416_v43 = vpop.permute.xlu1 %6415 }
 0x3fe   : > { %v15085_v55 = vsel %vm665_vm9, %v6412_v29, %v6414_v62  ;;  %12872 = vmatmul.mubr.msk.f32.vlgmr.msra.gmra.mxu0 %vm6498_vm11, %v12860_v17  ;;  %v15090_v59 = vsel %vm665_vm9, %v6414_v62, %v6416_v43  ;;  %8123 = vmatprep.mubr.f32.mxu1 %v15913_v18 }
 0x3ff   : > { %12877 = vmatpush1.msk.msra.mxu0 %vm6502_vm10, %v15081_v34  ;;  %12879 = vmatprep.subr.msk.mxu1 %vm6502_vm10, %v15090_v59 }
 0x400   : > { %12875 = vmatmul.mubr.msk.f32.vlgmr.msra.gmra.mxu1 %vm6498_vm11, %v12860_v17  ;;  %8194 = vmatprep.mubr.f32.mxu0 %v15913_v18 }
 0x401   : > { %12880 = vmatpush1.msk.msra.mxu1 %vm6502_vm10, %v15085_v55  ;;  %v6418_v44 = vpop.permute.xlu0 %6417  ;;  %v15101_v54 = vpop.permute.xlu1 %6419  ;;  %8265 = vmatprep.mubr.f32.mxu1 %v15913_v18 }
 0x402   : > { %v15106_v28 = vsel %vm665_vm9, %v6416_v43, %v6418_v44  ;;  %12878 = vmatmul.mubr.msk.f32.vlgmr.msra.gmra.mxu0 %vm6498_vm11, %v12860_v17  ;;  %v15112_v48 = vsel %vm665_vm9, %v6418_v44, %v15101_v54  ;;  %12886 = vmatprep.subr.msk.mxu1 %vm6502_vm10, %v14886_v27 }
 0x403   : > { %12882 = vmatprep.subr.msk.mxu0 %vm6502_vm10, %v15112_v48  ;;  %8336 = vmatprep.mubr.f32.mxu0 %v15913_v18 }
 0x404   : > { %12881 = vmatmul.mubr.msk.f32.vlgmr.msra.gmra.mxu1 %vm6498_vm11, %v12860_v17  ;;  %12883 = vmatpush1.msk.msra.mxu0 %vm6502_vm10, %v15106_v28 }
 0x405   : > { %12887 = vmatpush1.msk.msra.mxu1 %vm6502_vm10, %v14865_v52  ;;  %12889 = vmatprep.subr.msk.mxu0 %vm6502_vm10, %v14939_v39  ;;  %v15146_v52 = vpop.permute.xlu0 %6473 }
 0x406   : > { %12884 = vmatmul.mubr.msk.f32.vlgmr.msra.gmra.mxu0 %vm6498_vm11, %v12860_v17  ;;  %12892 = vmatprep.subr.msk.mxu1 %vm6502_vm10, %v14903_v61  ;;  %v15160_v13 = vsel %vm720_vm8, %v14983_v23, %v15146_v52  ;;  %v12910_v23 = vld [vmem:[%s15807_s6 + $0x10] sm:$0xf] }
 0x407   : > { %12890 = vmatpush1.msk.msra.mxu0 %vm6502_vm10, %v14877_v1  ;;  %8431 = vmatprep.mubr.f32.mxu1 %v15913_v18 }
 0x408   : > { %12895 = vmatprep.subr.msk.mxu0 %vm6502_vm10, %v14956_v42  ;;  %12888 = vmatmul.mubr.msk.f32.vlgmr.msra.gmra.mxu1 %vm6498_vm11, %v12885_v51 }
 0x409   : > { %8502 = vmatprep.mubr.f32.mxu0 %v15913_v18  ;;  %12893 = vmatpush1.msk.msra.mxu1 %vm6502_vm10, %v14934_v0 }
 0x40a   : > { %12891 = vmatmul.mubr.msk.f32.vlgmr.msra.gmra.mxu0 %vm6498_vm11, %v12885_v51  ;;  %12898 = vmatprep.subr.msk.mxu1 %vm6502_vm10, %v14918_v56 }
 0x40b   : > { %12896 = vmatpush1.msk.msra.mxu0 %vm6502_vm10, %v14899_v32  ;;  %8573 = vmatprep.mubr.f32.mxu1 %v15913_v18 }
 0x40c   : > { %12901 = vmatprep.subr.msk.mxu0 %vm6502_vm10, %v14971_v36  ;;  %12894 = vmatmul.mubr.msk.f32.vlgmr.msra.gmra.mxu1 %vm6498_vm11, %v12885_v51 }
 0x40d   : > { %8644 = vmatprep.mubr.f32.mxu0 %v15913_v18  ;;  %12899 = vmatpush1.msk.msra.mxu1 %vm6502_vm10, %v14947_v4 }
 0x40e   : > { %12897 = vmatmul.mubr.msk.f32.vlgmr.msra.gmra.mxu0 %vm6498_vm11, %v12885_v51  ;;  %12904 = vmatprep.subr.msk.mxu1 %vm6502_vm10, %v14995_v3 }
 0x40f   : > { %12902 = vmatpush1.msk.msra.mxu0 %vm6502_vm10, %v14914_v8  ;;  %8715 = vmatprep.mubr.f32.mxu1 %v15913_v18 }
 0x410   : > { %12907 = vmatprep.subr.msk.mxu0 %vm6502_vm10, %v15160_v13  ;;  %12900 = vmatmul.mubr.msk.f32.vlgmr.msra.gmra.mxu1 %vm6498_vm11, %v12885_v51 }
 0x411   : > { %8786 = vmatprep.mubr.f32.mxu0 %v15913_v18  ;;  %12905 = vmatpush1.msk.msra.mxu1 %vm6502_vm10, %v14962_v47 }
 0x412   : > { %12903 = vmatmul.mubr.msk.f32.vlgmr.msra.gmra.mxu0 %vm6498_vm11, %v12885_v51  ;;  %12911 = vmatprep.subr.msk.mxu1 %vm6502_vm10, %v14691_v57 }
 0x413   : > { %12908 = vmatpush1.msk.msra.mxu0 %vm6502_vm10, %v14989_v14  ;;  %8857 = vmatprep.mubr.f32.mxu1 %v15913_v18 }
 0x414   : > { %12914 = vmatprep.subr.msk.mxu0 %vm6502_vm10, %v14715_v60  ;;  %12906 = vmatmul.mubr.msk.f32.vlgmr.msra.gmra.mxu1 %vm6498_vm11, %v12885_v51 }
 0x415   : > { %8928 = vmatprep.mubr.f32.mxu0 %v15913_v18  ;;  %12912 = vmatpush1.msk.msra.mxu1 %vm6502_vm10, %v14695_v33  ;;  %v12935_v33 = vld [vmem:[%s15807_s6 + $0x14] sm:$0xf] }
 0x416   : > { %12909 = vmatmul.mubr.msk.f32.vlgmr.msra.gmra.mxu0 %vm6498_vm11, %v12885_v51  ;;  %12917 = vmatprep.subr.msk.mxu1 %vm6502_vm10, %v14717_v10 }
 0x417   : > { %12915 = vmatpush1.msk.msra.mxu0 %vm6502_vm10, %v14699_v9  ;;  %9022 = vmatprep.mubr.f32.mxu1 %v15913_v18 }
 0x418   : > { %12920 = vmatprep.subr.msk.mxu0 %vm6502_vm10, %v14735_v31  ;;  %12913 = vmatmul.mubr.msk.f32.vlgmr.msra.gmra.mxu1 %vm6498_vm11, %v12910_v23 }
 0x419   : > { %9093 = vmatprep.mubr.f32.mxu0 %v15913_v18  ;;  %12918 = vmatpush1.msk.msra.mxu1 %vm6502_vm10, %v14721_v7 }
 0x41a   : > { %12916 = vmatmul.mubr.msk.f32.vlgmr.msra.gmra.mxu0 %vm6498_vm11, %v12910_v23  ;;  %12923 = vmatprep.subr.msk.mxu1 %vm6502_vm10, %v14737_v2 }
 0x41b   : > { %12921 = vmatpush1.msk.msra.mxu0 %vm6502_vm10, %v14725_v15  ;;  %9164 = vmatprep.mubr.f32.mxu1 %v15913_v18 }
 0x41c   : > { %12926 = vmatprep.subr.msk.mxu0 %vm6502_vm10, %v14761_v49  ;;  %12919 = vmatmul.mubr.msk.f32.vlgmr.msra.gmra.mxu1 %vm6498_vm11, %v12910_v23 }
 0x41d   : > { %9235 = vmatprep.mubr.f32.mxu0 %v15913_v18  ;;  %12924 = vmatpush1.msk.msra.mxu1 %vm6502_vm10, %v14745_v22 }
 0x41e   : > { %12922 = vmatmul.mubr.msk.f32.vlgmr.msra.gmra.mxu0 %vm6498_vm11, %v12910_v23  ;;  %12929 = vmatprep.subr.msk.mxu1 %vm6502_vm10, %v14763_v26 }
 0x41f   : > { %12927 = vmatpush1.msk.msra.mxu0 %vm6502_vm10, %v14749_v20  ;;  %9306 = vmatprep.mubr.f32.mxu1 %v15913_v18 }
 0x420   : > { %12932 = vmatprep.subr.msk.mxu0 %vm6502_vm10, %v14815_v5  ;;  %12925 = vmatmul.mubr.msk.f32.vlgmr.msra.gmra.mxu1 %vm6498_vm11, %v12910_v23 }
 0x421   : > { %9377 = vmatprep.mubr.f32.mxu0 %v15913_v18  ;;  %12930 = vmatpush1.msk.msra.mxu1 %vm6502_vm10, %v14771_v45 }
 0x422   : > { %12928 = vmatmul.mubr.msk.f32.vlgmr.msra.gmra.mxu0 %vm6498_vm11, %v12910_v23  ;;  %12936 = vmatprep.subr.msk.mxu1 %vm6502_vm10, %v15027_v46 }
 0x423   : > { %12933 = vmatpush1.msk.msra.mxu0 %vm6502_vm10, %v14775_v21  ;;  %9448 = vmatprep.mubr.f32.mxu1 %v15913_v18 }
 0x424   : > { %12939 = vmatprep.subr.msk.mxu0 %vm6502_vm10, %v15043_v19  ;;  %12931 = vmatmul.mubr.msk.f32.vlgmr.msra.gmra.mxu1 %vm6498_vm11, %v12910_v23 }
 0x425   : > { %9519 = vmatprep.mubr.f32.mxu0 %v15913_v18  ;;  %12937 = vmatpush1.msk.msra.mxu1 %vm6502_vm10, %v14979_v50  ;;  %v15256_v50 = vpop.permute.xlu1 %6421 }
 0x426   : > { %12934 = vmatmul.mubr.msk.f32.vlgmr.msra.gmra.mxu0 %vm6498_vm11, %v12910_v23  ;;  %12942 = vmatprep.subr.msk.mxu1 %vm6502_vm10, %v15057_v6  ;;  %v15270_v30 = vsel %vm665_vm9, %v15101_v54, %v15256_v50 }
 0x427   : > { %12940 = vmatpush1.msk.msra.mxu0 %vm6502_vm10, %v15011_v37  ;;  %9614 = vmatprep.mubr.f32.mxu1 %v15913_v18 }
 0x428   : > { %12945 = vmatprep.subr.msk.mxu0 %vm6502_vm10, %v15071_v11  ;;  %12938 = vmatmul.mubr.msk.f32.vlgmr.msra.gmra.mxu1 %vm6498_vm11, %v12935_v33 }
 0x429   : > { %9685 = vmatprep.mubr.f32.mxu0 %v15913_v18  ;;  %12943 = vmatpush1.msk.msra.mxu1 %vm6502_vm10, %v15015_v41 }
 0x42a   : > { %12941 = vmatmul.mubr.msk.f32.vlgmr.msra.gmra.mxu0 %vm6498_vm11, %v12935_v33  ;;  %12948 = vmatprep.subr.msk.mxu1 %vm6502_vm10, %v15081_v34 }
 0x42b   : > { %12946 = vmatpush1.msk.msra.mxu0 %vm6502_vm10, %v15035_v38  ;;  %9756 = vmatprep.mubr.f32.mxu1 %v15913_v18 }
 0x42c   : > { %12951 = vmatprep.subr.msk.mxu0 %vm6502_vm10, %v15085_v55  ;;  %12944 = vmatmul.mubr.msk.f32.vlgmr.msra.gmra.mxu1 %vm6498_vm11, %v12935_v33 }
 0x42d   : > { %9827 = vmatprep.mubr.f32.mxu0 %v15913_v18  ;;  %12949 = vmatpush1.msk.msra.mxu1 %vm6502_vm10, %v15050_v53 }
 0x42e   : > { %12947 = vmatmul.mubr.msk.f32.vlgmr.msra.gmra.mxu0 %vm6498_vm11, %v12935_v33  ;;  %12954 = vmatprep.subr.msk.mxu1 %vm6502_vm10, %v15106_v28 }
 0x42f   : > { %12952 = vmatpush1.msk.msra.mxu0 %vm6502_vm10, %v15062_v63  ;;  %9898 = vmatprep.mubr.f32.mxu1 %v15913_v18 }
 0x430   : > { %12957 = vmatprep.subr.msk.mxu0 %vm6502_vm10, %v15270_v30  ;;  %12950 = vmatmul.mubr.msk.f32.vlgmr.msra.gmra.mxu1 %vm6498_vm11, %v12935_v33 }
 0x431   : > { %9969 = vmatprep.mubr.f32.mxu0 %v15913_v18  ;;  %12955 = vmatpush1.msk.msra.mxu1 %vm6502_vm10, %v15090_v59 }
 0x432   : > { %12953 = vmatmul.mubr.msk.f32.vlgmr.msra.gmra.mxu0 %vm6498_vm11, %v12935_v33  ;;  %12961 = vmatprep.subr.msk.mxu1 %vm6502_vm10, %v14877_v1  ;;  %v6477_v1 = vsel %vm720_vm8, %v15146_v52, %v14924_v25 }
 0x433   : > { %12958 = vmatpush1.msk.msra.mxu0 %vm6502_vm10, %v15112_v48  ;;  %10040 = vmatprep.mubr.f32.mxu1 %v15913_v18 }
 0x434   : > { %12964 = vmatprep.subr.msk.mxu0 %vm6502_vm10, %v14934_v0  ;;  %12956 = vmatmul.mubr.msk.f32.vlgmr.msra.gmra.mxu1 %vm6498_vm11, %v12935_v33 }
 0x435   : > { %10111 = vmatprep.mubr.f32.mxu0 %v15913_v18  ;;  %12962 = vmatpush1.msk.msra.mxu1 %vm6502_vm10, %v14886_v27  ;;  %v12985_v27 = vld [vmem:[%s15807_s6 + $0x1c] sm:$0xf] }
 0x436   : > { %12959 = vmatmul.mubr.msk.f32.vlgmr.msra.gmra.mxu0 %vm6498_vm11, %v12935_v33  ;;  %12967 = vmatprep.subr.msk.mxu1 %vm6502_vm10, %v14899_v32 }
 0x437   : > { %12965 = vmatpush1.msk.msra.mxu0 %vm6502_vm10, %v14939_v39  ;;  %10206 = vmatprep.mubr.f32.mxu1 %v15913_v18 }
 0x438   : > { %12970 = vmatprep.subr.msk.mxu0 %vm6502_vm10, %v14947_v4  ;;  %12963 = vmatmul.mubr.msk.f32.vlgmr.msra.gmra.mxu1 %vm6498_vm11, %v12960_v16 }
 0x439   : > { %10277 = vmatprep.mubr.f32.mxu0 %v15913_v18  ;;  %12968 = vmatpush1.msk.msra.mxu1 %vm6502_vm10, %v14903_v61 }
 0x43a   : > { %12966 = vmatmul.mubr.msk.f32.vlgmr.msra.gmra.mxu0 %vm6498_vm11, %v12960_v16  ;;  %12973 = vmatprep.subr.msk.mxu1 %vm6502_vm10, %v14914_v8 }
 0x43b   : > { %12971 = vmatpush1.msk.msra.mxu0 %vm6502_vm10, %v14956_v42  ;;  %10348 = vmatprep.mubr.f32.mxu1 %v15913_v18 }
 0x43c   : > { %12976 = vmatprep.subr.msk.mxu0 %vm6502_vm10, %v14962_v47  ;;  %12969 = vmatmul.mubr.msk.f32.vlgmr.msra.gmra.mxu1 %vm6498_vm11, %v12960_v16 }
 0x43d   : > { %10419 = vmatprep.mubr.f32.mxu0 %v15913_v18  ;;  %12974 = vmatpush1.msk.msra.mxu1 %vm6502_vm10, %v14918_v56 }
 0x43e   : > { %12972 = vmatmul.mubr.msk.f32.vlgmr.msra.gmra.mxu0 %vm6498_vm11, %v12960_v16  ;;  %12979 = vmatprep.subr.msk.mxu1 %vm6502_vm10, %v14989_v14 }
 0x43f   : > { %12977 = vmatpush1.msk.msra.mxu0 %vm6502_vm10, %v14971_v36  ;;  %10490 = vmatprep.mubr.f32.mxu1 %v15913_v18 }
 0x440   : > { %12982 = vmatprep.subr.msk.mxu0 %vm6502_vm10, %v6477_v1  ;;  %12975 = vmatmul.mubr.msk.f32.vlgmr.msra.gmra.mxu1 %vm6498_vm11, %v12960_v16 }
 0x441   : > { %10561 = vmatprep.mubr.f32.mxu0 %v15913_v18  ;;  %12980 = vmatpush1.msk.msra.mxu1 %vm6502_vm10, %v14995_v3 }
 0x442   : > { %12978 = vmatmul.mubr.msk.f32.vlgmr.msra.gmra.mxu0 %vm6498_vm11, %v12960_v16  ;;  %12986 = vmatprep.subr.msk.mxu1 %vm6502_vm10, %v14699_v9  ;;  %v6440_v9 = vsel %vm665_vm9, %v15256_v50, %v14861_v40 }
 0x443   : > { %12983 = vmatpush1.msk.msra.mxu0 %vm6502_vm10, %v15160_v13  ;;  %10632 = vmatprep.mubr.f32.mxu1 %v15913_v18 }
 0x444   : > { %12989 = vmatprep.subr.msk.mxu0 %vm6502_vm10, %v14721_v7  ;;  %12981 = vmatmul.mubr.msk.f32.vlgmr.msra.gmra.mxu1 %vm6498_vm11, %v12960_v16 }
 0x445   : > { %10703 = vmatprep.mubr.f32.mxu0 %v15913_v18  ;;  %12987 = vmatpush1.msk.msra.mxu1 %vm6502_vm10, %v14691_v57  ;;  %v13010_v57 = vld [vmem:[%s15807_s6 + $0x20] sm:$0xf] }
 0x446   : > { %12984 = vmatmul.mubr.msk.f32.vlgmr.msra.gmra.mxu0 %vm6498_vm11, %v12960_v16  ;;  %12992 = vmatprep.subr.msk.mxu1 %vm6502_vm10, %v14725_v15  ;;  %v6601_v15 = vpop.f32.mrf.mxu1 }
 0x447   : > { %12990 = vmatpush1.msk.msra.mxu0 %vm6502_vm10, %v14715_v60  ;;  %10797 = vmatprep.mubr.f32.mxu1 %v15913_v18  ;;  %v11909_v60 = vld [vmem:[%s15808_s7] sm:$0xf] }
 0x448   : > { %12995 = vmatprep.subr.msk.mxu0 %vm6502_vm10, %v14745_v22  ;;  %12988 = vmatmul.mubr.msk.f32.vlgmr.msra.gmra.mxu1 %vm6498_vm11, %v12985_v27 }
 0x449   : > { %10868 = vmatprep.mubr.f32.mxu0 %v15913_v18  ;;  %12993 = vmatpush1.msk.msra.mxu1 %vm6502_vm10, %v14717_v10  ;;  %v6672_v10 = vpop.f32.mrf.mxu0 }
 0x44a   : > { %12991 = vmatmul.mubr.msk.f32.vlgmr.msra.gmra.mxu0 %vm6498_vm11, %v12985_v27  ;;  %12998 = vmatprep.subr.msk.mxu1 %vm6502_vm10, %v14749_v20 }
 0x44b   : > { %12996 = vmatpush1.msk.msra.mxu0 %vm6502_vm10, %v14735_v31  ;;  %10939 = vmatprep.mubr.f32.mxu1 %v15913_v18  ;;  %v6674_v7 = vpop.f32.mrf.mxu0 }
 0x44c   : > { %13001 = vmatprep.subr.msk.mxu0 %vm6502_vm10, %v14771_v45  ;;  %12994 = vmatmul.mubr.msk.f32.vlgmr.msra.gmra.mxu1 %vm6498_vm11, %v12985_v27 }
 0x44d   : > { %11010 = vmatprep.mubr.f32.mxu0 %v15913_v18  ;;  %12999 = vmatpush1.msk.msra.mxu1 %vm6502_vm10, %v14737_v2  ;;  %v6814_v31 = vpop.f32.mrf.mxu0  ;;  %v6603_v2 = vpop.f32.mrf.mxu1 }
 0x44e   : > { %12997 = vmatmul.mubr.msk.f32.vlgmr.msra.gmra.mxu0 %vm6498_vm11, %v12985_v27  ;;  %13004 = vmatprep.subr.msk.mxu1 %vm6502_vm10, %v14775_v21 }
 0x44f   : > { %13002 = vmatpush1.msk.msra.mxu0 %vm6502_vm10, %v14761_v49  ;;  %11081 = vmatprep.mubr.f32.mxu1 %v15913_v18  ;;  %v6816_v22 = vpop.f32.mrf.mxu0  ;;  %v6743_v20 = vpop.f32.mrf.mxu1 }
 0x450   : > { %13007 = vmatprep.subr.msk.mxu0 %vm6502_vm10, %v14823_v58  ;;  %13000 = vmatmul.mubr.msk.f32.vlgmr.msra.gmra.mxu1 %vm6498_vm11, %v12985_v27 }
 0x451   : > { %11152 = vmatprep.mubr.f32.mxu0 %v15913_v18  ;;  %13005 = vmatpush1.msk.msra.mxu1 %vm6502_vm10, %v14763_v26  ;;  %v6956_v49 = vpop.f32.mrf.mxu0  ;;  %v6745_v26 = vpop.f32.mrf.mxu1 }
 0x452   : > { %13003 = vmatmul.mubr.msk.f32.vlgmr.msra.gmra.mxu0 %vm6498_vm11, %v12985_v27  ;;  %13011 = vmatprep.subr.msk.mxu1 %vm6502_vm10, %v15011_v37 }
 0x453   : > { %13008 = vmatpush1.msk.msra.mxu0 %vm6502_vm10, %v14815_v5  ;;  %11223 = vmatprep.mubr.f32.mxu1 %v15913_v18  ;;  %v6958_v45 = vpop.f32.mrf.mxu0  ;;  %v6885_v21 = vpop.f32.mrf.mxu1 }
 0x454   : > { %13014 = vmatprep.subr.msk.mxu0 %vm6502_vm10, %v15015_v41  ;;  %13006 = vmatmul.mubr.msk.f32.vlgmr.msra.gmra.mxu1 %vm6498_vm11, %v12985_v27 }
 0x455   : > { %11294 = vmatprep.mubr.f32.mxu0 %v15913_v18  ;;  %13012 = vmatpush1.msk.msra.mxu1 %vm6502_vm10, %v15027_v46  ;;  %v7098_v5 = vpop.f32.mrf.mxu0  ;;  %v6887_v58 = vpop.f32.mrf.mxu1 }
 0x456   : > { %13009 = vmatmul.mubr.msk.f32.vlgmr.msra.gmra.mxu0 %vm6498_vm11, %v12985_v27  ;;  %13017 = vmatprep.subr.msk.mxu1 %vm6502_vm10, %v15035_v38 }
 0x457   : > { %13015 = vmatpush1.msk.msra.mxu0 %vm6502_vm10, %v15043_v19  ;;  %11389 = vmatprep.mubr.f32.mxu1 %v15913_v18  ;;  %v7100_v40 = vpop.f32.mrf.mxu0 }
 0x458   : > { %13020 = vmatprep.subr.msk.mxu0 %vm6502_vm10, %v15050_v53  ;;  %13013 = vmatmul.mubr.msk.f32.vlgmr.msra.gmra.mxu1 %vm6498_vm11, %v13010_v57 }
 0x459   : > { %11460 = vmatprep.mubr.f32.mxu0 %v15913_v18  ;;  %13018 = vmatpush1.msk.msra.mxu1 %vm6502_vm10, %v15057_v6 }
 0x45a   : > { %13016 = vmatmul.mubr.msk.f32.vlgmr.msra.gmra.mxu0 %vm6498_vm11, %v13010_v57  ;;  %13023 = vmatprep.subr.msk.mxu1 %vm6502_vm10, %v15062_v63 }
 0x45b   : > { %13021 = vmatpush1.msk.msra.mxu0 %vm6502_vm10, %v15071_v11  ;;  %11531 = vmatprep.mubr.f32.mxu1 %v15913_v18 }
 0x45c   : > { %13026 = vmatprep.subr.msk.mxu0 %vm6502_vm10, %v15090_v59  ;;  %13019 = vmatmul.mubr.msk.f32.vlgmr.msra.gmra.mxu1 %vm6498_vm11, %v13010_v57 }
 0x45d   : > { %11602 = vmatprep.mubr.f32.mxu0 %v15913_v18  ;;  %13024 = vmatpush1.msk.msra.mxu1 %vm6502_vm10, %v15081_v34 }
 0x45e   : > { %13022 = vmatmul.mubr.msk.f32.vlgmr.msra.gmra.mxu0 %vm6498_vm11, %v13010_v57  ;;  %13029 = vmatprep.subr.msk.mxu1 %vm6502_vm10, %v15112_v48 }
 0x45f   : > { %13027 = vmatpush1.msk.msra.mxu0 %vm6502_vm10, %v15085_v55  ;;  %11673 = vmatprep.mubr.f32.mxu1 %v15913_v18 }
 0x460   : > { %13032 = vmatprep.subr.msk.mxu0 %vm6502_vm10, %v6440_v9  ;;  %13025 = vmatmul.mubr.msk.f32.vlgmr.msra.gmra.mxu1 %vm6498_vm11, %v13010_v57 }
 0x461   : > { %11744 = vmatprep.mubr.f32.mxu0 %v15913_v18  ;;  %13030 = vmatpush1.msk.msra.mxu1 %vm6502_vm10, %v15106_v28 }
 0x462   : > { %13028 = vmatmul.mubr.msk.f32.vlgmr.msra.gmra.mxu0 %vm6498_vm11, %v13010_v57  ;;  %11815 = vmatprep.mubr.f32.mxu1 %v15913_v18 }
 0x463   : > { %13033 = vmatpush1.msk.msra.mxu0 %vm6502_vm10, %v15270_v30  ;;  %11886 = vmatprep.mubr.f32.mxu0 %v15913_v18  ;;  %v7027_v18 = vpop.f32.mrf.mxu1 }
 0x464   : > { %11912 = vperm.xlu0 %13138, %v11909_v60   ;;  %13031 = vmatmul.mubr.msk.f32.vlgmr.msra.gmra.mxu1 %vm6498_vm11, %v13010_v57 }
 0x465   : > { %v7029_v32 = vpop.f32.mrf.mxu1 }
 0x466   : > { %13034 = vmatmul.mubr.msk.f32.vlgmr.msra.gmra.mxu0 %vm6498_vm11, %v13010_v57 }
 0x495   : > { %v7291_v35 = vpop.f32.mrf.mxu0 }
 0x496   : > { %v7292_v12 = vadd.f32 %v7291_v35, %v6672_v10 }
 0x497   : > { %v7293_v61 = vpop.f32.mrf.mxu0 }
 0x498   : > { %v7294_v62 = vadd.f32 %v7293_v61, %v6674_v7 }
 0x49d   : > { %v7433_v56 = vpop.f32.mrf.mxu0 }
 0x49e   : > { %v7434_v54 = vadd.f32 %v7433_v56, %v6814_v31 }
 0x49f   : > { %v7435_v39 = vpop.f32.mrf.mxu0 }
 0x4a0   : > { %v7436_v23 = vadd.f32 %v7435_v39, %v6816_v22 }
 0x4a5   : > { %v7575_v42 = vpop.f32.mrf.mxu0 }
 0x4a6   : > { %v7576_v27 = vadd.f32 %v7575_v42, %v6956_v49 }
 0x4a7   : > { %v7577_v14 = vpop.f32.mrf.mxu0 }
 0x4a8   : > { %v7220_v8 = vpop.f32.mrf.mxu1 }
 0x4a9   : > { %v7221_v17 = vadd.f32 %v7220_v8, %v6601_v15  ;;  %v7578_v15 = vadd.f32 %v7577_v14, %v6958_v45 }
 0x4aa   : > { %v7222_v25 = vpop.f32.mrf.mxu1 }
 0x4ab   : > { %v7223_v29 = vadd.f32 %v7222_v25, %v6603_v2 }
 0x4ac   : > { %v7362_v0 = vpop.f32.mrf.mxu1 }
 0x4ad   : > { %v7363_v43 = vadd.f32 %v7362_v0, %v6743_v20 }
 0x4ae   : > { %v7364_v4 = vpop.f32.mrf.mxu1 }
 0x4af   : > { %v7365_v28 = vadd.f32 %v7364_v4, %v6745_v26 }
 0x4b0   : > { %v7504_v47 = vpop.f32.mrf.mxu1 }
 0x4b1   : > { %v7505_v33 = vadd.f32 %v7504_v47, %v6885_v21 }
 0x4b2   : > { %v7506_v36 = vpop.f32.mrf.mxu1 }
 0x4b3   : > { %v7507_v57 = vadd.f32 %v7506_v36, %v6887_v58 }
 0x4b4   : > { %v7646_v3 = vpop.f32.mrf.mxu1 }
 0x4b5   : > { %v7717_v37 = vpop.f32.mrf.mxu0  ;;  %v7647_v2 = vadd.f32 %v7646_v3, %v7027_v18 }
 0x4b6   : > { %v7648_v41 = vpop.f32.mrf.mxu1  ;;  %v7718_v35 = vadd.f32 %v7717_v37, %v7098_v5 }
 0x4b7   : > { %v7649_v46 = vadd.f32 %v7648_v41, %v7029_v32  ;;  %v7719_v38 = vpop.f32.mrf.mxu0 }
 0x4b8   : > { %v7720_v19 = vadd.f32 %v7719_v38, %v7100_v40  ;;  %v7841_v53 = vpop.f32.mrf.mxu1 }
 0x4b9   : > { %v8343_v6 = vadd.f32 %v7841_v53, %v7221_v17 }
 0x4ba   : > { %v7912_v63 = vpop.f32.mrf.mxu0  ;;  %v7843_v11 = vpop.f32.mrf.mxu1 }
 0x4bb   : > { %v8345_v34 = vadd.f32 %v7912_v63, %v7292_v12  ;;  %v8344_v55 = vadd.f32 %v7843_v11, %v7223_v29 }
 0x4bc   : > { %v7914_v59 = vpop.f32.mrf.mxu0  ;;  %v7983_v44 = vpop.f32.mrf.mxu1 }
 0x4bd   : > { %v8346_v48 = vadd.f32 %v7914_v59, %v7294_v62  ;;  %v8347_v51 = vadd.f32 %v7983_v44, %v7363_v43 }
 0x4be   : > { %v8054_v52 = vpop.f32.mrf.mxu0  ;;  %v7985_v13 = vpop.f32.mrf.mxu1 }
 0x4bf   : > { %v8349_v50 = vadd.f32 %v8054_v52, %v7434_v54  ;;  %v8348_v30 = vadd.f32 %v7985_v13, %v7365_v28 }
 0x4c0   : > { %v8056_v16 = vpop.f32.mrf.mxu0  ;;  %v8125_v1 = vpop.f32.mrf.mxu1 }
 0x4c1   : > { %v8350_v9 = vadd.f32 %v8056_v16, %v7436_v23  ;;  %v8351_v60 = vadd.f32 %v8125_v1, %v7505_v33 }
 0x4c2   : > { %v8196_v10 = vpop.f32.mrf.mxu0  ;;  %v8127_v7 = vpop.f32.mrf.mxu1 }
 0x4c3   : > { %v8353_v31 = vadd.f32 %v8196_v10, %v7576_v27  ;;  %v8352_v20 = vadd.f32 %v8127_v7, %v7507_v57 }
 0x4c4   : > { %v8198_v26 = vpop.f32.mrf.mxu0  ;;  %v8267_v40 = vpop.f32.mrf.mxu1 }
 0x4c5   : > { %v8354_v32 = vadd.f32 %v8198_v26, %v7578_v15  ;;  %v8355_v22 = vadd.f32 %v8267_v40, %v7647_v2 }
 0x4c6   : > { %v8338_v21 = vpop.f32.mrf.mxu0  ;;  %v8269_v61 = vpop.f32.mrf.mxu1 }
 0x4c7   : > { %v8357_v8 = vadd.f32 %v8338_v21, %v7718_v35  ;;  %v8356_v56 = vadd.f32 %v8269_v61, %v7649_v46 }
 0x4c8   : > { %v8340_v25 = vpop.f32.mrf.mxu0  ;;  %v8433_v58 = vpop.f32.mrf.mxu1 }
 0x4c9   : > { %v8358_v49 = vadd.f32 %v8340_v25, %v7720_v19  ;;  %v15452_v0 = vadd.f32 %v8433_v58, %v8343_v6 }
 0x4ca   : > { %v8504_v39 = vpop.f32.mrf.mxu0  ;;  %v8435_v45 = vpop.f32.mrf.mxu1 }
 0x4cb   : > { %v15454_v4 = vadd.f32 %v8504_v39, %v8345_v34  ;;  %v15456_v18 = vadd.f32 %v8435_v45, %v8344_v55 }
 0x4cc   : > { %v8506_v42 = vpop.f32.mrf.mxu0  ;;  %v8575_v5 = vpop.f32.mrf.mxu1 }
 0x4cd   : > { %v15458_v47 = vadd.f32 %v8506_v42, %v8346_v48  ;;  %v15460_v36 = vadd.f32 %v8575_v5, %v8347_v51 }
 0x4ce   : > { %v8646_v14 = vpop.f32.mrf.mxu0  ;;  %v8577_v37 = vpop.f32.mrf.mxu1 }
 0x4cf   : > { %v15462_v3 = vadd.f32 %v8646_v14, %v8349_v50  ;;  %v15464_v41 = vadd.f32 %v8577_v37, %v8348_v30 }
 0x4d0   : > { %v8648_v17 = vpop.f32.mrf.mxu0  ;;  %v8717_v38 = vpop.f32.mrf.mxu1 }
 0x4d1   : > { %v15466_v46 = vadd.f32 %v8648_v17, %v8350_v9  ;;  %v8943_v19 = vadd.f32 %v8717_v38, %v8351_v60 }
 0x4d2   : > { %v8788_v53 = vpop.f32.mrf.mxu0  ;;  %v8719_v29 = vpop.f32.mrf.mxu1 }
 0x4d3   : > { %v8945_v12 = vadd.f32 %v8788_v53, %v8353_v31  ;;  %v8944_v6 = vadd.f32 %v8719_v29, %v8352_v20 }
 0x4d4   : > { %v8790_v63 = vpop.f32.mrf.mxu0  ;;  %v8859_v62 = vpop.f32.mrf.mxu1 }
 0x4d5   : > { %v8946_v11 = vadd.f32 %v8790_v63, %v8354_v32  ;;  %v8947_v43 = vadd.f32 %v8859_v62, %v8355_v22 }
 0x4d6   : > { %v8930_v34 = vpop.f32.mrf.mxu0  ;;  %v8861_v59 = vpop.f32.mrf.mxu1 }
 0x4d7   : > { %v8949_v55 = vadd.f32 %v8930_v34, %v8357_v8  ;;  %v8948_v44 = vadd.f32 %v8861_v59, %v8356_v56 }
 0x4d8   : > { %v8932_v54 = vpop.f32.mrf.mxu0  ;;  %v15468_v48 = vpop.f32.mrf.mxu1 }
 0x4d9   : > { %v8950_v28 = vadd.f32 %v8932_v54, %v8358_v49  ;;  %v13255_v54 = vmov 1966171168  }
 0x4da   : > { %v15470_v51 = vpop.f32.mrf.mxu0  ;;  %v15472_v52 = vpop.f32.mrf.mxu1 }
 0x4dc   : > { %v15474_v13 = vpop.f32.mrf.mxu0  ;;  %v15476_v23 = vpop.f32.mrf.mxu1 }
 0x4de   : > { %v15478_v33 = vpop.f32.mrf.mxu0  ;;  %v15480_v50 = vpop.f32.mrf.mxu1 }
 0x4e0   : > { %v15482_v30 = vpop.f32.mrf.mxu0  ;;  %v9308_v16 = vpop.f32.mrf.mxu1 }
 0x4e1   : > { %v15484_v1 = vadd.f32 %v9308_v16, %v8943_v19 }
 0x4e2   : > { %v9379_v27 = vpop.f32.mrf.mxu0  ;;  %v9310_v9 = vpop.f32.mrf.mxu1 }
 0x4e3   : > { %15915 = vst [vmem:[#allocation11_spill] sm:$0xff] %v15484_v1  ;;  %v15486_v57 = vadd.f32 %v9379_v27, %v8945_v12  ;;  %v15488_v60 = vadd.f32 %v9310_v9, %v8944_v6 }
 0x4e4   : > { %v9381_v10 = vpop.f32.mrf.mxu0  ;;  %v9450_v15 = vpop.f32.mrf.mxu1 }
 0x4e5   : > { %15916 = vst [vmem:[#allocation14_spill] sm:$0xff] %v15486_v57  ;;  %15917 = vst [vmem:[#allocation15_spill] sm:$0xff] %v15488_v60  ;;  %v15490_v7 = vadd.f32 %v9381_v10, %v8946_v11  ;;  %v15492_v2 = vadd.f32 %v9450_v15, %v8947_v43  ;;  %v9530_v57 = vadd.f32 %v15476_v23, %v15460_v36 }
 0x4e6   : > { %v9521_v31 = vpop.f32.mrf.mxu0  ;;  %v9452_v26 = vpop.f32.mrf.mxu1 }
 0x4e7   : > { %15918 = vst [vmem:[#allocation16_spill] sm:$0xff] %v15490_v7  ;;  %15919 = vst [vmem:[#allocation30_spill] sm:$0xff] %v15492_v2  ;;  %v15494_v20 = vadd.f32 %v9521_v31, %v8949_v55  ;;  %v15496_v40 = vadd.f32 %v9452_v26, %v8948_v44  ;;  %v9526_v2 = vadd.f32 %v15468_v48, %v15452_v0 }
 0x4e8   : > { %v9523_v35 = vpop.f32.mrf.mxu0  ;;  %v9616_v22 = vpop.f32.mrf.mxu1  ;;  %v9528_v7 = vadd.f32 %v15470_v51, %v15454_v4  ;;  %v9533_v0 = vadd.f32 %v15482_v30, %v15466_v46 }
 0x4e9   : > { %15920 = vst [vmem:[#allocation12_spill] sm:$0xff] %v15494_v20  ;;  %15921 = vst [vmem:[#allocation17_spill] sm:$0xff] %v15496_v40  ;;  %v15498_v32 = vadd.f32 %v9523_v35, %v8950_v28  ;;  %v11949_v28 = vunpack.c.l.s4 %v13255_v54  ;;  %v9527_v54 = vadd.f32 %v15472_v52, %v15456_v18  ;;  %v10118_v48 = vadd.f32 %v9616_v22, %v9526_v2 }
 0x4ea   : > { %v9687_v21 = vpop.f32.mrf.mxu0  ;;  %v9618_v61 = vpop.f32.mrf.mxu1 }
 0x4eb   : > { %15922 = vst [vmem:[#allocation18_spill] sm:$0xff] %v15498_v32  ;;  %v11950_v15 = vunpack.c.0.s8 %v11949_v28  ;;  %v9529_v28 = vadd.f32 %v15474_v13, %v15458_v47  ;;  %v10120_v51 = vadd.f32 %v9687_v21, %v9528_v7  ;;  %v10119_v18 = vadd.f32 %v9618_v61, %v9527_v54 }
 0x4ec   : > { %v9689_v8 = vpop.f32.mrf.mxu0  ;;  %v9758_v56 = vpop.f32.mrf.mxu1  ;;  %v15926_v30 = vld [vmem:[#allocation15_spill] sm:$0xff] }
 0x4ed   : > { %v15501_v40 = vsub.s32 %v11950_v15, %v14434_v24  ;;  %v9532_v24 = vadd.f32 %v15478_v33, %v15462_v3  ;;  %v9531_v15 = vadd.f32 %v15480_v50, %v15464_v41  ;;  %v10121_v52 = vadd.f32 %v9689_v8, %v9529_v28  ;;  %v15924_v3 = vld [vmem:[#allocation11_spill] sm:$0xff]  ;;  %v15925_v41 = vld [vmem:[#allocation14_spill] sm:$0xff] }
 0x4ee   : > { %v9829_v25 = vpop.f32.mrf.mxu0  ;;  %v9760_v49 = vpop.f32.mrf.mxu1  ;;  %v10122_v47 = vadd.f32 %v9758_v56, %v9530_v57  ;;  %v15927_v2 = vld [vmem:[#allocation16_spill] sm:$0xff]  ;;  %v15928_v21 = vld [vmem:[#allocation30_spill] sm:$0xff] }
 0x4ef   : > { %15923 = vst [vmem:[#allocation19_spill] sm:$0xff] %v15501_v40  ;;  %v10124_v13 = vadd.f32 %v9829_v25, %v9532_v24  ;;  %v10123_v1 = vadd.f32 %v9760_v49, %v9531_v15 }
 0x4f0   : > { %v9831_v58 = vpop.f32.mrf.mxu0  ;;  %v9900_v39 = vpop.f32.mrf.mxu1  ;;  %v15929_v61 = vld [vmem:[#allocation12_spill] sm:$0xff]  ;;  %v15930_v28 = vld [vmem:[#allocation17_spill] sm:$0xff] }
 0x4f1   : > { %v10125_v23 = vadd.f32 %v9831_v58, %v9533_v0  ;;  %v10126_v33 = vadd.f32 %v9900_v39, %v15924_v3 }
 0x4f2   : > { %v9971_v45 = vpop.f32.mrf.mxu0  ;;  %v9902_v42 = vpop.f32.mrf.mxu1  ;;  %v15931_v57 = vld [vmem:[#allocation18_spill] sm:$0xff] }
 0x4f3   : > { %v10128_v50 = vadd.f32 %v9971_v45, %v15925_v41  ;;  %v10127_v46 = vadd.f32 %v9902_v42, %v15926_v30 }
 0x4f4   : > { %v9973_v5 = vpop.f32.mrf.mxu0  ;;  %v10042_v14 = vpop.f32.mrf.mxu1 }
 0x4f5   : > { %v10129_v22 = vadd.f32 %v9973_v5, %v15927_v2  ;;  %v10130_v54 = vadd.f32 %v10042_v14, %v15928_v21 }
 0x4f6   : > { %v10113_v37 = vpop.f32.mrf.mxu0  ;;  %v10044_v17 = vpop.f32.mrf.mxu1 }
 0x4f7   : > { %v10132_v8 = vadd.f32 %v10113_v37, %v15929_v61  ;;  %v10131_v56 = vadd.f32 %v10044_v17, %v15930_v28 }
 0x4f8   : > { %v10115_v38 = vpop.f32.mrf.mxu0  ;;  %v10208_v19 = vpop.f32.mrf.mxu1 }
 0x4f9   : > { %v10133_v25 = vadd.f32 %v10115_v38, %v15931_v57  ;;  %v10710_v58 = vadd.f32 %v10208_v19, %v10118_v48 }
 0x4fa   : > { %v10279_v53 = vpop.f32.mrf.mxu0  ;;  %v10210_v12 = vpop.f32.mrf.mxu1 }
 0x4fb   : > { %v10712_v24 = vadd.f32 %v10279_v53, %v10120_v51  ;;  %v10711_v15 = vadd.f32 %v10210_v12, %v10119_v18 }
 0x4fc   : > { %v10281_v29 = vpop.f32.mrf.mxu0  ;;  %v10350_v6 = vpop.f32.mrf.mxu1 }
 0x4fd   : > { %v10713_v39 = vadd.f32 %v10281_v29, %v10121_v52  ;;  %v10714_v45 = vadd.f32 %v10350_v6, %v10122_v47 }
 0x4fe   : > { %v10421_v63 = vpop.f32.mrf.mxu0  ;;  %v10352_v11 = vpop.f32.mrf.mxu1 }
 0x4ff   : > { %v10716_v3 = vadd.f32 %v10421_v63, %v10124_v13  ;;  %v10715_v42 = vadd.f32 %v10352_v11, %v10123_v1  ;;  %v15527_v1 = vpop.permute.xlu0 %11912 }
 0x500   : > { %v10423_v62 = vpop.f32.mrf.mxu0  ;;  %v10492_v43 = vpop.f32.mrf.mxu1 }
 0x501   : > { %v10717_v41 = vadd.f32 %v10423_v62, %v10125_v23  ;;  %v10718_v30 = vadd.f32 %v10492_v43, %v10126_v33 }
 0x502   : > { %v10563_v34 = vpop.f32.mrf.mxu0  ;;  %v10494_v55 = vpop.f32.mrf.mxu1 }
 0x503   : > { %v10720_v2 = vadd.f32 %v10563_v34, %v10128_v50  ;;  %v10719_v14 = vadd.f32 %v10494_v55, %v10127_v46  ;;  %v15932_v46 = vld [vmem:[#allocation19_spill] sm:$0xff] }
 0x504   : > { %v10565_v59 = vpop.f32.mrf.mxu0  ;;  %v10634_v44 = vpop.f32.mrf.mxu1 }
 0x505   : > { %v10721_v21 = vadd.f32 %v10565_v59, %v10129_v22  ;;  %v10722_v61 = vadd.f32 %v10634_v44, %v10130_v54 }
 0x506   : > { %v10705_v16 = vpop.f32.mrf.mxu0  ;;  %v10636_v27 = vpop.f32.mrf.mxu1 }
 0x507   : > { %v10724_v17 = vadd.f32 %v10705_v16, %v10132_v8  ;;  %v10723_v28 = vadd.f32 %v10636_v27, %v10131_v56 }
 0x508   : > { %v10707_v9 = vpop.f32.mrf.mxu0  ;;  %v10799_v10 = vpop.f32.mrf.mxu1 }
 0x509   : > { %v11301_v38 = vadd.f32 %v10799_v10, %v10710_v58  ;;  %v10725_v19 = vadd.f32 %v10707_v9, %v10133_v25 }
 0x50a   : > { %v10870_v31 = vpop.f32.mrf.mxu0  ;;  %v10801_v26 = vpop.f32.mrf.mxu1 }
 0x50b   : > { %v11303_v53 = vadd.f32 %v10870_v31, %v10712_v24  ;;  %v11302_v12 = vadd.f32 %v10801_v26, %v10711_v15 }
 0x50c   : > { %v10872_v35 = vpop.f32.mrf.mxu0  ;;  %v10941_v32 = vpop.f32.mrf.mxu1 }
 0x50d   : > { %v11304_v29 = vadd.f32 %v10872_v35, %v10713_v39  ;;  %v11305_v63 = vadd.f32 %v10941_v32, %v10714_v45 }
 0x50e   : > { %v11012_v20 = vpop.f32.mrf.mxu0  ;;  %v10943_v60 = vpop.f32.mrf.mxu1 }
 0x50f   : > { %v11307_v11 = vadd.f32 %v11012_v20, %v10716_v3  ;;  %v11306_v62 = vadd.f32 %v10943_v60, %v10715_v42 }
 0x510   : > { %v11014_v4 = vpop.f32.mrf.mxu0  ;;  %v11083_v40 = vpop.f32.mrf.mxu1 }
 0x511   : > { %v11308_v55 = vadd.f32 %v11014_v4, %v10717_v41  ;;  %v15529_v59 = vadd.f32 %v11083_v40, %v10718_v30 }
 0x512   : > { %v11154_v36 = vpop.f32.mrf.mxu0  ;;  %v11085_v7 = vpop.f32.mrf.mxu1 }
 0x513   : > { %v15531_v44 = vadd.f32 %v11154_v36, %v10720_v2  ;;  %v15534_v9 = vadd.f32 %v11085_v7, %v10719_v14 }
 0x514   : > { %v11156_v49 = vpop.f32.mrf.mxu0  ;;  %v11225_v0 = vpop.f32.mrf.mxu1 }
 0x515   : > { %v15536_v10 = vadd.f32 %v11156_v49, %v10721_v21  ;;  %v15539_v60 = vadd.f32 %v11225_v0, %v10722_v61 }
 0x516   : > { %v11296_v5 = vpop.f32.mrf.mxu0  ;;  %v11227_v37 = vpop.f32.mrf.mxu1 }
 0x517   : > { %v15541_v26 = vadd.f32 %v11296_v5, %v10724_v17  ;;  %v15544_v48 = vadd.f32 %v11227_v37, %v10723_v28 }
 0x518   : > { %v11298_v57 = vpop.f32.mrf.mxu0  ;;  %v11391_v6 = vpop.f32.mrf.mxu1 }
 0x519   : > { %v11893_v43 = vadd.f32 %v11391_v6, %v11301_v38  ;;  %v15549_v13 = vadd.f32 %v11298_v57, %v10725_v19 }
 0x51a   : > { %v11462_v34 = vpop.f32.mrf.mxu0  ;;  %v11393_v27 = vpop.f32.mrf.mxu1 }
 0x51b   : > { %v11895_v16 = vadd.f32 %v11462_v34, %v11303_v53  ;;  %v11915_v31 = vadd.f32 %v15527_v1, %v11893_v43  ;;  %v11894_v32 = vadd.f32 %v11393_v27, %v11302_v12 }
 0x51c   : > { %v11464_v20 = vpop.f32.mrf.mxu0  ;;  %v11533_v4 = vpop.f32.mrf.mxu1 }
 0x51d   : > { %v11917_v40 = vadd.f32 %v15527_v1, %v11895_v16  ;;  %v11896_v35 = vadd.f32 %v11464_v20, %v11304_v29  ;;  %v11931_v51 = vmax.f32 %v11915_v31, 0.0  ;;  %v11916_v18 = vadd.f32 %v15527_v1, %v11894_v32 }
 0x51e   : > { %v11897_v52 = vadd.f32 %v11533_v4, %v11305_v63  ;;  %v11604_v47 = vpop.f32.mrf.mxu0  ;;  %v11535_v50 = vpop.f32.mrf.mxu1 }
 0x51f   : > { %v11933_v23 = vmax.f32 %v11917_v40, 0.0  ;;  %v11918_v36 = vadd.f32 %v15527_v1, %v11896_v35  ;;  %v11899_v33 = vadd.f32 %v11604_v47, %v11307_v11  ;;  %v11954_v22 = vrot.slane %v11931_v51, %v15932_v46 }
 0x520   : > { %v11932_v7 = vmax.f32 %v11916_v18, 0.0  ;;  %v11919_v54 = vadd.f32 %v15527_v1, %v11897_v52  ;;  %v11898_v8 = vadd.f32 %v11535_v50, %v11306_v62  ;;  %v11606_v56 = vpop.f32.mrf.mxu0  ;;  %v11675_v38 = vpop.f32.mrf.mxu1 }
 0x521   : > { %v12021_v25 = vrot.slane %v11933_v23, %v15932_v46  ;;  %v11934_v49 = vmax.f32 %v11918_v36, 0.0  ;;  %v11921_v58 = vadd.f32 %v15527_v1, %v11899_v33  ;;  %v11900_v24 = vadd.f32 %v11606_v56, %v11308_v55 }
 0x522   : > { %v11955_v15 = vcombine.high %v11954_v22, %v11954_v22  ;;  %v11962_v39 = vrot.slane %v11954_v22, %v15932_v46  ;;  %v11988_v0 = vrot.slane %v11932_v7, %v15932_v46  ;;  %v11935_v45 = vmax.f32 %v11919_v54, 0.0  ;;  %v11746_v29 = vpop.f32.mrf.mxu0  ;;  %v11677_v40 = vpop.f32.mrf.mxu1 }
 0x523   : > { %v12022_v3 = vcombine.high %v12021_v25, %v12021_v25  ;;  %v12029_v42 = vrot.slane %v12021_v25, %v15932_v46  ;;  %v12054_v41 = vrot.slane %v11934_v49, %v15932_v46  ;;  %v11937_v5 = vmax.f32 %v11921_v58, 0.0 }
 0x524   : > { %v11969_v30 = vrot.slane %v11955_v15, %v15932_v46  ;;  %v11970_v2 = vcombine.high %v11962_v39, %v11962_v39  ;;  %11977 = vst.msk [vmem:[%s15561_s26] sm:$0x1] %vm11976_vm12, %v11962_v39  ;;  %v11989_v14 = vcombine.high %v11988_v0, %v11988_v0  ;;  %v11996_v21 = vrot.slane %v11988_v0, %v15932_v46  ;;  %v11748_v52 = vpop.f32.mrf.mxu0 }
 0x525   : > { %v12036_v37 = vrot.slane %v12022_v3, %v15932_v46  ;;  %v12037_v61 = vcombine.high %v12029_v42, %v12029_v42  ;;  %12043 = vst.msk [vmem:[%s15561_s26 + $0x2] sm:$0x1] %vm11976_vm12, %v12029_v42  ;;  %v12055_v17 = vcombine.high %v12054_v41, %v12054_v41  ;;  %v12062_v28 = vrot.slane %v12054_v41, %v15932_v46 }
 0x526   : > { %v11971_v57 = vcombine.high %v11969_v30, %v11969_v30  ;;  %11978 = vst.msk [vmem:[%s15561_s26 + $0x10] sm:$0x1] %vm11976_vm12, %v11969_v30  ;;  %11979 = vst.msk [vmem:[%s15561_s26 + $0x20] sm:$0x1] %vm11976_vm12, %v11970_v2  ;;  %v12003_v19 = vrot.slane %v11989_v14, %v15932_v46  ;;  %v12004_v53 = vcombine.high %v11996_v21, %v11996_v21  ;;  %v11817_v14 = vpop.f32.mrf.mxu1 }
 0x527   : > { %12010 = vst.msk [vmem:[%s15561_s26 + $0x1] sm:$0x1] %vm11976_vm12, %v11996_v21  ;;  %v12087_v12 = vrot.slane %v11935_v45, %v15932_v46  ;;  %v12038_v6 = vcombine.high %v12036_v37, %v12036_v37  ;;  %12044 = vst.msk [vmem:[%s15561_s26 + $0x12] sm:$0x1] %vm11976_vm12, %v12036_v37  ;;  %v12069_v63 = vrot.slane %v12055_v17, %v15932_v46  ;;  %v11888_v21 = vpop.f32.mrf.mxu0 }
 0x528   : > { %12045 = vst.msk [vmem:[%s15561_s26 + $0x22] sm:$0x1] %vm11976_vm12, %v12037_v61  ;;  %v12070_v11 = vcombine.high %v12062_v28, %v12062_v28  ;;  %12076 = vst.msk [vmem:[%s15561_s26 + $0x3] sm:$0x1] %vm11976_vm12, %v12062_v28  ;;  %v12153_v62 = vrot.slane %v11937_v5, %v15932_v46  ;;  %v12005_v43 = vcombine.high %v12003_v19, %v12003_v19 }
 0x529   : > { %11980 = vst.msk [vmem:[%s15561_s26 + $0x30] sm:$0x1] %vm11976_vm12, %v11971_v57  ;;  %12011 = vst.msk [vmem:[%s15561_s26 + $0x11] sm:$0x1] %vm11976_vm12, %v12003_v19  ;;  %v12088_v34 = vcombine.high %v12087_v12, %v12087_v12  ;;  %v12095_v55 = vrot.slane %v12087_v12, %v15932_v46  ;;  %v11920_v16 = vadd.f32 %v15527_v1, %v11898_v8 }
 0x52a   : > { %12012 = vst.msk [vmem:[%s15561_s26 + $0x21] sm:$0x1] %vm11976_vm12, %v12004_v53  ;;  %12046 = vst.msk [vmem:[%s15561_s26 + $0x32] sm:$0x1] %vm11976_vm12, %v12038_v6  ;;  %v12071_v27 = vcombine.high %v12069_v63, %v12069_v63  ;;  %v12154_v31 = vcombine.high %v12153_v62, %v12153_v62  ;;  %v12161_v32 = vrot.slane %v12153_v62, %v15932_v46 }
 0x52b   : > { %12077 = vst.msk [vmem:[%s15561_s26 + $0x13] sm:$0x1] %vm11976_vm12, %v12069_v63  ;;  %12078 = vst.msk [vmem:[%s15561_s26 + $0x23] sm:$0x1] %vm11976_vm12, %v12070_v11  ;;  %v11922_v20 = vadd.f32 %v15527_v1, %v11900_v24  ;;  %v12102_v35 = vrot.slane %v12088_v34, %v15932_v46  ;;  %v12103_v4 = vcombine.high %v12095_v55, %v12095_v55  ;;  %v11936_v51 = vmax.f32 %v11920_v16, 0.0  ;;  %v11890_v16 = vpop.f32.mrf.mxu0 }
 0x52c   : > { %12013 = vst.msk [vmem:[%s15561_s26 + $0x31] sm:$0x1] %vm11976_vm12, %v12005_v43  ;;  %12109 = vst.msk [vmem:[%s15561_s26 + $0x4] sm:$0x1] %vm11976_vm12, %v12095_v55  ;;  %v11901_v18 = vadd.f32 %v11675_v38, %v15529_v59  ;;  %v12168_v47 = vrot.slane %v12154_v31, %v15932_v46  ;;  %v12169_v23 = vcombine.high %v12161_v32, %v12161_v32  ;;  %v11819_v55 = vpop.f32.mrf.mxu1 }
 0x52d   : > { %12079 = vst.msk [vmem:[%s15561_s26 + $0x33] sm:$0x1] %vm11976_vm12, %v12071_v27  ;;  %12175 = vst.msk [vmem:[%s15561_s26 + $0x6] sm:$0x1] %vm11976_vm12, %v12161_v32  ;;  %v11938_v36 = vmax.f32 %v11922_v20, 0.0  ;;  %v11903_v33 = vadd.f32 %v11746_v29, %v15531_v44  ;;  %v12104_v50 = vcombine.high %v12102_v35, %v12102_v35  ;;  %v12120_v59 = vrot.slane %v11936_v51, %v15932_v46 }
 0x52e   : > { %12110 = vst.msk [vmem:[%s15561_s26 + $0x14] sm:$0x1] %vm11976_vm12, %v12102_v35  ;;  %12111 = vst.msk [vmem:[%s15561_s26 + $0x24] sm:$0x1] %vm11976_vm12, %v12103_v4  ;;  %v11923_v22 = vadd.f32 %v15527_v1, %v11901_v18  ;;  %v11902_v7 = vadd.f32 %v11677_v40, %v15534_v9  ;;  %v12170_v54 = vcombine.high %v12168_v47, %v12168_v47 }
 0x52f   : > { %12176 = vst.msk [vmem:[%s15561_s26 + $0x16] sm:$0x1] %vm11976_vm12, %v12168_v47  ;;  %12177 = vst.msk [vmem:[%s15561_s26 + $0x26] sm:$0x1] %vm11976_vm12, %v12169_v23  ;;  %v12186_v44 = vrot.slane %v11938_v36, %v15932_v46  ;;  %v11925_v8 = vadd.f32 %v15527_v1, %v11903_v33  ;;  %v11904_v56 = vadd.f32 %v11748_v52, %v15536_v10 }
 0x530   : > { %12112 = vst.msk [vmem:[%s15561_s26 + $0x34] sm:$0x1] %vm11976_vm12, %v12104_v50  ;;  %v12121_v25 = vcombine.high %v12120_v59, %v12120_v59  ;;  %v12128_v49 = vrot.slane %v12120_v59, %v15932_v46  ;;  %v11939_v58 = vmax.f32 %v11923_v22, 0.0  ;;  %v11924_v9 = vadd.f32 %v15527_v1, %v11902_v7  ;;  %12178 = vst.msk [vmem:[%s15561_s26 + $0x36] sm:$0x1] %vm11976_vm12, %v12170_v54 }
 0x531   : > { %v12187_v24 = vcombine.high %v12186_v44, %v12186_v44  ;;  %v12194_v15 = vrot.slane %v12186_v44, %v15932_v46  ;;  %v11941_v39 = vmax.f32 %v11925_v8, 0.0  ;;  %v11926_v0 = vadd.f32 %v15527_v1, %v11904_v56 }
 0x532   : > { %v12135_v10 = vrot.slane %v12121_v25, %v15932_v46  ;;  %v12136_v45 = vcombine.high %v12128_v49, %v12128_v49  ;;  %12142 = vst.msk [vmem:[%s15561_s26 + $0x5] sm:$0x1] %vm11976_vm12, %v12128_v49  ;;  %v12219_v3 = vrot.slane %v11939_v58, %v15932_v46  ;;  %v11940_v42 = vmax.f32 %v11924_v9, 0.0 }
 0x533   : > { %v12201_v41 = vrot.slane %v12187_v24, %v15932_v46  ;;  %v12202_v5 = vcombine.high %v12194_v15, %v12194_v15  ;;  %12208 = vst.msk [vmem:[%s15561_s26 + $0x7] sm:$0x1] %vm11976_vm12, %v12194_v15  ;;  %v12285_v30 = vrot.slane %v11941_v39, %v15932_v46  ;;  %v11942_v2 = vmax.f32 %v11926_v0, 0.0 }
 0x534   : > { %v12137_v37 = vcombine.high %v12135_v10, %v12135_v10  ;;  %12143 = vst.msk [vmem:[%s15561_s26 + $0x15] sm:$0x1] %vm11976_vm12, %v12135_v10  ;;  %12144 = vst.msk [vmem:[%s15561_s26 + $0x25] sm:$0x1] %vm11976_vm12, %v12136_v45  ;;  %v12220_v61 = vcombine.high %v12219_v3, %v12219_v3  ;;  %v12227_v17 = vrot.slane %v12219_v3, %v15932_v46 }
 0x535   : > { %v12252_v28 = vrot.slane %v11940_v42, %v15932_v46  ;;  %v12203_v38 = vcombine.high %v12201_v41, %v12201_v41  ;;  %12209 = vst.msk [vmem:[%s15561_s26 + $0x17] sm:$0x1] %vm11976_vm12, %v12201_v41  ;;  %12210 = vst.msk [vmem:[%s15561_s26 + $0x27] sm:$0x1] %vm11976_vm12, %v12202_v5  ;;  %v12286_v57 = vcombine.high %v12285_v30, %v12285_v30 }
 0x536   : > { %v12293_v19 = vrot.slane %v12285_v30, %v15932_v46  ;;  %v12318_v53 = vrot.slane %v11942_v2, %v15932_v46  ;;  %12145 = vst.msk [vmem:[%s15561_s26 + $0x35] sm:$0x1] %vm11976_vm12, %v12137_v37  ;;  %v12234_v12 = vrot.slane %v12220_v61, %v15932_v46  ;;  %v12235_v29 = vcombine.high %v12227_v17, %v12227_v17 }
 0x537   : > { %12241 = vst.msk [vmem:[%s15561_s26 + $0x8] sm:$0x1] %vm11976_vm12, %v12227_v17  ;;  %v12253_v6 = vcombine.high %v12252_v28, %v12252_v28  ;;  %v12260_v63 = vrot.slane %v12252_v28, %v15932_v46  ;;  %12211 = vst.msk [vmem:[%s15561_s26 + $0x37] sm:$0x1] %vm11976_vm12, %v12203_v38  ;;  %v12300_v11 = vrot.slane %v12286_v57, %v15932_v46 }
 0x538   : > { %v12301_v62 = vcombine.high %v12293_v19, %v12293_v19  ;;  %12307 = vst.msk [vmem:[%s15561_s26 + $0xa] sm:$0x1] %vm11976_vm12, %v12293_v19  ;;  %v12319_v43 = vcombine.high %v12318_v53, %v12318_v53  ;;  %v12326_v34 = vrot.slane %v12318_v53, %v15932_v46  ;;  %v12236_v27 = vcombine.high %v12234_v12, %v12234_v12 }
 0x539   : > { %12242 = vst.msk [vmem:[%s15561_s26 + $0x18] sm:$0x1] %vm11976_vm12, %v12234_v12  ;;  %12243 = vst.msk [vmem:[%s15561_s26 + $0x28] sm:$0x1] %vm11976_vm12, %v12235_v29  ;;  %v12267_v31 = vrot.slane %v12253_v6, %v15932_v46  ;;  %v12268_v32 = vcombine.high %v12260_v63, %v12260_v63  ;;  %v11905_v20 = vadd.f32 %v11817_v14, %v15539_v60 }
 0x53a   : > { %12274 = vst.msk [vmem:[%s15561_s26 + $0x9] sm:$0x1] %vm11976_vm12, %v12260_v63  ;;  %v12302_v40 = vcombine.high %v12300_v11, %v12300_v11  ;;  %12308 = vst.msk [vmem:[%s15561_s26 + $0x1a] sm:$0x1] %vm11976_vm12, %v12300_v11  ;;  %v12333_v35 = vrot.slane %v12319_v43, %v15932_v46  ;;  %v12334_v4 = vcombine.high %v12326_v34, %v12326_v34 }
 0x53b   : > { %12309 = vst.msk [vmem:[%s15561_s26 + $0x2a] sm:$0x1] %vm11976_vm12, %v12301_v62  ;;  %12340 = vst.msk [vmem:[%s15561_s26 + $0xb] sm:$0x1] %vm11976_vm12, %v12326_v34  ;;  %v11907_v51 = vadd.f32 %v11888_v21, %v15541_v26  ;;  %v12269_v18 = vcombine.high %v12267_v31, %v12267_v31  ;;  %v11927_v60 = vadd.f32 %v15527_v1, %v11905_v20 }
 0x53c   : > { %12244 = vst.msk [vmem:[%s15561_s26 + $0x38] sm:$0x1] %vm11976_vm12, %v12236_v27  ;;  %12275 = vst.msk [vmem:[%s15561_s26 + $0x19] sm:$0x1] %vm11976_vm12, %v12267_v31  ;;  %v11906_v52 = vadd.f32 %v11819_v55, %v15544_v48  ;;  %v11908_v47 = vadd.f32 %v11890_v16, %v15549_v13  ;;  %v12335_v23 = vcombine.high %v12333_v35, %v12333_v35 }
 0x53d   : > { %12276 = vst.msk [vmem:[%s15561_s26 + $0x29] sm:$0x1] %vm11976_vm12, %v12268_v32  ;;  %12310 = vst.msk [vmem:[%s15561_s26 + $0x3a] sm:$0x1] %vm11976_vm12, %v12302_v40  ;;  %v11929_v26 = vadd.f32 %v15527_v1, %v11907_v51  ;;  %v11943_v36 = vmax.f32 %v11927_v60, 0.0 }
 0x53e   : > { %12341 = vst.msk [vmem:[%s15561_s26 + $0x1b] sm:$0x1] %vm11976_vm12, %v12333_v35  ;;  %12342 = vst.msk [vmem:[%s15561_s26 + $0x2b] sm:$0x1] %vm11976_vm12, %v12334_v4  ;;  %v11928_v33 = vadd.f32 %v15527_v1, %v11906_v52  ;;  %v11930_v50 = vadd.f32 %v15527_v1, %v11908_v47 }
 0x53f   : > { %12277 = vst.msk [vmem:[%s15561_s26 + $0x39] sm:$0x1] %vm11976_vm12, %v12269_v18  ;;  %12343 = vst.msk [vmem:[%s15561_s26 + $0x3b] sm:$0x1] %vm11976_vm12, %v12335_v23  ;;  %v11945_v48 = vmax.f32 %v11929_v26, 0.0  ;;  %v12351_v13 = vrot.slane %v11943_v36, %v15932_v46 }
 0x540   : > { %v11944_v59 = vmax.f32 %v11928_v33, 0.0  ;;  %v11946_v22 = vmax.f32 %v11930_v50, 0.0 }
 0x541   : > { %v12417_v7 = vrot.slane %v11945_v48, %v15932_v46  ;;  %v12352_v54 = vcombine.high %v12351_v13, %v12351_v13  ;;  %v12359_v44 = vrot.slane %v12351_v13, %v15932_v46 }
 0x542   : > { %v12384_v8 = vrot.slane %v11944_v59, %v15932_v46  ;;  %v12450_v56 = vrot.slane %v11946_v22, %v15932_v46 }
 0x543   : > { %v12418_v1 = vcombine.high %v12417_v7, %v12417_v7  ;;  %v12425_v25 = vrot.slane %v12417_v7, %v15932_v46  ;;  %v12366_v49 = vrot.slane %v12352_v54, %v15932_v46  ;;  %v12367_v58 = vcombine.high %v12359_v44, %v12359_v44  ;;  %12373 = vst.msk [vmem:[%s15561_s26 + $0xc] sm:$0x1] %vm11976_vm12, %v12359_v44 }
 0x544   : > { %v12385_v9 = vcombine.high %v12384_v8, %v12384_v8  ;;  %v12392_v24 = vrot.slane %v12384_v8, %v15932_v46  ;;  %v12451_v0 = vcombine.high %v12450_v56, %v12450_v56  ;;  %v12458_v10 = vrot.slane %v12450_v56, %v15932_v46 }
 0x545   : > { %v12432_v15 = vrot.slane %v12418_v1, %v15932_v46  ;;  %v12433_v39 = vcombine.high %v12425_v25, %v12425_v25  ;;  %12439 = vst.msk [vmem:[%s15561_s26 + $0xe] sm:$0x1] %vm11976_vm12, %v12425_v25  ;;  %v12368_v45 = vcombine.high %v12366_v49, %v12366_v49  ;;  %12374 = vst.msk [vmem:[%s15561_s26 + $0x1c] sm:$0x1] %vm11976_vm12, %v12366_v49 }
 0x546   : > { %12375 = vst.msk [vmem:[%s15561_s26 + $0x2c] sm:$0x1] %vm11976_vm12, %v12367_v58  ;;  %v12399_v3 = vrot.slane %v12385_v9, %v15932_v46  ;;  %v12400_v42 = vcombine.high %v12392_v24, %v12392_v24  ;;  %12406 = vst.msk [vmem:[%s15561_s26 + $0xd] sm:$0x1] %vm11976_vm12, %v12392_v24  ;;  %v12465_v5 = vrot.slane %v12451_v0, %v15932_v46 }
 0x547   : > { %v12434_v41 = vcombine.high %v12432_v15, %v12432_v15  ;;  %12440 = vst.msk [vmem:[%s15561_s26 + $0x1e] sm:$0x1] %vm11976_vm12, %v12432_v15  ;;  %12441 = vst.msk [vmem:[%s15561_s26 + $0x2e] sm:$0x1] %vm11976_vm12, %v12433_v39  ;;  %v12466_v30 = vcombine.high %v12458_v10, %v12458_v10 }
 0x548   : > { %12472 = vst.msk [vmem:[%s15561_s26 + $0xf] sm:$0x1] %vm11976_vm12, %v12458_v10  ;;  %12376 = vst.msk [vmem:[%s15561_s26 + $0x3c] sm:$0x1] %vm11976_vm12, %v12368_v45  ;;  %v12401_v2 = vcombine.high %v12399_v3, %v12399_v3  ;;  %v12467_v46 = vcombine.high %v12465_v5, %v12465_v5 }
 0x549   : > { %12407 = vst.msk [vmem:[%s15561_s26 + $0x1d] sm:$0x1] %vm11976_vm12, %v12399_v3  ;;  %12408 = vst.msk [vmem:[%s15561_s26 + $0x2d] sm:$0x1] %vm11976_vm12, %v12400_v42 }
 0x54a   : > { %12442 = vst.msk [vmem:[%s15561_s26 + $0x3e] sm:$0x1] %vm11976_vm12, %v12434_v41  ;;  %12473 = vst.msk [vmem:[%s15561_s26 + $0x1f] sm:$0x1] %vm11976_vm12, %v12465_v5 }
 0x54b   : > { %12474 = vst.msk [vmem:[%s15561_s26 + $0x2f] sm:$0x1] %vm11976_vm12, %v12466_v30  ;;  %12409 = vst.msk [vmem:[%s15561_s26 + $0x3d] sm:$0x1] %vm11976_vm12, %v12401_v2 }
 0x54c   : > { %12475 = vst.msk [vmem:[%s15561_s26 + $0x3f] sm:$0x1] %vm11976_vm12, %v12467_v46 }
 0x54d   : > { %13187 = shalt.err (!%p13184_p0)
}
 0x54e   : > { %s13188_s23 = scalar_lea.hbm %s15745_s19, 1024  ;;  %s13192_s26 = scalar_lea.hbm %s15809_s8, 2048 }
 0x54f   : > { %p13189_p1 = scmp.ne.s32.totalorder %s15745_s19, %s13188_s23  ;;  %p13193_p4 = scmp.lt.s32.totalorder %s15745_s19, %s15809_s8 }
 0x550   : > { %p13194_p7 = scmp.lt.s32.totalorder %s13192_s26, %s13188_s23 }
 0x551   : > { %p13190_p2 = pnand %p13189_p1, %p13342_p5 }
 0x552   : > { %p13195_p6 = por %p13194_p7, %p13193_p4 }
 0x553   : > { %p13191_p3 = pneg %p13190_p2 }
 0x555   : > { %p13196_p8 = pnand %p13195_p6, %p13191_p3 }
 0x557   : > { %13199 = shalt.err (!%p13196_p8)
}
 0x558   : > { %s13257_s13 = smov 128   ;;  %s13258_s17 = smov 8  }
 0x559   : > { %13074 = dma.vmem_to_hbm [thread:$0]  (%p13342_p5), %s15747_s12, 1024, %s15745_s19, %s15761_s20, %s13257_s13, %s13257_s13, %s13258_s17  }
 0x55a PF: > { %p13086_p9 = scmp.ge.s32.totalorder %s13238_s30, 2  ;;  %s12505_s18 = sand.u32 1, %s13226_s27  }
 0x55b   : > { %p15933_p10 = scmp.ne.s32.totalorder %s15817_s16, 0  ;;  %s12506_s21 = scalar_lea.sflag [#allocation6], %s12505_s18 }
 0x55d   : > { %p13081_p11 = pnand %p13086_p9, %p15933_p10 }
 0x55f   : > { %p13082_p12 = pneg %p13081_p11 }
 0x561   : > { %13221 = dma.done.wait (%p13082_p12), %s12506_s21, 1024  }
 0x562   : > { %13223 = vsyncadd (%p13082_p12), %s12506_s21, 4294966272  ;;  %p19_p13 = scmp.ge.s32.totalorder %s13329_s11, 4   ;;  %s15934_s27 = smov %s13230_s28 }
 0x563   : > { %s15935_s28 = smov %s13234_s29  ;;  %s15936_s29 = smov %s13340_s14 }
 0x564   : > { %s15937_s30 = smov %s13329_s11  ;;  %21 = sbr.rel (!%p19_p13) target bundleno = 4 (0x4), region = 111 }
 0x569   :  { %12511 = vsyncpa [#allocation5], 1 }
 0x56a   :  { %12513 = vsyncpa [#allocation5 + $0x1], 1 }
 0x56b   :  { %12514 = vsyncpa [#allocation6], 1 }
 0x56c   :  { %12516 = vsyncpa [#allocation6 + $0x1], 1 }

</bundles_post_ra>
